<compile_context>
chip_gen: v5e
topology: v5e:2x2
jax: 0.10.0
libtpu: 0.0.40
codegen_flags: <defaults>
</compile_context>

<pallas_src>
import math
import functools

import jax
import jax.numpy as jnp
from jax.experimental import pallas as pl
from jax.experimental.pallas import tpu as pltpu

NEG_INF = -1e9


def _round_up(x, m):
    return ((x + m - 1) // m) * m


# ----------------------------------------------------------------------------
# Fused decoder-layer Pallas kernel
# ----------------------------------------------------------------------------
def fused_decoder_layer(tgt, memory_bf16, tpad_add, mpad_add, causal, p, *,
                        n_head, batch_tile):
    """One pallas_call for the whole TransformerDecoderLayer + final proj.

    tgt         : (B, L, D)  f32   (embedded + positionally encoded target)
    memory_bf16 : (B, P, D)  bf16
    tpad_add    : (B, 1, L)  f32   additive target key-padding mask
    mpad_add    : (B, 1, P)  f32   additive memory key-padding mask
    causal      : (L, L)     f32   additive causal mask (grid-invariant)
    returns     : (B, L, Vp) f32   padded logits (slice [:, :, :n_out] outside)
    """
    B, L, D = tgt.shape
    P = memory_bf16.shape[1]
    H = n_head
    Dh = D // H
    Vp = p["final_w"].shape[1]
    Bt = batch_tile
    assert B % Bt == 0 and D % H == 0
    scale = 1.0 / math.sqrt(Dh)
    f32 = jnp.float32
    bf16 = jnp.bfloat16

    def kern(tgt_ref, mem_ref, tpad_ref, mpad_ref, causal_ref,
             sa_wqkv, sa_bqkv, sa_wo, sa_bo,
             ca_wq, ca_bq, ca_wkv, ca_bkv, ca_wo, ca_bo,
             ln1_g, ln1_b, ln2_g, ln2_b, ln3_g, ln3_b,
             ff_w1, ff_b1, ff_w2, ff_b2,
             fin_w, fin_b,
             out_ref):
        x = tgt_ref[...].reshape(Bt * L, D)              # (Bt*L, D) f32
        mem = mem_ref[...].reshape(Bt * P, D)            # (Bt*P, D) bf16
        tpad = tpad_ref[...]                             # (Bt, 1, L)
        mpad = mpad_ref[...]                             # (Bt, 1, P)
        causal = causal_ref[...]                         # (L, L)

        def layer_norm(y, g, b):
            mean = jnp.mean(y, axis=-1, keepdims=True)
            var = jnp.mean(jnp.square(y - mean), axis=-1, keepdims=True)
            return (y - mean) * jax.lax.rsqrt(var + 1e-5) * g[...] + b[...]

        def heads_attend(qb, kb, vb, add_mask):
            # qb: (Lq, D) bf16 (already scaled), kb/vb: (Lk, D) bf16.
            # Per-head scores/softmax/PV; out-projection hoisted to the caller.
            outs = []
            for h in range(H):
                hs = slice(h * Dh, (h + 1) * Dh)
                s = jax.lax.dot_general(
                    qb[:, hs], kb[:, hs], (((1,), (1,)), ((), ())),
                    preferred_element_type=f32)          # (Lq, Lk)
                s = s + add_mask
                s = s - jnp.max(s, axis=-1, keepdims=True)
                pr = jnp.exp(s)
                pr = pr * pl.reciprocal(jnp.sum(pr, axis=-1, keepdims=True),
                                        approx=True)
                outs.append(jnp.dot(pr.astype(bf16), vb[:, hs],
                                    preferred_element_type=f32))  # (Lq, Dh)
            return jnp.concatenate(outs, axis=-1)        # (Lq, D) f32

        # ---- self-attention + residual + LN1 ----
        qkv = jnp.dot(x.astype(bf16), sa_wqkv[...],
                      preferred_element_type=f32) + sa_bqkv[...]   # (Bt*L, 3D)
        q_s = (qkv[:, 0:D] * scale).astype(bf16)
        k_s = qkv[:, D:2 * D].astype(bf16)
        v_s = qkv[:, 2 * D:3 * D].astype(bf16)
        sa_parts = []
        for b in range(Bt):
            rs = slice(b * L, (b + 1) * L)
            sa_parts.append(heads_attend(q_s[rs], k_s[rs], v_s[rs],
                                         causal + tpad[b]))
        sa_cat = jnp.concatenate(sa_parts, axis=0) if Bt > 1 else sa_parts[0]
        sa = jnp.dot(sa_cat.astype(bf16), sa_wo[...],
                     preferred_element_type=f32) + sa_bo[...]
        x = layer_norm(x + sa, ln1_g, ln1_b)

        # ---- cross-attention + residual + LN2 ----
        q = jnp.dot(x.astype(bf16), ca_wq[...],
                    preferred_element_type=f32) + ca_bq[...]       # (Bt*L, D)
        q_c = (q * scale).astype(bf16)
        kv = jnp.dot(mem, ca_wkv[...],
                     preferred_element_type=f32) + ca_bkv[...]     # (Bt*P, 2D)
        k_c = kv[:, 0:D].astype(bf16)
        v_c = kv[:, D:2 * D].astype(bf16)
        ca_parts = []
        for b in range(Bt):
            rq = slice(b * L, (b + 1) * L)
            rk = slice(b * P, (b + 1) * P)
            ca_parts.append(heads_attend(q_c[rq], k_c[rk], v_c[rk], mpad[b]))
        ca_cat = jnp.concatenate(ca_parts, axis=0) if Bt > 1 else ca_parts[0]
        ca = jnp.dot(ca_cat.astype(bf16), ca_wo[...],
                     preferred_element_type=f32) + ca_bo[...]
        x = layer_norm(x + ca, ln2_g, ln2_b)

        # ---- feed-forward + residual + LN3 (hidden never leaves VMEM) ----
        hdn = jnp.dot(x.astype(bf16), ff_w1[...],
                      preferred_element_type=f32) + ff_b1[...]
        hdn = jnp.maximum(hdn, 0.0)
        hdn = jnp.dot(hdn.astype(bf16), ff_w2[...],
                      preferred_element_type=f32) + ff_b2[...]
        x = layer_norm(x + hdn, ln3_g, ln3_b)

        # ---- final projection: lane-dense (Vp multiple of 128) store ----
        out = jnp.dot(x.astype(bf16), fin_w[...],
                      preferred_element_type=f32) + fin_b[...]     # (Bt*L, Vp)
        out_ref[...] = out.reshape(Bt, L, Vp)

    weights = (
        p["sa_wqkv"], p["sa_bqkv"], p["sa_wo"], p["sa_bo"],
        p["ca_wq"], p["ca_bq"], p["ca_wkv"], p["ca_bkv"],
        p["ca_wo"], p["ca_bo"],
        p["ln1_g"], p["ln1_b"], p["ln2_g"], p["ln2_b"],
        p["ln3_g"], p["ln3_b"],
        p["ff_w1"], p["ff_b1"], p["ff_w2"], p["ff_b2"],
        p["final_w"], p["final_b"],
    )

    batch_map = lambda b: (b, 0, 0)
    # Grid-invariant inputs: whole array resident in VMEM, single-buffered
    # (no per-step DMA / no double-buffering of the weight stack).
    resident = lambda: pl.BlockSpec(memory_space=pltpu.MemorySpace.VMEM)
    in_specs = [
        pl.BlockSpec((Bt, L, D), batch_map),     # tgt
        pl.BlockSpec((Bt, P, D), batch_map),     # memory (bf16)
        pl.BlockSpec((Bt, 1, L), batch_map),     # tgt key-pad additive
        pl.BlockSpec((Bt, 1, P), batch_map),     # memory key-pad additive
        resident(),                              # causal mask
    ] + [resident() for _ in weights]

    return pl.pallas_call(
        kern,
        out_shape=jax.ShapeDtypeStruct((B, L, Vp), jnp.float32),
        grid=(B // Bt,),
        in_specs=in_specs,
        out_specs=pl.BlockSpec((Bt, L, Vp), batch_map),
        compiler_params=pltpu.CompilerParams(
            dimension_semantics=("parallel",)),
    )(tgt, memory_bf16, tpad_add, mpad_add, causal, *weights)


# ----------------------------------------------------------------------------
# Model glue (pure JAX): sinusoidal encoders, embeddings, masks
# ----------------------------------------------------------------------------
def _sinusoid_terms(dim_model, min_wavelength, max_wavelength):
    n_sin = dim_model // 2
    n_cos = dim_model - n_sin
    base = min_wavelength / (2.0 * math.pi)
    scale = max_wavelength / min_wavelength
    sin_term = base * scale ** (jnp.arange(n_sin, dtype=jnp.float32) / (n_sin - 1))
    cos_term = base * scale ** (jnp.arange(n_cos, dtype=jnp.float32) / (n_cos - 1))
    return sin_term, cos_term


def init_params(key, dim_model, n_head, dim_ff, vocab_size, max_charge,
                padding_idx=0):
    """Weights in fused / MXU-friendly layout: matmul weights bf16, biases +
    LN params f32, final projection padded to a multiple of 128 lanes."""
    D = dim_model
    n_out = vocab_size + 1 + 1
    n_out_pad = _round_up(n_out, 128)
    ks = iter(jax.random.split(key, 18))
    bf16 = jnp.bfloat16

    def nrm(k, shape, s=0.05):
        return (s * jax.random.normal(k, shape)).astype(jnp.float32)

    p = {}
    # embeddings (used by JAX glue)
    p["charge_emb"] = nrm(next(ks), (max_charge, D))
    aa = nrm(next(ks), (n_out, D))
    p["aa_emb"] = aa.at[padding_idx].set(0.0)
    # mass (FloatEncoder) / positional encoder terms
    p["mass_sin"], p["mass_cos"] = _sinusoid_terms(D, 0.001, 10000.0)
    p["pos_sin"], p["pos_cos"] = _sinusoid_terms(D, 1.0, 100000.0)
    # self-attention (fused QKV)
    p["sa_wqkv"] = nrm(next(ks), (D, 3 * D)).astype(bf16)
    p["sa_bqkv"] = nrm(next(ks), (1, 3 * D), s=0.01)
    p["sa_wo"] = nrm(next(ks), (D, D)).astype(bf16)
    p["sa_bo"] = nrm(next(ks), (1, D), s=0.01)
    # cross-attention (fused KV)
    p["ca_wq"] = nrm(next(ks), (D, D)).astype(bf16)
    p["ca_bq"] = nrm(next(ks), (1, D), s=0.01)
    p["ca_wkv"] = nrm(next(ks), (D, 2 * D)).astype(bf16)
    p["ca_bkv"] = nrm(next(ks), (1, 2 * D), s=0.01)
    p["ca_wo"] = nrm(next(ks), (D, D)).astype(bf16)
    p["ca_bo"] = nrm(next(ks), (1, D), s=0.01)
    # layer norms (PyTorch init: gamma=1, beta=0)
    for nm in ("ln1", "ln2", "ln3"):
        p[nm + "_g"] = jnp.ones((1, D), jnp.float32)
        p[nm + "_b"] = jnp.zeros((1, D), jnp.float32)
    # feed-forward
    p["ff_w1"] = nrm(next(ks), (D, dim_ff)).astype(bf16)
    p["ff_b1"] = nrm(next(ks), (1, dim_ff), s=0.01)
    p["ff_w2"] = nrm(next(ks), (dim_ff, D)).astype(bf16)
    p["ff_b2"] = nrm(next(ks), (1, D), s=0.01)
    # final projection, zero-padded to lane-dense width
    fw = jnp.zeros((D, n_out_pad), jnp.float32)
    fw = fw.at[:, :n_out].set(nrm(next(ks), (D, n_out)))
    fb = jnp.zeros((1, n_out_pad), jnp.float32)
    fb = fb.at[:, :n_out].set(nrm(next(ks), (1, n_out), s=0.01))
    p["final_w"] = fw.astype(bf16)
    p["final_b"] = fb
    return p


def peptide_decoder_forward(params, tokens, precursors, memory,
                            memory_key_padding_mask, *,
                            dim_model, n_head, padding_idx=0,
                            max_rows_per_tile=256):
    del dim_model  # implied by the parameter shapes
    B = memory.shape[0]
    n_out = params["aa_emb"].shape[0]            # vocab + 1 + 1

    # mass_encoder(precursors[:, None, 0]) : FloatEncoder sinusoids -> (B, 1, D)
    mass = precursors[:, None, 0]
    masses = jnp.concatenate(
        [jnp.sin(mass[:, :, None] / params["mass_sin"]),
         jnp.cos(mass[:, :, None] / params["mass_cos"])], axis=-1)
    # charge_encoder(charge - 1) : (B, D)
    charges = params["charge_emb"][precursors[:, 1].astype(jnp.int32) - 1]
    prec = masses + charges[:, None, :]                              # (B, 1, D)

    if tokens is None or tokens.shape[1] == 0:
        tgt = prec
        tgt_pad = jnp.zeros((B, 1), dtype=bool)
    else:
        aa = params["aa_emb"][tokens]                                # (B, S, D)
        tgt = jnp.concatenate([prec, aa], axis=1)                    # (B, S+1, D)
        tgt_pad = jnp.concatenate(
            [jnp.zeros((B, 1), dtype=bool), tokens == padding_idx], axis=1)

    L_real = tgt.shape[1]
    # positional encoder (additive sinusoids)
    pos = jnp.arange(L_real, dtype=jnp.float32)[:, None]
    pe = jnp.concatenate(
        [jnp.sin(pos / params["pos_sin"]), jnp.cos(pos / params["pos_cos"])],
        axis=-1)                                                     # (L_real, D)
    tgt = (tgt + pe[None]).astype(jnp.float32)

    # ---- pad L and P to sublane multiples of 8 (dense vreg tiles) ----
    L = _round_up(L_real, 8)
    if L != L_real:
        tgt = jnp.pad(tgt, ((0, 0), (0, L - L_real), (0, 0)))
        tgt_pad = jnp.pad(tgt_pad, ((0, 0), (0, L - L_real)),
                          constant_values=True)
    P_real = memory.shape[1]
    P = _round_up(P_real, 8)
    if P != P_real:
        memory = jnp.pad(memory, ((0, 0), (0, P - P_real), (0, 0)))
        memory_key_padding_mask = jnp.pad(
            memory_key_padding_mask, ((0, 0), (0, P - P_real)),
            constant_values=True)

    # additive key-padding masks (small; causal broadcast handled in-kernel)
    tpad_add = jnp.where(tgt_pad, NEG_INF, 0.0
                         ).astype(jnp.float32)[:, None, :]           # (B, 1, L)
    mpad_add = jnp.where(memory_key_padding_mask, NEG_INF, 0.0
                         ).astype(jnp.float32)[:, None, :]           # (B, 1, P)

    # causal additive mask precomputed once (grid-invariant kernel input)
    idx = jnp.arange(L)
    causal = jnp.where(idx[None, :] > idx[:, None], NEG_INF, 0.0
                       ).astype(jnp.float32)                         # (L, L)

    # ---- batch tiling: aim for ~256 matmul rows per grid step ----
    Bt = max(1, min(B, max_rows_per_tile // L))
    B_pad = _round_up(B, Bt)
    if B_pad != B:
        bp = B_pad - B
        tgt = jnp.pad(tgt, ((0, bp), (0, 0), (0, 0)))
        memory = jnp.pad(memory, ((0, bp), (0, 0), (0, 0)))
        # pad rows use zero (non-padding) masks so softmax stays finite
        tpad_add = jnp.pad(tpad_add, ((0, bp), (0, 0), (0, 0)))
        mpad_add = jnp.pad(mpad_add, ((0, bp), (0, 0), (0, 0)))

    logits_pad = fused_decoder_layer(
        tgt, memory.astype(jnp.bfloat16), tpad_add, mpad_add, causal, params,
        n_head=n_head, batch_tile=Bt)                                # (B_pad,L,Vp)
    return logits_pad[:B, :L_real, :n_out], tokens


# ----------------------------------------------------------------------------
# Driver
# ----------------------------------------------------------------------------
if __name__ == "__main__":
    B, S, P = 2, 7, 12
    DIM, NHEAD, FF = 128, 8, 256          # module default dim_model=128, n_head=8
    VOCAB, MAXQ, PAD = 6, 5, 0

    key = jax.random.PRNGKey(0)
    kp, k1, k2, k3 = jax.random.split(key, 4)

    params = init_params(kp, DIM, NHEAD, FF, VOCAB, MAXQ, padding_idx=PAD)

    tokens = jax.random.randint(k1, (B, S), 1, VOCAB + 1).astype(jnp.int32)
    tokens = tokens.at[:, -2:].set(PAD)                 # some padded positions
    mass = jax.random.uniform(k2, (B,), minval=300.0, maxval=1500.0)
    charge = jnp.array([2.0, 3.0], dtype=jnp.float32)
    mz = mass / charge
    precursors = jnp.stack([mass, charge, mz], axis=1).astype(jnp.float32)
    memory = jax.random.normal(k3, (B, P, DIM), dtype=jnp.float32)
    mem_pad = jnp.zeros((B, P), dtype=bool).at[1, -3:].set(True)

    fwd = jax.jit(functools.partial(
        peptide_decoder_forward, dim_model=DIM, n_head=NHEAD, padding_idx=PAD))

    logits, toks = fwd(params, tokens, precursors, memory, mem_pad)
    jax.block_until_ready(logits)

    assert logits.shape == (B, S + 1, VOCAB + 2), logits.shape
    assert bool(jnp.all(jnp.isfinite(logits)))
    print("KERNEL_OK")
</pallas_src>

<mosaic_0001>
module attributes {stable_mosaic.version = 11 : i64} {
  func.func @kern(%arg0: i32, %arg1: memref<2x8x128xf32, #tpu.memory_space<vmem>>, %arg2: memref<2x16x128xbf16, #tpu.memory_space<vmem>>, %arg3: memref<2x1x8xf32, #tpu.memory_space<vmem>>, %arg4: memref<2x1x16xf32, #tpu.memory_space<vmem>>, %arg5: memref<8x8xf32, #tpu.memory_space<vmem>>, %arg6: memref<128x384xbf16, #tpu.memory_space<vmem>>, %arg7: memref<1x384xf32, #tpu.memory_space<vmem>>, %arg8: memref<128x128xbf16, #tpu.memory_space<vmem>>, %arg9: memref<1x128xf32, #tpu.memory_space<vmem>>, %arg10: memref<128x128xbf16, #tpu.memory_space<vmem>>, %arg11: memref<1x128xf32, #tpu.memory_space<vmem>>, %arg12: memref<128x256xbf16, #tpu.memory_space<vmem>>, %arg13: memref<1x256xf32, #tpu.memory_space<vmem>>, %arg14: memref<128x128xbf16, #tpu.memory_space<vmem>>, %arg15: memref<1x128xf32, #tpu.memory_space<vmem>>, %arg16: memref<1x128xf32, #tpu.memory_space<vmem>>, %arg17: memref<1x128xf32, #tpu.memory_space<vmem>>, %arg18: memref<1x128xf32, #tpu.memory_space<vmem>>, %arg19: memref<1x128xf32, #tpu.memory_space<vmem>>, %arg20: memref<1x128xf32, #tpu.memory_space<vmem>>, %arg21: memref<1x128xf32, #tpu.memory_space<vmem>>, %arg22: memref<128x256xbf16, #tpu.memory_space<vmem>>, %arg23: memref<1x256xf32, #tpu.memory_space<vmem>>, %arg24: memref<256x128xbf16, #tpu.memory_space<vmem>>, %arg25: memref<1x128xf32, #tpu.memory_space<vmem>>, %arg26: memref<128x128xbf16, #tpu.memory_space<vmem>>, %arg27: memref<1x128xf32, #tpu.memory_space<vmem>>, %arg28: memref<2x8x128xf32, #tpu.memory_space<vmem>>) attributes {dimension_semantics = [#tpu.dimension_semantics<parallel>], iteration_bounds = array<i64: 1>, scalar_prefetch = 0 : i64, scratch_operands = 0 : i64, tpu.core_type = #tpu.core_type<tc>, window_params = [{transform_indices = @transform_0, window_bounds = array<i64: 2, 8, 128>}, {transform_indices = @transform_1, window_bounds = array<i64: 2, 16, 128>}, {transform_indices = @transform_2, window_bounds = array<i64: 2, 1, 8>}, {transform_indices = @transform_3, window_bounds = array<i64: 2, 1, 16>}, {pipeline_mode = #tpu.pipeline_mode<synchronous>, transform_indices = @transform_4, window_bounds = array<i64: 8, 8>}, {pipeline_mode = #tpu.pipeline_mode<synchronous>, transform_indices = @transform_5, window_bounds = array<i64: 128, 384>}, {pipeline_mode = #tpu.pipeline_mode<synchronous>, transform_indices = @transform_6, window_bounds = array<i64: 1, 384>}, {pipeline_mode = #tpu.pipeline_mode<synchronous>, transform_indices = @transform_7, window_bounds = array<i64: 128, 128>}, {pipeline_mode = #tpu.pipeline_mode<synchronous>, transform_indices = @transform_8, window_bounds = array<i64: 1, 128>}, {pipeline_mode = #tpu.pipeline_mode<synchronous>, transform_indices = @transform_9, window_bounds = array<i64: 128, 128>}, {pipeline_mode = #tpu.pipeline_mode<synchronous>, transform_indices = @transform_10, window_bounds = array<i64: 1, 128>}, {pipeline_mode = #tpu.pipeline_mode<synchronous>, transform_indices = @transform_11, window_bounds = array<i64: 128, 256>}, {pipeline_mode = #tpu.pipeline_mode<synchronous>, transform_indices = @transform_12, window_bounds = array<i64: 1, 256>}, {pipeline_mode = #tpu.pipeline_mode<synchronous>, transform_indices = @transform_13, window_bounds = array<i64: 128, 128>}, {pipeline_mode = #tpu.pipeline_mode<synchronous>, transform_indices = @transform_14, window_bounds = array<i64: 1, 128>}, {pipeline_mode = #tpu.pipeline_mode<synchronous>, transform_indices = @transform_15, window_bounds = array<i64: 1, 128>}, {pipeline_mode = #tpu.pipeline_mode<synchronous>, transform_indices = @transform_16, window_bounds = array<i64: 1, 128>}, {pipeline_mode = #tpu.pipeline_mode<synchronous>, transform_indices = @transform_17, window_bounds = array<i64: 1, 128>}, {pipeline_mode = #tpu.pipeline_mode<synchronous>, transform_indices = @transform_18, window_bounds = array<i64: 1, 128>}, {pipeline_mode = #tpu.pipeline_mode<synchronous>, transform_indices = @transform_19, window_bounds = array<i64: 1, 128>}, {pipeline_mode = #tpu.pipeline_mode<synchronous>, transform_indices = @transform_20, window_bounds = array<i64: 1, 128>}, {pipeline_mode = #tpu.pipeline_mode<synchronous>, transform_indices = @transform_21, window_bounds = array<i64: 128, 256>}, {pipeline_mode = #tpu.pipeline_mode<synchronous>, transform_indices = @transform_22, window_bounds = array<i64: 1, 256>}, {pipeline_mode = #tpu.pipeline_mode<synchronous>, transform_indices = @transform_23, window_bounds = array<i64: 256, 128>}, {pipeline_mode = #tpu.pipeline_mode<synchronous>, transform_indices = @transform_24, window_bounds = array<i64: 1, 128>}, {pipeline_mode = #tpu.pipeline_mode<synchronous>, transform_indices = @transform_25, window_bounds = array<i64: 128, 128>}, {pipeline_mode = #tpu.pipeline_mode<synchronous>, transform_indices = @transform_26, window_bounds = array<i64: 1, 128>}, {transform_indices = @transform_27, window_bounds = array<i64: 2, 8, 128>}]} {
    %c0 = arith.constant 0 : index
    %c0_0 = arith.constant 0 : index
    %c0_1 = arith.constant 0 : index
    %0 = vector.load %arg1[%c0, %c0_0, %c0_1] : memref<2x8x128xf32, #tpu.memory_space<vmem>>, vector<2x8x128xf32>
    %1 = vector.shape_cast %0 : vector<2x8x128xf32> to vector<16x128xf32>
    %c0_2 = arith.constant 0 : index
    %c0_3 = arith.constant 0 : index
    %c0_4 = arith.constant 0 : index
    %2 = vector.load %arg2[%c0_2, %c0_3, %c0_4] : memref<2x16x128xbf16, #tpu.memory_space<vmem>>, vector<2x16x128xbf16>
    %3 = vector.shape_cast %2 : vector<2x16x128xbf16> to vector<32x128xbf16>
    %c0_5 = arith.constant 0 : index
    %c0_6 = arith.constant 0 : index
    %c0_7 = arith.constant 0 : index
    %4 = vector.load %arg3[%c0_5, %c0_6, %c0_7] : memref<2x1x8xf32, #tpu.memory_space<vmem>>, vector<2x1x8xf32>
    %c0_8 = arith.constant 0 : index
    %c0_9 = arith.constant 0 : index
    %c0_10 = arith.constant 0 : index
    %5 = vector.load %arg4[%c0_8, %c0_9, %c0_10] : memref<2x1x16xf32, #tpu.memory_space<vmem>>, vector<2x1x16xf32>
    %c0_11 = arith.constant 0 : index
    %c0_12 = arith.constant 0 : index
    %6 = vector.load %arg5[%c0_11, %c0_12] : memref<8x8xf32, #tpu.memory_space<vmem>>, vector<8x8xf32>
    %7 = arith.truncf %1 : vector<16x128xf32> to vector<16x128xbf16>
    %c0_13 = arith.constant 0 : index
    %c0_14 = arith.constant 0 : index
    %8 = vector.load %arg6[%c0_13, %c0_14] : memref<128x384xbf16, #tpu.memory_space<vmem>>, vector<128x384xbf16>
    %cst = arith.constant dense<0.000000e+00> : vector<16x384xf32>
    %9 = tpu.matmul %7, %8, %cst {dimension_numbers = #tpu.dot_dimension_numbers<[1], [0], [0], [1], [0, 0, 1, 1], [], []>} : vector<16x128xbf16>, vector<128x384xbf16>, vector<16x384xf32> -> vector<16x384xf32>
    %c0_15 = arith.constant 0 : index
    %c0_16 = arith.constant 0 : index
    %10 = vector.load %arg7[%c0_15, %c0_16] : memref<1x384xf32, #tpu.memory_space<vmem>>, vector<1x384xf32>
    %11 = vector.broadcast %10 : vector<1x384xf32> to vector<16x384xf32>
    %12 = arith.addf %9, %11 : vector<16x384xf32>
    %13 = vector.extract_strided_slice %12 {offsets = [0, 0], sizes = [16, 128], strides = [1, 1]} : vector<16x384xf32> to vector<16x128xf32>
    %cst_17 = arith.constant 2.500000e-01 : f32
    %14 = vector.broadcast %cst_17 : f32 to vector<16x128xf32>
    %15 = arith.mulf %13, %14 : vector<16x128xf32>
    %16 = arith.truncf %15 : vector<16x128xf32> to vector<16x128xbf16>
    %17 = vector.extract_strided_slice %12 {offsets = [0, 128], sizes = [16, 128], strides = [1, 1]} : vector<16x384xf32> to vector<16x128xf32>
    %18 = arith.truncf %17 : vector<16x128xf32> to vector<16x128xbf16>
    %19 = vector.extract_strided_slice %12 {offsets = [0, 256], sizes = [16, 128], strides = [1, 1]} : vector<16x384xf32> to vector<16x128xf32>
    %20 = arith.truncf %19 : vector<16x128xf32> to vector<16x128xbf16>
    %21 = vector.extract_strided_slice %16 {offsets = [0, 0], sizes = [8, 128], strides = [1, 1]} : vector<16x128xbf16> to vector<8x128xbf16>
    %22 = vector.extract_strided_slice %18 {offsets = [0, 0], sizes = [8, 128], strides = [1, 1]} : vector<16x128xbf16> to vector<8x128xbf16>
    %23 = vector.extract_strided_slice %20 {offsets = [0, 0], sizes = [8, 128], strides = [1, 1]} : vector<16x128xbf16> to vector<8x128xbf16>
    %24 = vector.extract_strided_slice %4 {offsets = [0, 0, 0], sizes = [1, 1, 8], strides = [1, 1, 1]} : vector<2x1x8xf32> to vector<1x1x8xf32>
    %25 = vector.shape_cast %24 : vector<1x1x8xf32> to vector<1x8xf32>
    %26 = vector.broadcast %25 : vector<1x8xf32> to vector<8x8xf32>
    %27 = arith.addf %6, %26 : vector<8x8xf32>
    %28 = vector.extract_strided_slice %21 {offsets = [0, 0], sizes = [8, 16], strides = [1, 1]} : vector<8x128xbf16> to vector<8x16xbf16>
    %29 = vector.extract_strided_slice %22 {offsets = [0, 0], sizes = [8, 16], strides = [1, 1]} : vector<8x128xbf16> to vector<8x16xbf16>
    %cst_18 = arith.constant dense<0.000000e+00> : vector<8x8xf32>
    %30 = tpu.matmul %28, %29, %cst_18 {dimension_numbers = #tpu.dot_dimension_numbers<[1], [1], [0], [0], [0, 0, 1, 0], [], []>} : vector<8x16xbf16>, vector<8x16xbf16>, vector<8x8xf32> -> vector<8x8xf32>
    %31 = arith.addf %30, %27 : vector<8x8xf32>
    %cst_19 = arith.constant dense<0xFF800000> : vector<8xf32>
    %32 = vector.multi_reduction <maximumf>, %31, %cst_19 [1] : vector<8x8xf32> to vector<8xf32>
    %33 = vector.shape_cast %32 : vector<8xf32> to vector<8x1xf32>
    %34 = vector.broadcast %33 : vector<8x1xf32> to vector<8x8xf32>
    %35 = arith.subf %31, %34 : vector<8x8xf32>
    %36 = math.exp %35 : vector<8x8xf32>
    %cst_20 = arith.constant dense<0.000000e+00> : vector<8xf32>
    %37 = vector.multi_reduction <add>, %36, %cst_20 [1] : vector<8x8xf32> to vector<8xf32>
    %38 = vector.shape_cast %37 : vector<8xf32> to vector<8x1xf32>
    %39 = tpu.reciprocal %38 {approx = true} : vector<8x1xf32> -> vector<8x1xf32>
    %40 = vector.broadcast %39 : vector<8x1xf32> to vector<8x8xf32>
    %41 = arith.mulf %36, %40 : vector<8x8xf32>
    %42 = arith.truncf %41 : vector<8x8xf32> to vector<8x8xbf16>
    %43 = vector.extract_strided_slice %23 {offsets = [0, 0], sizes = [8, 16], strides = [1, 1]} : vector<8x128xbf16> to vector<8x16xbf16>
    %cst_21 = arith.constant dense<0.000000e+00> : vector<8x16xf32>
    %44 = tpu.matmul %42, %43, %cst_21 {dimension_numbers = #tpu.dot_dimension_numbers<[1], [0], [0], [1], [0, 0, 1, 1], [], []>} : vector<8x8xbf16>, vector<8x16xbf16>, vector<8x16xf32> -> vector<8x16xf32>
    %45 = vector.extract_strided_slice %21 {offsets = [0, 16], sizes = [8, 16], strides = [1, 1]} : vector<8x128xbf16> to vector<8x16xbf16>
    %46 = vector.extract_strided_slice %22 {offsets = [0, 16], sizes = [8, 16], strides = [1, 1]} : vector<8x128xbf16> to vector<8x16xbf16>
    %cst_22 = arith.constant dense<0.000000e+00> : vector<8x8xf32>
    %47 = tpu.matmul %45, %46, %cst_22 {dimension_numbers = #tpu.dot_dimension_numbers<[1], [1], [0], [0], [0, 0, 1, 0], [], []>} : vector<8x16xbf16>, vector<8x16xbf16>, vector<8x8xf32> -> vector<8x8xf32>
    %48 = arith.addf %47, %27 : vector<8x8xf32>
    %cst_23 = arith.constant dense<0xFF800000> : vector<8xf32>
    %49 = vector.multi_reduction <maximumf>, %48, %cst_23 [1] : vector<8x8xf32> to vector<8xf32>
    %50 = vector.shape_cast %49 : vector<8xf32> to vector<8x1xf32>
    %51 = vector.broadcast %50 : vector<8x1xf32> to vector<8x8xf32>
    %52 = arith.subf %48, %51 : vector<8x8xf32>
    %53 = math.exp %52 : vector<8x8xf32>
    %cst_24 = arith.constant dense<0.000000e+00> : vector<8xf32>
    %54 = vector.multi_reduction <add>, %53, %cst_24 [1] : vector<8x8xf32> to vector<8xf32>
    %55 = vector.shape_cast %54 : vector<8xf32> to vector<8x1xf32>
    %56 = tpu.reciprocal %55 {approx = true} : vector<8x1xf32> -> vector<8x1xf32>
    %57 = vector.broadcast %56 : vector<8x1xf32> to vector<8x8xf32>
    %58 = arith.mulf %53, %57 : vector<8x8xf32>
    %59 = arith.truncf %58 : vector<8x8xf32> to vector<8x8xbf16>
    %60 = vector.extract_strided_slice %23 {offsets = [0, 16], sizes = [8, 16], strides = [1, 1]} : vector<8x128xbf16> to vector<8x16xbf16>
    %cst_25 = arith.constant dense<0.000000e+00> : vector<8x16xf32>
    %61 = tpu.matmul %59, %60, %cst_25 {dimension_numbers = #tpu.dot_dimension_numbers<[1], [0], [0], [1], [0, 0, 1, 1], [], []>} : vector<8x8xbf16>, vector<8x16xbf16>, vector<8x16xf32> -> vector<8x16xf32>
    %62 = vector.extract_strided_slice %21 {offsets = [0, 32], sizes = [8, 16], strides = [1, 1]} : vector<8x128xbf16> to vector<8x16xbf16>
    %63 = vector.extract_strided_slice %22 {offsets = [0, 32], sizes = [8, 16], strides = [1, 1]} : vector<8x128xbf16> to vector<8x16xbf16>
    %cst_26 = arith.constant dense<0.000000e+00> : vector<8x8xf32>
    %64 = tpu.matmul %62, %63, %cst_26 {dimension_numbers = #tpu.dot_dimension_numbers<[1], [1], [0], [0], [0, 0, 1, 0], [], []>} : vector<8x16xbf16>, vector<8x16xbf16>, vector<8x8xf32> -> vector<8x8xf32>
    %65 = arith.addf %64, %27 : vector<8x8xf32>
    %cst_27 = arith.constant dense<0xFF800000> : vector<8xf32>
    %66 = vector.multi_reduction <maximumf>, %65, %cst_27 [1] : vector<8x8xf32> to vector<8xf32>
    %67 = vector.shape_cast %66 : vector<8xf32> to vector<8x1xf32>
    %68 = vector.broadcast %67 : vector<8x1xf32> to vector<8x8xf32>
    %69 = arith.subf %65, %68 : vector<8x8xf32>
    %70 = math.exp %69 : vector<8x8xf32>
    %cst_28 = arith.constant dense<0.000000e+00> : vector<8xf32>
    %71 = vector.multi_reduction <add>, %70, %cst_28 [1] : vector<8x8xf32> to vector<8xf32>
    %72 = vector.shape_cast %71 : vector<8xf32> to vector<8x1xf32>
    %73 = tpu.reciprocal %72 {approx = true} : vector<8x1xf32> -> vector<8x1xf32>
    %74 = vector.broadcast %73 : vector<8x1xf32> to vector<8x8xf32>
    %75 = arith.mulf %70, %74 : vector<8x8xf32>
    %76 = arith.truncf %75 : vector<8x8xf32> to vector<8x8xbf16>
    %77 = vector.extract_strided_slice %23 {offsets = [0, 32], sizes = [8, 16], strides = [1, 1]} : vector<8x128xbf16> to vector<8x16xbf16>
    %cst_29 = arith.constant dense<0.000000e+00> : vector<8x16xf32>
    %78 = tpu.matmul %76, %77, %cst_29 {dimension_numbers = #tpu.dot_dimension_numbers<[1], [0], [0], [1], [0, 0, 1, 1], [], []>} : vector<8x8xbf16>, vector<8x16xbf16>, vector<8x16xf32> -> vector<8x16xf32>
    %79 = vector.extract_strided_slice %21 {offsets = [0, 48], sizes = [8, 16], strides = [1, 1]} : vector<8x128xbf16> to vector<8x16xbf16>
    %80 = vector.extract_strided_slice %22 {offsets = [0, 48], sizes = [8, 16], strides = [1, 1]} : vector<8x128xbf16> to vector<8x16xbf16>
    %cst_30 = arith.constant dense<0.000000e+00> : vector<8x8xf32>
    %81 = tpu.matmul %79, %80, %cst_30 {dimension_numbers = #tpu.dot_dimension_numbers<[1], [1], [0], [0], [0, 0, 1, 0], [], []>} : vector<8x16xbf16>, vector<8x16xbf16>, vector<8x8xf32> -> vector<8x8xf32>
    %82 = arith.addf %81, %27 : vector<8x8xf32>
    %cst_31 = arith.constant dense<0xFF800000> : vector<8xf32>
    %83 = vector.multi_reduction <maximumf>, %82, %cst_31 [1] : vector<8x8xf32> to vector<8xf32>
    %84 = vector.shape_cast %83 : vector<8xf32> to vector<8x1xf32>
    %85 = vector.broadcast %84 : vector<8x1xf32> to vector<8x8xf32>
    %86 = arith.subf %82, %85 : vector<8x8xf32>
    %87 = math.exp %86 : vector<8x8xf32>
    %cst_32 = arith.constant dense<0.000000e+00> : vector<8xf32>
    %88 = vector.multi_reduction <add>, %87, %cst_32 [1] : vector<8x8xf32> to vector<8xf32>
    %89 = vector.shape_cast %88 : vector<8xf32> to vector<8x1xf32>
    %90 = tpu.reciprocal %89 {approx = true} : vector<8x1xf32> -> vector<8x1xf32>
    %91 = vector.broadcast %90 : vector<8x1xf32> to vector<8x8xf32>
    %92 = arith.mulf %87, %91 : vector<8x8xf32>
    %93 = arith.truncf %92 : vector<8x8xf32> to vector<8x8xbf16>
    %94 = vector.extract_strided_slice %23 {offsets = [0, 48], sizes = [8, 16], strides = [1, 1]} : vector<8x128xbf16> to vector<8x16xbf16>
    %cst_33 = arith.constant dense<0.000000e+00> : vector<8x16xf32>
    %95 = tpu.matmul %93, %94, %cst_33 {dimension_numbers = #tpu.dot_dimension_numbers<[1], [0], [0], [1], [0, 0, 1, 1], [], []>} : vector<8x8xbf16>, vector<8x16xbf16>, vector<8x16xf32> -> vector<8x16xf32>
    %96 = vector.extract_strided_slice %21 {offsets = [0, 64], sizes = [8, 16], strides = [1, 1]} : vector<8x128xbf16> to vector<8x16xbf16>
    %97 = vector.extract_strided_slice %22 {offsets = [0, 64], sizes = [8, 16], strides = [1, 1]} : vector<8x128xbf16> to vector<8x16xbf16>
    %cst_34 = arith.constant dense<0.000000e+00> : vector<8x8xf32>
    %98 = tpu.matmul %96, %97, %cst_34 {dimension_numbers = #tpu.dot_dimension_numbers<[1], [1], [0], [0], [0, 0, 1, 0], [], []>} : vector<8x16xbf16>, vector<8x16xbf16>, vector<8x8xf32> -> vector<8x8xf32>
    %99 = arith.addf %98, %27 : vector<8x8xf32>
    %cst_35 = arith.constant dense<0xFF800000> : vector<8xf32>
    %100 = vector.multi_reduction <maximumf>, %99, %cst_35 [1] : vector<8x8xf32> to vector<8xf32>
    %101 = vector.shape_cast %100 : vector<8xf32> to vector<8x1xf32>
    %102 = vector.broadcast %101 : vector<8x1xf32> to vector<8x8xf32>
    %103 = arith.subf %99, %102 : vector<8x8xf32>
    %104 = math.exp %103 : vector<8x8xf32>
    %cst_36 = arith.constant dense<0.000000e+00> : vector<8xf32>
    %105 = vector.multi_reduction <add>, %104, %cst_36 [1] : vector<8x8xf32> to vector<8xf32>
    %106 = vector.shape_cast %105 : vector<8xf32> to vector<8x1xf32>
    %107 = tpu.reciprocal %106 {approx = true} : vector<8x1xf32> -> vector<8x1xf32>
    %108 = vector.broadcast %107 : vector<8x1xf32> to vector<8x8xf32>
    %109 = arith.mulf %104, %108 : vector<8x8xf32>
    %110 = arith.truncf %109 : vector<8x8xf32> to vector<8x8xbf16>
    %111 = vector.extract_strided_slice %23 {offsets = [0, 64], sizes = [8, 16], strides = [1, 1]} : vector<8x128xbf16> to vector<8x16xbf16>
    %cst_37 = arith.constant dense<0.000000e+00> : vector<8x16xf32>
    %112 = tpu.matmul %110, %111, %cst_37 {dimension_numbers = #tpu.dot_dimension_numbers<[1], [0], [0], [1], [0, 0, 1, 1], [], []>} : vector<8x8xbf16>, vector<8x16xbf16>, vector<8x16xf32> -> vector<8x16xf32>
    %113 = vector.extract_strided_slice %21 {offsets = [0, 80], sizes = [8, 16], strides = [1, 1]} : vector<8x128xbf16> to vector<8x16xbf16>
    %114 = vector.extract_strided_slice %22 {offsets = [0, 80], sizes = [8, 16], strides = [1, 1]} : vector<8x128xbf16> to vector<8x16xbf16>
    %cst_38 = arith.constant dense<0.000000e+00> : vector<8x8xf32>
    %115 = tpu.matmul %113, %114, %cst_38 {dimension_numbers = #tpu.dot_dimension_numbers<[1], [1], [0], [0], [0, 0, 1, 0], [], []>} : vector<8x16xbf16>, vector<8x16xbf16>, vector<8x8xf32> -> vector<8x8xf32>
    %116 = arith.addf %115, %27 : vector<8x8xf32>
    %cst_39 = arith.constant dense<0xFF800000> : vector<8xf32>
    %117 = vector.multi_reduction <maximumf>, %116, %cst_39 [1] : vector<8x8xf32> to vector<8xf32>
    %118 = vector.shape_cast %117 : vector<8xf32> to vector<8x1xf32>
    %119 = vector.broadcast %118 : vector<8x1xf32> to vector<8x8xf32>
    %120 = arith.subf %116, %119 : vector<8x8xf32>
    %121 = math.exp %120 : vector<8x8xf32>
    %cst_40 = arith.constant dense<0.000000e+00> : vector<8xf32>
    %122 = vector.multi_reduction <add>, %121, %cst_40 [1] : vector<8x8xf32> to vector<8xf32>
    %123 = vector.shape_cast %122 : vector<8xf32> to vector<8x1xf32>
    %124 = tpu.reciprocal %123 {approx = true} : vector<8x1xf32> -> vector<8x1xf32>
    %125 = vector.broadcast %124 : vector<8x1xf32> to vector<8x8xf32>
    %126 = arith.mulf %121, %125 : vector<8x8xf32>
    %127 = arith.truncf %126 : vector<8x8xf32> to vector<8x8xbf16>
    %128 = vector.extract_strided_slice %23 {offsets = [0, 80], sizes = [8, 16], strides = [1, 1]} : vector<8x128xbf16> to vector<8x16xbf16>
    %cst_41 = arith.constant dense<0.000000e+00> : vector<8x16xf32>
    %129 = tpu.matmul %127, %128, %cst_41 {dimension_numbers = #tpu.dot_dimension_numbers<[1], [0], [0], [1], [0, 0, 1, 1], [], []>} : vector<8x8xbf16>, vector<8x16xbf16>, vector<8x16xf32> -> vector<8x16xf32>
    %130 = vector.extract_strided_slice %21 {offsets = [0, 96], sizes = [8, 16], strides = [1, 1]} : vector<8x128xbf16> to vector<8x16xbf16>
    %131 = vector.extract_strided_slice %22 {offsets = [0, 96], sizes = [8, 16], strides = [1, 1]} : vector<8x128xbf16> to vector<8x16xbf16>
    %cst_42 = arith.constant dense<0.000000e+00> : vector<8x8xf32>
    %132 = tpu.matmul %130, %131, %cst_42 {dimension_numbers = #tpu.dot_dimension_numbers<[1], [1], [0], [0], [0, 0, 1, 0], [], []>} : vector<8x16xbf16>, vector<8x16xbf16>, vector<8x8xf32> -> vector<8x8xf32>
    %133 = arith.addf %132, %27 : vector<8x8xf32>
    %cst_43 = arith.constant dense<0xFF800000> : vector<8xf32>
    %134 = vector.multi_reduction <maximumf>, %133, %cst_43 [1] : vector<8x8xf32> to vector<8xf32>
    %135 = vector.shape_cast %134 : vector<8xf32> to vector<8x1xf32>
    %136 = vector.broadcast %135 : vector<8x1xf32> to vector<8x8xf32>
    %137 = arith.subf %133, %136 : vector<8x8xf32>
    %138 = math.exp %137 : vector<8x8xf32>
    %cst_44 = arith.constant dense<0.000000e+00> : vector<8xf32>
    %139 = vector.multi_reduction <add>, %138, %cst_44 [1] : vector<8x8xf32> to vector<8xf32>
    %140 = vector.shape_cast %139 : vector<8xf32> to vector<8x1xf32>
    %141 = tpu.reciprocal %140 {approx = true} : vector<8x1xf32> -> vector<8x1xf32>
    %142 = vector.broadcast %141 : vector<8x1xf32> to vector<8x8xf32>
    %143 = arith.mulf %138, %142 : vector<8x8xf32>
    %144 = arith.truncf %143 : vector<8x8xf32> to vector<8x8xbf16>
    %145 = vector.extract_strided_slice %23 {offsets = [0, 96], sizes = [8, 16], strides = [1, 1]} : vector<8x128xbf16> to vector<8x16xbf16>
    %cst_45 = arith.constant dense<0.000000e+00> : vector<8x16xf32>
    %146 = tpu.matmul %144, %145, %cst_45 {dimension_numbers = #tpu.dot_dimension_numbers<[1], [0], [0], [1], [0, 0, 1, 1], [], []>} : vector<8x8xbf16>, vector<8x16xbf16>, vector<8x16xf32> -> vector<8x16xf32>
    %147 = vector.extract_strided_slice %21 {offsets = [0, 112], sizes = [8, 16], strides = [1, 1]} : vector<8x128xbf16> to vector<8x16xbf16>
    %148 = vector.extract_strided_slice %22 {offsets = [0, 112], sizes = [8, 16], strides = [1, 1]} : vector<8x128xbf16> to vector<8x16xbf16>
    %cst_46 = arith.constant dense<0.000000e+00> : vector<8x8xf32>
    %149 = tpu.matmul %147, %148, %cst_46 {dimension_numbers = #tpu.dot_dimension_numbers<[1], [1], [0], [0], [0, 0, 1, 0], [], []>} : vector<8x16xbf16>, vector<8x16xbf16>, vector<8x8xf32> -> vector<8x8xf32>
    %150 = arith.addf %149, %27 : vector<8x8xf32>
    %cst_47 = arith.constant dense<0xFF800000> : vector<8xf32>
    %151 = vector.multi_reduction <maximumf>, %150, %cst_47 [1] : vector<8x8xf32> to vector<8xf32>
    %152 = vector.shape_cast %151 : vector<8xf32> to vector<8x1xf32>
    %153 = vector.broadcast %152 : vector<8x1xf32> to vector<8x8xf32>
    %154 = arith.subf %150, %153 : vector<8x8xf32>
    %155 = math.exp %154 : vector<8x8xf32>
    %cst_48 = arith.constant dense<0.000000e+00> : vector<8xf32>
    %156 = vector.multi_reduction <add>, %155, %cst_48 [1] : vector<8x8xf32> to vector<8xf32>
    %157 = vector.shape_cast %156 : vector<8xf32> to vector<8x1xf32>
    %158 = tpu.reciprocal %157 {approx = true} : vector<8x1xf32> -> vector<8x1xf32>
    %159 = vector.broadcast %158 : vector<8x1xf32> to vector<8x8xf32>
    %160 = arith.mulf %155, %159 : vector<8x8xf32>
    %161 = arith.truncf %160 : vector<8x8xf32> to vector<8x8xbf16>
    %162 = vector.extract_strided_slice %23 {offsets = [0, 112], sizes = [8, 16], strides = [1, 1]} : vector<8x128xbf16> to vector<8x16xbf16>
    %cst_49 = arith.constant dense<0.000000e+00> : vector<8x16xf32>
    %163 = tpu.matmul %161, %162, %cst_49 {dimension_numbers = #tpu.dot_dimension_numbers<[1], [0], [0], [1], [0, 0, 1, 1], [], []>} : vector<8x8xbf16>, vector<8x16xbf16>, vector<8x16xf32> -> vector<8x16xf32>
    %164 = tpu.concatenate %44, %61, %78, %95, %112, %129, %146, %163 in 1 : vector<8x16xf32>, vector<8x16xf32>, vector<8x16xf32>, vector<8x16xf32>, vector<8x16xf32>, vector<8x16xf32>, vector<8x16xf32>, vector<8x16xf32> -> vector<8x128xf32>
    %165 = vector.extract_strided_slice %16 {offsets = [8, 0], sizes = [8, 128], strides = [1, 1]} : vector<16x128xbf16> to vector<8x128xbf16>
    %166 = vector.extract_strided_slice %18 {offsets = [8, 0], sizes = [8, 128], strides = [1, 1]} : vector<16x128xbf16> to vector<8x128xbf16>
    %167 = vector.extract_strided_slice %20 {offsets = [8, 0], sizes = [8, 128], strides = [1, 1]} : vector<16x128xbf16> to vector<8x128xbf16>
    %168 = vector.extract_strided_slice %4 {offsets = [1, 0, 0], sizes = [1, 1, 8], strides = [1, 1, 1]} : vector<2x1x8xf32> to vector<1x1x8xf32>
    %169 = vector.shape_cast %168 : vector<1x1x8xf32> to vector<1x8xf32>
    %170 = vector.broadcast %169 : vector<1x8xf32> to vector<8x8xf32>
    %171 = arith.addf %6, %170 : vector<8x8xf32>
    %172 = vector.extract_strided_slice %165 {offsets = [0, 0], sizes = [8, 16], strides = [1, 1]} : vector<8x128xbf16> to vector<8x16xbf16>
    %173 = vector.extract_strided_slice %166 {offsets = [0, 0], sizes = [8, 16], strides = [1, 1]} : vector<8x128xbf16> to vector<8x16xbf16>
    %cst_50 = arith.constant dense<0.000000e+00> : vector<8x8xf32>
    %174 = tpu.matmul %172, %173, %cst_50 {dimension_numbers = #tpu.dot_dimension_numbers<[1], [1], [0], [0], [0, 0, 1, 0], [], []>} : vector<8x16xbf16>, vector<8x16xbf16>, vector<8x8xf32> -> vector<8x8xf32>
    %175 = arith.addf %174, %171 : vector<8x8xf32>
    %cst_51 = arith.constant dense<0xFF800000> : vector<8xf32>
    %176 = vector.multi_reduction <maximumf>, %175, %cst_51 [1] : vector<8x8xf32> to vector<8xf32>
    %177 = vector.shape_cast %176 : vector<8xf32> to vector<8x1xf32>
    %178 = vector.broadcast %177 : vector<8x1xf32> to vector<8x8xf32>
    %179 = arith.subf %175, %178 : vector<8x8xf32>
    %180 = math.exp %179 : vector<8x8xf32>
    %cst_52 = arith.constant dense<0.000000e+00> : vector<8xf32>
    %181 = vector.multi_reduction <add>, %180, %cst_52 [1] : vector<8x8xf32> to vector<8xf32>
    %182 = vector.shape_cast %181 : vector<8xf32> to vector<8x1xf32>
    %183 = tpu.reciprocal %182 {approx = true} : vector<8x1xf32> -> vector<8x1xf32>
    %184 = vector.broadcast %183 : vector<8x1xf32> to vector<8x8xf32>
    %185 = arith.mulf %180, %184 : vector<8x8xf32>
    %186 = arith.truncf %185 : vector<8x8xf32> to vector<8x8xbf16>
    %187 = vector.extract_strided_slice %167 {offsets = [0, 0], sizes = [8, 16], strides = [1, 1]} : vector<8x128xbf16> to vector<8x16xbf16>
    %cst_53 = arith.constant dense<0.000000e+00> : vector<8x16xf32>
    %188 = tpu.matmul %186, %187, %cst_53 {dimension_numbers = #tpu.dot_dimension_numbers<[1], [0], [0], [1], [0, 0, 1, 1], [], []>} : vector<8x8xbf16>, vector<8x16xbf16>, vector<8x16xf32> -> vector<8x16xf32>
    %189 = vector.extract_strided_slice %165 {offsets = [0, 16], sizes = [8, 16], strides = [1, 1]} : vector<8x128xbf16> to vector<8x16xbf16>
    %190 = vector.extract_strided_slice %166 {offsets = [0, 16], sizes = [8, 16], strides = [1, 1]} : vector<8x128xbf16> to vector<8x16xbf16>
    %cst_54 = arith.constant dense<0.000000e+00> : vector<8x8xf32>
    %191 = tpu.matmul %189, %190, %cst_54 {dimension_numbers = #tpu.dot_dimension_numbers<[1], [1], [0], [0], [0, 0, 1, 0], [], []>} : vector<8x16xbf16>, vector<8x16xbf16>, vector<8x8xf32> -> vector<8x8xf32>
    %192 = arith.addf %191, %171 : vector<8x8xf32>
    %cst_55 = arith.constant dense<0xFF800000> : vector<8xf32>
    %193 = vector.multi_reduction <maximumf>, %192, %cst_55 [1] : vector<8x8xf32> to vector<8xf32>
    %194 = vector.shape_cast %193 : vector<8xf32> to vector<8x1xf32>
    %195 = vector.broadcast %194 : vector<8x1xf32> to vector<8x8xf32>
    %196 = arith.subf %192, %195 : vector<8x8xf32>
    %197 = math.exp %196 : vector<8x8xf32>
    %cst_56 = arith.constant dense<0.000000e+00> : vector<8xf32>
    %198 = vector.multi_reduction <add>, %197, %cst_56 [1] : vector<8x8xf32> to vector<8xf32>
    %199 = vector.shape_cast %198 : vector<8xf32> to vector<8x1xf32>
    %200 = tpu.reciprocal %199 {approx = true} : vector<8x1xf32> -> vector<8x1xf32>
    %201 = vector.broadcast %200 : vector<8x1xf32> to vector<8x8xf32>
    %202 = arith.mulf %197, %201 : vector<8x8xf32>
    %203 = arith.truncf %202 : vector<8x8xf32> to vector<8x8xbf16>
    %204 = vector.extract_strided_slice %167 {offsets = [0, 16], sizes = [8, 16], strides = [1, 1]} : vector<8x128xbf16> to vector<8x16xbf16>
    %cst_57 = arith.constant dense<0.000000e+00> : vector<8x16xf32>
    %205 = tpu.matmul %203, %204, %cst_57 {dimension_numbers = #tpu.dot_dimension_numbers<[1], [0], [0], [1], [0, 0, 1, 1], [], []>} : vector<8x8xbf16>, vector<8x16xbf16>, vector<8x16xf32> -> vector<8x16xf32>
    %206 = vector.extract_strided_slice %165 {offsets = [0, 32], sizes = [8, 16], strides = [1, 1]} : vector<8x128xbf16> to vector<8x16xbf16>
    %207 = vector.extract_strided_slice %166 {offsets = [0, 32], sizes = [8, 16], strides = [1, 1]} : vector<8x128xbf16> to vector<8x16xbf16>
    %cst_58 = arith.constant dense<0.000000e+00> : vector<8x8xf32>
    %208 = tpu.matmul %206, %207, %cst_58 {dimension_numbers = #tpu.dot_dimension_numbers<[1], [1], [0], [0], [0, 0, 1, 0], [], []>} : vector<8x16xbf16>, vector<8x16xbf16>, vector<8x8xf32> -> vector<8x8xf32>
    %209 = arith.addf %208, %171 : vector<8x8xf32>
    %cst_59 = arith.constant dense<0xFF800000> : vector<8xf32>
    %210 = vector.multi_reduction <maximumf>, %209, %cst_59 [1] : vector<8x8xf32> to vector<8xf32>
    %211 = vector.shape_cast %210 : vector<8xf32> to vector<8x1xf32>
    %212 = vector.broadcast %211 : vector<8x1xf32> to vector<8x8xf32>
    %213 = arith.subf %209, %212 : vector<8x8xf32>
    %214 = math.exp %213 : vector<8x8xf32>
    %cst_60 = arith.constant dense<0.000000e+00> : vector<8xf32>
    %215 = vector.multi_reduction <add>, %214, %cst_60 [1] : vector<8x8xf32> to vector<8xf32>
    %216 = vector.shape_cast %215 : vector<8xf32> to vector<8x1xf32>
    %217 = tpu.reciprocal %216 {approx = true} : vector<8x1xf32> -> vector<8x1xf32>
    %218 = vector.broadcast %217 : vector<8x1xf32> to vector<8x8xf32>
    %219 = arith.mulf %214, %218 : vector<8x8xf32>
    %220 = arith.truncf %219 : vector<8x8xf32> to vector<8x8xbf16>
    %221 = vector.extract_strided_slice %167 {offsets = [0, 32], sizes = [8, 16], strides = [1, 1]} : vector<8x128xbf16> to vector<8x16xbf16>
    %cst_61 = arith.constant dense<0.000000e+00> : vector<8x16xf32>
    %222 = tpu.matmul %220, %221, %cst_61 {dimension_numbers = #tpu.dot_dimension_numbers<[1], [0], [0], [1], [0, 0, 1, 1], [], []>} : vector<8x8xbf16>, vector<8x16xbf16>, vector<8x16xf32> -> vector<8x16xf32>
    %223 = vector.extract_strided_slice %165 {offsets = [0, 48], sizes = [8, 16], strides = [1, 1]} : vector<8x128xbf16> to vector<8x16xbf16>
    %224 = vector.extract_strided_slice %166 {offsets = [0, 48], sizes = [8, 16], strides = [1, 1]} : vector<8x128xbf16> to vector<8x16xbf16>
    %cst_62 = arith.constant dense<0.000000e+00> : vector<8x8xf32>
    %225 = tpu.matmul %223, %224, %cst_62 {dimension_numbers = #tpu.dot_dimension_numbers<[1], [1], [0], [0], [0, 0, 1, 0], [], []>} : vector<8x16xbf16>, vector<8x16xbf16>, vector<8x8xf32> -> vector<8x8xf32>
    %226 = arith.addf %225, %171 : vector<8x8xf32>
    %cst_63 = arith.constant dense<0xFF800000> : vector<8xf32>
    %227 = vector.multi_reduction <maximumf>, %226, %cst_63 [1] : vector<8x8xf32> to vector<8xf32>
    %228 = vector.shape_cast %227 : vector<8xf32> to vector<8x1xf32>
    %229 = vector.broadcast %228 : vector<8x1xf32> to vector<8x8xf32>
    %230 = arith.subf %226, %229 : vector<8x8xf32>
    %231 = math.exp %230 : vector<8x8xf32>
    %cst_64 = arith.constant dense<0.000000e+00> : vector<8xf32>
    %232 = vector.multi_reduction <add>, %231, %cst_64 [1] : vector<8x8xf32> to vector<8xf32>
    %233 = vector.shape_cast %232 : vector<8xf32> to vector<8x1xf32>
    %234 = tpu.reciprocal %233 {approx = true} : vector<8x1xf32> -> vector<8x1xf32>
    %235 = vector.broadcast %234 : vector<8x1xf32> to vector<8x8xf32>
    %236 = arith.mulf %231, %235 : vector<8x8xf32>
    %237 = arith.truncf %236 : vector<8x8xf32> to vector<8x8xbf16>
    %238 = vector.extract_strided_slice %167 {offsets = [0, 48], sizes = [8, 16], strides = [1, 1]} : vector<8x128xbf16> to vector<8x16xbf16>
    %cst_65 = arith.constant dense<0.000000e+00> : vector<8x16xf32>
    %239 = tpu.matmul %237, %238, %cst_65 {dimension_numbers = #tpu.dot_dimension_numbers<[1], [0], [0], [1], [0, 0, 1, 1], [], []>} : vector<8x8xbf16>, vector<8x16xbf16>, vector<8x16xf32> -> vector<8x16xf32>
    %240 = vector.extract_strided_slice %165 {offsets = [0, 64], sizes = [8, 16], strides = [1, 1]} : vector<8x128xbf16> to vector<8x16xbf16>
    %241 = vector.extract_strided_slice %166 {offsets = [0, 64], sizes = [8, 16], strides = [1, 1]} : vector<8x128xbf16> to vector<8x16xbf16>
    %cst_66 = arith.constant dense<0.000000e+00> : vector<8x8xf32>
    %242 = tpu.matmul %240, %241, %cst_66 {dimension_numbers = #tpu.dot_dimension_numbers<[1], [1], [0], [0], [0, 0, 1, 0], [], []>} : vector<8x16xbf16>, vector<8x16xbf16>, vector<8x8xf32> -> vector<8x8xf32>
    %243 = arith.addf %242, %171 : vector<8x8xf32>
    %cst_67 = arith.constant dense<0xFF800000> : vector<8xf32>
    %244 = vector.multi_reduction <maximumf>, %243, %cst_67 [1] : vector<8x8xf32> to vector<8xf32>
    %245 = vector.shape_cast %244 : vector<8xf32> to vector<8x1xf32>
    %246 = vector.broadcast %245 : vector<8x1xf32> to vector<8x8xf32>
    %247 = arith.subf %243, %246 : vector<8x8xf32>
    %248 = math.exp %247 : vector<8x8xf32>
    %cst_68 = arith.constant dense<0.000000e+00> : vector<8xf32>
    %249 = vector.multi_reduction <add>, %248, %cst_68 [1] : vector<8x8xf32> to vector<8xf32>
    %250 = vector.shape_cast %249 : vector<8xf32> to vector<8x1xf32>
    %251 = tpu.reciprocal %250 {approx = true} : vector<8x1xf32> -> vector<8x1xf32>
    %252 = vector.broadcast %251 : vector<8x1xf32> to vector<8x8xf32>
    %253 = arith.mulf %248, %252 : vector<8x8xf32>
    %254 = arith.truncf %253 : vector<8x8xf32> to vector<8x8xbf16>
    %255 = vector.extract_strided_slice %167 {offsets = [0, 64], sizes = [8, 16], strides = [1, 1]} : vector<8x128xbf16> to vector<8x16xbf16>
    %cst_69 = arith.constant dense<0.000000e+00> : vector<8x16xf32>
    %256 = tpu.matmul %254, %255, %cst_69 {dimension_numbers = #tpu.dot_dimension_numbers<[1], [0], [0], [1], [0, 0, 1, 1], [], []>} : vector<8x8xbf16>, vector<8x16xbf16>, vector<8x16xf32> -> vector<8x16xf32>
    %257 = vector.extract_strided_slice %165 {offsets = [0, 80], sizes = [8, 16], strides = [1, 1]} : vector<8x128xbf16> to vector<8x16xbf16>
    %258 = vector.extract_strided_slice %166 {offsets = [0, 80], sizes = [8, 16], strides = [1, 1]} : vector<8x128xbf16> to vector<8x16xbf16>
    %cst_70 = arith.constant dense<0.000000e+00> : vector<8x8xf32>
    %259 = tpu.matmul %257, %258, %cst_70 {dimension_numbers = #tpu.dot_dimension_numbers<[1], [1], [0], [0], [0, 0, 1, 0], [], []>} : vector<8x16xbf16>, vector<8x16xbf16>, vector<8x8xf32> -> vector<8x8xf32>
    %260 = arith.addf %259, %171 : vector<8x8xf32>
    %cst_71 = arith.constant dense<0xFF800000> : vector<8xf32>
    %261 = vector.multi_reduction <maximumf>, %260, %cst_71 [1] : vector<8x8xf32> to vector<8xf32>
    %262 = vector.shape_cast %261 : vector<8xf32> to vector<8x1xf32>
    %263 = vector.broadcast %262 : vector<8x1xf32> to vector<8x8xf32>
    %264 = arith.subf %260, %263 : vector<8x8xf32>
    %265 = math.exp %264 : vector<8x8xf32>
    %cst_72 = arith.constant dense<0.000000e+00> : vector<8xf32>
    %266 = vector.multi_reduction <add>, %265, %cst_72 [1] : vector<8x8xf32> to vector<8xf32>
    %267 = vector.shape_cast %266 : vector<8xf32> to vector<8x1xf32>
    %268 = tpu.reciprocal %267 {approx = true} : vector<8x1xf32> -> vector<8x1xf32>
    %269 = vector.broadcast %268 : vector<8x1xf32> to vector<8x8xf32>
    %270 = arith.mulf %265, %269 : vector<8x8xf32>
    %271 = arith.truncf %270 : vector<8x8xf32> to vector<8x8xbf16>
    %272 = vector.extract_strided_slice %167 {offsets = [0, 80], sizes = [8, 16], strides = [1, 1]} : vector<8x128xbf16> to vector<8x16xbf16>
    %cst_73 = arith.constant dense<0.000000e+00> : vector<8x16xf32>
    %273 = tpu.matmul %271, %272, %cst_73 {dimension_numbers = #tpu.dot_dimension_numbers<[1], [0], [0], [1], [0, 0, 1, 1], [], []>} : vector<8x8xbf16>, vector<8x16xbf16>, vector<8x16xf32> -> vector<8x16xf32>
    %274 = vector.extract_strided_slice %165 {offsets = [0, 96], sizes = [8, 16], strides = [1, 1]} : vector<8x128xbf16> to vector<8x16xbf16>
    %275 = vector.extract_strided_slice %166 {offsets = [0, 96], sizes = [8, 16], strides = [1, 1]} : vector<8x128xbf16> to vector<8x16xbf16>
    %cst_74 = arith.constant dense<0.000000e+00> : vector<8x8xf32>
    %276 = tpu.matmul %274, %275, %cst_74 {dimension_numbers = #tpu.dot_dimension_numbers<[1], [1], [0], [0], [0, 0, 1, 0], [], []>} : vector<8x16xbf16>, vector<8x16xbf16>, vector<8x8xf32> -> vector<8x8xf32>
    %277 = arith.addf %276, %171 : vector<8x8xf32>
    %cst_75 = arith.constant dense<0xFF800000> : vector<8xf32>
    %278 = vector.multi_reduction <maximumf>, %277, %cst_75 [1] : vector<8x8xf32> to vector<8xf32>
    %279 = vector.shape_cast %278 : vector<8xf32> to vector<8x1xf32>
    %280 = vector.broadcast %279 : vector<8x1xf32> to vector<8x8xf32>
    %281 = arith.subf %277, %280 : vector<8x8xf32>
    %282 = math.exp %281 : vector<8x8xf32>
    %cst_76 = arith.constant dense<0.000000e+00> : vector<8xf32>
    %283 = vector.multi_reduction <add>, %282, %cst_76 [1] : vector<8x8xf32> to vector<8xf32>
    %284 = vector.shape_cast %283 : vector<8xf32> to vector<8x1xf32>
    %285 = tpu.reciprocal %284 {approx = true} : vector<8x1xf32> -> vector<8x1xf32>
    %286 = vector.broadcast %285 : vector<8x1xf32> to vector<8x8xf32>
    %287 = arith.mulf %282, %286 : vector<8x8xf32>
    %288 = arith.truncf %287 : vector<8x8xf32> to vector<8x8xbf16>
    %289 = vector.extract_strided_slice %167 {offsets = [0, 96], sizes = [8, 16], strides = [1, 1]} : vector<8x128xbf16> to vector<8x16xbf16>
    %cst_77 = arith.constant dense<0.000000e+00> : vector<8x16xf32>
    %290 = tpu.matmul %288, %289, %cst_77 {dimension_numbers = #tpu.dot_dimension_numbers<[1], [0], [0], [1], [0, 0, 1, 1], [], []>} : vector<8x8xbf16>, vector<8x16xbf16>, vector<8x16xf32> -> vector<8x16xf32>
    %291 = vector.extract_strided_slice %165 {offsets = [0, 112], sizes = [8, 16], strides = [1, 1]} : vector<8x128xbf16> to vector<8x16xbf16>
    %292 = vector.extract_strided_slice %166 {offsets = [0, 112], sizes = [8, 16], strides = [1, 1]} : vector<8x128xbf16> to vector<8x16xbf16>
    %cst_78 = arith.constant dense<0.000000e+00> : vector<8x8xf32>
    %293 = tpu.matmul %291, %292, %cst_78 {dimension_numbers = #tpu.dot_dimension_numbers<[1], [1], [0], [0], [0, 0, 1, 0], [], []>} : vector<8x16xbf16>, vector<8x16xbf16>, vector<8x8xf32> -> vector<8x8xf32>
    %294 = arith.addf %293, %171 : vector<8x8xf32>
    %cst_79 = arith.constant dense<0xFF800000> : vector<8xf32>
    %295 = vector.multi_reduction <maximumf>, %294, %cst_79 [1] : vector<8x8xf32> to vector<8xf32>
    %296 = vector.shape_cast %295 : vector<8xf32> to vector<8x1xf32>
    %297 = vector.broadcast %296 : vector<8x1xf32> to vector<8x8xf32>
    %298 = arith.subf %294, %297 : vector<8x8xf32>
    %299 = math.exp %298 : vector<8x8xf32>
    %cst_80 = arith.constant dense<0.000000e+00> : vector<8xf32>
    %300 = vector.multi_reduction <add>, %299, %cst_80 [1] : vector<8x8xf32> to vector<8xf32>
    %301 = vector.shape_cast %300 : vector<8xf32> to vector<8x1xf32>
    %302 = tpu.reciprocal %301 {approx = true} : vector<8x1xf32> -> vector<8x1xf32>
    %303 = vector.broadcast %302 : vector<8x1xf32> to vector<8x8xf32>
    %304 = arith.mulf %299, %303 : vector<8x8xf32>
    %305 = arith.truncf %304 : vector<8x8xf32> to vector<8x8xbf16>
    %306 = vector.extract_strided_slice %167 {offsets = [0, 112], sizes = [8, 16], strides = [1, 1]} : vector<8x128xbf16> to vector<8x16xbf16>
    %cst_81 = arith.constant dense<0.000000e+00> : vector<8x16xf32>
    %307 = tpu.matmul %305, %306, %cst_81 {dimension_numbers = #tpu.dot_dimension_numbers<[1], [0], [0], [1], [0, 0, 1, 1], [], []>} : vector<8x8xbf16>, vector<8x16xbf16>, vector<8x16xf32> -> vector<8x16xf32>
    %308 = tpu.concatenate %188, %205, %222, %239, %256, %273, %290, %307 in 1 : vector<8x16xf32>, vector<8x16xf32>, vector<8x16xf32>, vector<8x16xf32>, vector<8x16xf32>, vector<8x16xf32>, vector<8x16xf32>, vector<8x16xf32> -> vector<8x128xf32>
    %309 = tpu.concatenate %164, %308 in 0 : vector<8x128xf32>, vector<8x128xf32> -> vector<16x128xf32>
    %310 = arith.truncf %309 : vector<16x128xf32> to vector<16x128xbf16>
    %c0_82 = arith.constant 0 : index
    %c0_83 = arith.constant 0 : index
    %311 = vector.load %arg8[%c0_82, %c0_83] : memref<128x128xbf16, #tpu.memory_space<vmem>>, vector<128x128xbf16>
    %cst_84 = arith.constant dense<0.000000e+00> : vector<16x128xf32>
    %312 = tpu.matmul %310, %311, %cst_84 {dimension_numbers = #tpu.dot_dimension_numbers<[1], [0], [0], [1], [0, 0, 1, 1], [], []>} : vector<16x128xbf16>, vector<128x128xbf16>, vector<16x128xf32> -> vector<16x128xf32>
    %c0_85 = arith.constant 0 : index
    %c0_86 = arith.constant 0 : index
    %313 = vector.load %arg9[%c0_85, %c0_86] : memref<1x128xf32, #tpu.memory_space<vmem>>, vector<1x128xf32>
    %314 = vector.broadcast %313 : vector<1x128xf32> to vector<16x128xf32>
    %315 = arith.addf %312, %314 : vector<16x128xf32>
    %316 = arith.addf %1, %315 : vector<16x128xf32>
    %cst_87 = arith.constant dense<0.000000e+00> : vector<16xf32>
    %317 = vector.multi_reduction <add>, %316, %cst_87 [1] : vector<16x128xf32> to vector<16xf32>
    %318 = vector.shape_cast %317 : vector<16xf32> to vector<16x1xf32>
    %cst_88 = arith.constant 1.280000e+02 : f32
    %319 = vector.broadcast %cst_88 : f32 to vector<16x1xf32>
    %320 = arith.divf %318, %319 : vector<16x1xf32>
    %321 = vector.broadcast %320 : vector<16x1xf32> to vector<16x128xf32>
    %322 = arith.subf %316, %321 : vector<16x128xf32>
    %323 = arith.mulf %322, %322 : vector<16x128xf32>
    %cst_89 = arith.constant dense<0.000000e+00> : vector<16xf32>
    %324 = vector.multi_reduction <add>, %323, %cst_89 [1] : vector<16x128xf32> to vector<16xf32>
    %325 = vector.shape_cast %324 : vector<16xf32> to vector<16x1xf32>
    %cst_90 = arith.constant 1.280000e+02 : f32
    %326 = vector.broadcast %cst_90 : f32 to vector<16x1xf32>
    %327 = arith.divf %325, %326 : vector<16x1xf32>
    %328 = vector.broadcast %320 : vector<16x1xf32> to vector<16x128xf32>
    %329 = arith.subf %316, %328 : vector<16x128xf32>
    %cst_91 = arith.constant 9.99999974E-6 : f32
    %330 = vector.broadcast %cst_91 : f32 to vector<16x1xf32>
    %331 = arith.addf %327, %330 : vector<16x1xf32>
    %332 = math.rsqrt %331 : vector<16x1xf32>
    %333 = vector.broadcast %332 : vector<16x1xf32> to vector<16x128xf32>
    %334 = arith.mulf %329, %333 : vector<16x128xf32>
    %c0_92 = arith.constant 0 : index
    %c0_93 = arith.constant 0 : index
    %335 = vector.load %arg16[%c0_92, %c0_93] : memref<1x128xf32, #tpu.memory_space<vmem>>, vector<1x128xf32>
    %336 = vector.broadcast %335 : vector<1x128xf32> to vector<16x128xf32>
    %337 = arith.mulf %334, %336 : vector<16x128xf32>
    %c0_94 = arith.constant 0 : index
    %c0_95 = arith.constant 0 : index
    %338 = vector.load %arg17[%c0_94, %c0_95] : memref<1x128xf32, #tpu.memory_space<vmem>>, vector<1x128xf32>
    %339 = vector.broadcast %338 : vector<1x128xf32> to vector<16x128xf32>
    %340 = arith.addf %337, %339 : vector<16x128xf32>
    %341 = arith.truncf %340 : vector<16x128xf32> to vector<16x128xbf16>
    %c0_96 = arith.constant 0 : index
    %c0_97 = arith.constant 0 : index
    %342 = vector.load %arg10[%c0_96, %c0_97] : memref<128x128xbf16, #tpu.memory_space<vmem>>, vector<128x128xbf16>
    %cst_98 = arith.constant dense<0.000000e+00> : vector<16x128xf32>
    %343 = tpu.matmul %341, %342, %cst_98 {dimension_numbers = #tpu.dot_dimension_numbers<[1], [0], [0], [1], [0, 0, 1, 1], [], []>} : vector<16x128xbf16>, vector<128x128xbf16>, vector<16x128xf32> -> vector<16x128xf32>
    %c0_99 = arith.constant 0 : index
    %c0_100 = arith.constant 0 : index
    %344 = vector.load %arg11[%c0_99, %c0_100] : memref<1x128xf32, #tpu.memory_space<vmem>>, vector<1x128xf32>
    %345 = vector.broadcast %344 : vector<1x128xf32> to vector<16x128xf32>
    %346 = arith.addf %343, %345 : vector<16x128xf32>
    %cst_101 = arith.constant 2.500000e-01 : f32
    %347 = vector.broadcast %cst_101 : f32 to vector<16x128xf32>
    %348 = arith.mulf %346, %347 : vector<16x128xf32>
    %349 = arith.truncf %348 : vector<16x128xf32> to vector<16x128xbf16>
    %c0_102 = arith.constant 0 : index
    %c0_103 = arith.constant 0 : index
    %350 = vector.load %arg12[%c0_102, %c0_103] : memref<128x256xbf16, #tpu.memory_space<vmem>>, vector<128x256xbf16>
    %cst_104 = arith.constant dense<0.000000e+00> : vector<32x256xf32>
    %351 = tpu.matmul %3, %350, %cst_104 {dimension_numbers = #tpu.dot_dimension_numbers<[1], [0], [0], [1], [0, 0, 1, 1], [], []>} : vector<32x128xbf16>, vector<128x256xbf16>, vector<32x256xf32> -> vector<32x256xf32>
    %c0_105 = arith.constant 0 : index
    %c0_106 = arith.constant 0 : index
    %352 = vector.load %arg13[%c0_105, %c0_106] : memref<1x256xf32, #tpu.memory_space<vmem>>, vector<1x256xf32>
    %353 = vector.broadcast %352 : vector<1x256xf32> to vector<32x256xf32>
    %354 = arith.addf %351, %353 : vector<32x256xf32>
    %355 = vector.extract_strided_slice %354 {offsets = [0, 0], sizes = [32, 128], strides = [1, 1]} : vector<32x256xf32> to vector<32x128xf32>
    %356 = arith.truncf %355 : vector<32x128xf32> to vector<32x128xbf16>
    %357 = vector.extract_strided_slice %354 {offsets = [0, 128], sizes = [32, 128], strides = [1, 1]} : vector<32x256xf32> to vector<32x128xf32>
    %358 = arith.truncf %357 : vector<32x128xf32> to vector<32x128xbf16>
    %359 = vector.extract_strided_slice %349 {offsets = [0, 0], sizes = [8, 128], strides = [1, 1]} : vector<16x128xbf16> to vector<8x128xbf16>
    %360 = vector.extract_strided_slice %356 {offsets = [0, 0], sizes = [16, 128], strides = [1, 1]} : vector<32x128xbf16> to vector<16x128xbf16>
    %361 = vector.extract_strided_slice %358 {offsets = [0, 0], sizes = [16, 128], strides = [1, 1]} : vector<32x128xbf16> to vector<16x128xbf16>
    %362 = vector.extract_strided_slice %5 {offsets = [0, 0, 0], sizes = [1, 1, 16], strides = [1, 1, 1]} : vector<2x1x16xf32> to vector<1x1x16xf32>
    %363 = vector.shape_cast %362 : vector<1x1x16xf32> to vector<1x16xf32>
    %364 = vector.extract_strided_slice %359 {offsets = [0, 0], sizes = [8, 16], strides = [1, 1]} : vector<8x128xbf16> to vector<8x16xbf16>
    %365 = vector.extract_strided_slice %360 {offsets = [0, 0], sizes = [16, 16], strides = [1, 1]} : vector<16x128xbf16> to vector<16x16xbf16>
    %cst_107 = arith.constant dense<0.000000e+00> : vector<8x16xf32>
    %366 = tpu.matmul %364, %365, %cst_107 {dimension_numbers = #tpu.dot_dimension_numbers<[1], [1], [0], [0], [0, 0, 1, 0], [], []>} : vector<8x16xbf16>, vector<16x16xbf16>, vector<8x16xf32> -> vector<8x16xf32>
    %367 = vector.broadcast %363 : vector<1x16xf32> to vector<8x16xf32>
    %368 = arith.addf %366, %367 : vector<8x16xf32>
    %cst_108 = arith.constant dense<0xFF800000> : vector<8xf32>
    %369 = vector.multi_reduction <maximumf>, %368, %cst_108 [1] : vector<8x16xf32> to vector<8xf32>
    %370 = vector.shape_cast %369 : vector<8xf32> to vector<8x1xf32>
    %371 = vector.broadcast %370 : vector<8x1xf32> to vector<8x16xf32>
    %372 = arith.subf %368, %371 : vector<8x16xf32>
    %373 = math.exp %372 : vector<8x16xf32>
    %cst_109 = arith.constant dense<0.000000e+00> : vector<8xf32>
    %374 = vector.multi_reduction <add>, %373, %cst_109 [1] : vector<8x16xf32> to vector<8xf32>
    %375 = vector.shape_cast %374 : vector<8xf32> to vector<8x1xf32>
    %376 = tpu.reciprocal %375 {approx = true} : vector<8x1xf32> -> vector<8x1xf32>
    %377 = vector.broadcast %376 : vector<8x1xf32> to vector<8x16xf32>
    %378 = arith.mulf %373, %377 : vector<8x16xf32>
    %379 = arith.truncf %378 : vector<8x16xf32> to vector<8x16xbf16>
    %380 = vector.extract_strided_slice %361 {offsets = [0, 0], sizes = [16, 16], strides = [1, 1]} : vector<16x128xbf16> to vector<16x16xbf16>
    %cst_110 = arith.constant dense<0.000000e+00> : vector<8x16xf32>
    %381 = tpu.matmul %379, %380, %cst_110 {dimension_numbers = #tpu.dot_dimension_numbers<[1], [0], [0], [1], [0, 0, 1, 1], [], []>} : vector<8x16xbf16>, vector<16x16xbf16>, vector<8x16xf32> -> vector<8x16xf32>
    %382 = vector.extract_strided_slice %359 {offsets = [0, 16], sizes = [8, 16], strides = [1, 1]} : vector<8x128xbf16> to vector<8x16xbf16>
    %383 = vector.extract_strided_slice %360 {offsets = [0, 16], sizes = [16, 16], strides = [1, 1]} : vector<16x128xbf16> to vector<16x16xbf16>
    %cst_111 = arith.constant dense<0.000000e+00> : vector<8x16xf32>
    %384 = tpu.matmul %382, %383, %cst_111 {dimension_numbers = #tpu.dot_dimension_numbers<[1], [1], [0], [0], [0, 0, 1, 0], [], []>} : vector<8x16xbf16>, vector<16x16xbf16>, vector<8x16xf32> -> vector<8x16xf32>
    %385 = vector.broadcast %363 : vector<1x16xf32> to vector<8x16xf32>
    %386 = arith.addf %384, %385 : vector<8x16xf32>
    %cst_112 = arith.constant dense<0xFF800000> : vector<8xf32>
    %387 = vector.multi_reduction <maximumf>, %386, %cst_112 [1] : vector<8x16xf32> to vector<8xf32>
    %388 = vector.shape_cast %387 : vector<8xf32> to vector<8x1xf32>
    %389 = vector.broadcast %388 : vector<8x1xf32> to vector<8x16xf32>
    %390 = arith.subf %386, %389 : vector<8x16xf32>
    %391 = math.exp %390 : vector<8x16xf32>
    %cst_113 = arith.constant dense<0.000000e+00> : vector<8xf32>
    %392 = vector.multi_reduction <add>, %391, %cst_113 [1] : vector<8x16xf32> to vector<8xf32>
    %393 = vector.shape_cast %392 : vector<8xf32> to vector<8x1xf32>
    %394 = tpu.reciprocal %393 {approx = true} : vector<8x1xf32> -> vector<8x1xf32>
    %395 = vector.broadcast %394 : vector<8x1xf32> to vector<8x16xf32>
    %396 = arith.mulf %391, %395 : vector<8x16xf32>
    %397 = arith.truncf %396 : vector<8x16xf32> to vector<8x16xbf16>
    %398 = vector.extract_strided_slice %361 {offsets = [0, 16], sizes = [16, 16], strides = [1, 1]} : vector<16x128xbf16> to vector<16x16xbf16>
    %cst_114 = arith.constant dense<0.000000e+00> : vector<8x16xf32>
    %399 = tpu.matmul %397, %398, %cst_114 {dimension_numbers = #tpu.dot_dimension_numbers<[1], [0], [0], [1], [0, 0, 1, 1], [], []>} : vector<8x16xbf16>, vector<16x16xbf16>, vector<8x16xf32> -> vector<8x16xf32>
    %400 = vector.extract_strided_slice %359 {offsets = [0, 32], sizes = [8, 16], strides = [1, 1]} : vector<8x128xbf16> to vector<8x16xbf16>
    %401 = vector.extract_strided_slice %360 {offsets = [0, 32], sizes = [16, 16], strides = [1, 1]} : vector<16x128xbf16> to vector<16x16xbf16>
    %cst_115 = arith.constant dense<0.000000e+00> : vector<8x16xf32>
    %402 = tpu.matmul %400, %401, %cst_115 {dimension_numbers = #tpu.dot_dimension_numbers<[1], [1], [0], [0], [0, 0, 1, 0], [], []>} : vector<8x16xbf16>, vector<16x16xbf16>, vector<8x16xf32> -> vector<8x16xf32>
    %403 = vector.broadcast %363 : vector<1x16xf32> to vector<8x16xf32>
    %404 = arith.addf %402, %403 : vector<8x16xf32>
    %cst_116 = arith.constant dense<0xFF800000> : vector<8xf32>
    %405 = vector.multi_reduction <maximumf>, %404, %cst_116 [1] : vector<8x16xf32> to vector<8xf32>
    %406 = vector.shape_cast %405 : vector<8xf32> to vector<8x1xf32>
    %407 = vector.broadcast %406 : vector<8x1xf32> to vector<8x16xf32>
    %408 = arith.subf %404, %407 : vector<8x16xf32>
    %409 = math.exp %408 : vector<8x16xf32>
    %cst_117 = arith.constant dense<0.000000e+00> : vector<8xf32>
    %410 = vector.multi_reduction <add>, %409, %cst_117 [1] : vector<8x16xf32> to vector<8xf32>
    %411 = vector.shape_cast %410 : vector<8xf32> to vector<8x1xf32>
    %412 = tpu.reciprocal %411 {approx = true} : vector<8x1xf32> -> vector<8x1xf32>
    %413 = vector.broadcast %412 : vector<8x1xf32> to vector<8x16xf32>
    %414 = arith.mulf %409, %413 : vector<8x16xf32>
    %415 = arith.truncf %414 : vector<8x16xf32> to vector<8x16xbf16>
    %416 = vector.extract_strided_slice %361 {offsets = [0, 32], sizes = [16, 16], strides = [1, 1]} : vector<16x128xbf16> to vector<16x16xbf16>
    %cst_118 = arith.constant dense<0.000000e+00> : vector<8x16xf32>
    %417 = tpu.matmul %415, %416, %cst_118 {dimension_numbers = #tpu.dot_dimension_numbers<[1], [0], [0], [1], [0, 0, 1, 1], [], []>} : vector<8x16xbf16>, vector<16x16xbf16>, vector<8x16xf32> -> vector<8x16xf32>
    %418 = vector.extract_strided_slice %359 {offsets = [0, 48], sizes = [8, 16], strides = [1, 1]} : vector<8x128xbf16> to vector<8x16xbf16>
    %419 = vector.extract_strided_slice %360 {offsets = [0, 48], sizes = [16, 16], strides = [1, 1]} : vector<16x128xbf16> to vector<16x16xbf16>
    %cst_119 = arith.constant dense<0.000000e+00> : vector<8x16xf32>
    %420 = tpu.matmul %418, %419, %cst_119 {dimension_numbers = #tpu.dot_dimension_numbers<[1], [1], [0], [0], [0, 0, 1, 0], [], []>} : vector<8x16xbf16>, vector<16x16xbf16>, vector<8x16xf32> -> vector<8x16xf32>
    %421 = vector.broadcast %363 : vector<1x16xf32> to vector<8x16xf32>
    %422 = arith.addf %420, %421 : vector<8x16xf32>
    %cst_120 = arith.constant dense<0xFF800000> : vector<8xf32>
    %423 = vector.multi_reduction <maximumf>, %422, %cst_120 [1] : vector<8x16xf32> to vector<8xf32>
    %424 = vector.shape_cast %423 : vector<8xf32> to vector<8x1xf32>
    %425 = vector.broadcast %424 : vector<8x1xf32> to vector<8x16xf32>
    %426 = arith.subf %422, %425 : vector<8x16xf32>
    %427 = math.exp %426 : vector<8x16xf32>
    %cst_121 = arith.constant dense<0.000000e+00> : vector<8xf32>
    %428 = vector.multi_reduction <add>, %427, %cst_121 [1] : vector<8x16xf32> to vector<8xf32>
    %429 = vector.shape_cast %428 : vector<8xf32> to vector<8x1xf32>
    %430 = tpu.reciprocal %429 {approx = true} : vector<8x1xf32> -> vector<8x1xf32>
    %431 = vector.broadcast %430 : vector<8x1xf32> to vector<8x16xf32>
    %432 = arith.mulf %427, %431 : vector<8x16xf32>
    %433 = arith.truncf %432 : vector<8x16xf32> to vector<8x16xbf16>
    %434 = vector.extract_strided_slice %361 {offsets = [0, 48], sizes = [16, 16], strides = [1, 1]} : vector<16x128xbf16> to vector<16x16xbf16>
    %cst_122 = arith.constant dense<0.000000e+00> : vector<8x16xf32>
    %435 = tpu.matmul %433, %434, %cst_122 {dimension_numbers = #tpu.dot_dimension_numbers<[1], [0], [0], [1], [0, 0, 1, 1], [], []>} : vector<8x16xbf16>, vector<16x16xbf16>, vector<8x16xf32> -> vector<8x16xf32>
    %436 = vector.extract_strided_slice %359 {offsets = [0, 64], sizes = [8, 16], strides = [1, 1]} : vector<8x128xbf16> to vector<8x16xbf16>
    %437 = vector.extract_strided_slice %360 {offsets = [0, 64], sizes = [16, 16], strides = [1, 1]} : vector<16x128xbf16> to vector<16x16xbf16>
    %cst_123 = arith.constant dense<0.000000e+00> : vector<8x16xf32>
    %438 = tpu.matmul %436, %437, %cst_123 {dimension_numbers = #tpu.dot_dimension_numbers<[1], [1], [0], [0], [0, 0, 1, 0], [], []>} : vector<8x16xbf16>, vector<16x16xbf16>, vector<8x16xf32> -> vector<8x16xf32>
    %439 = vector.broadcast %363 : vector<1x16xf32> to vector<8x16xf32>
    %440 = arith.addf %438, %439 : vector<8x16xf32>
    %cst_124 = arith.constant dense<0xFF800000> : vector<8xf32>
    %441 = vector.multi_reduction <maximumf>, %440, %cst_124 [1] : vector<8x16xf32> to vector<8xf32>
    %442 = vector.shape_cast %441 : vector<8xf32> to vector<8x1xf32>
    %443 = vector.broadcast %442 : vector<8x1xf32> to vector<8x16xf32>
    %444 = arith.subf %440, %443 : vector<8x16xf32>
    %445 = math.exp %444 : vector<8x16xf32>
    %cst_125 = arith.constant dense<0.000000e+00> : vector<8xf32>
    %446 = vector.multi_reduction <add>, %445, %cst_125 [1] : vector<8x16xf32> to vector<8xf32>
    %447 = vector.shape_cast %446 : vector<8xf32> to vector<8x1xf32>
    %448 = tpu.reciprocal %447 {approx = true} : vector<8x1xf32> -> vector<8x1xf32>
    %449 = vector.broadcast %448 : vector<8x1xf32> to vector<8x16xf32>
    %450 = arith.mulf %445, %449 : vector<8x16xf32>
    %451 = arith.truncf %450 : vector<8x16xf32> to vector<8x16xbf16>
    %452 = vector.extract_strided_slice %361 {offsets = [0, 64], sizes = [16, 16], strides = [1, 1]} : vector<16x128xbf16> to vector<16x16xbf16>
    %cst_126 = arith.constant dense<0.000000e+00> : vector<8x16xf32>
    %453 = tpu.matmul %451, %452, %cst_126 {dimension_numbers = #tpu.dot_dimension_numbers<[1], [0], [0], [1], [0, 0, 1, 1], [], []>} : vector<8x16xbf16>, vector<16x16xbf16>, vector<8x16xf32> -> vector<8x16xf32>
    %454 = vector.extract_strided_slice %359 {offsets = [0, 80], sizes = [8, 16], strides = [1, 1]} : vector<8x128xbf16> to vector<8x16xbf16>
    %455 = vector.extract_strided_slice %360 {offsets = [0, 80], sizes = [16, 16], strides = [1, 1]} : vector<16x128xbf16> to vector<16x16xbf16>
    %cst_127 = arith.constant dense<0.000000e+00> : vector<8x16xf32>
    %456 = tpu.matmul %454, %455, %cst_127 {dimension_numbers = #tpu.dot_dimension_numbers<[1], [1], [0], [0], [0, 0, 1, 0], [], []>} : vector<8x16xbf16>, vector<16x16xbf16>, vector<8x16xf32> -> vector<8x16xf32>
    %457 = vector.broadcast %363 : vector<1x16xf32> to vector<8x16xf32>
    %458 = arith.addf %456, %457 : vector<8x16xf32>
    %cst_128 = arith.constant dense<0xFF800000> : vector<8xf32>
    %459 = vector.multi_reduction <maximumf>, %458, %cst_128 [1] : vector<8x16xf32> to vector<8xf32>
    %460 = vector.shape_cast %459 : vector<8xf32> to vector<8x1xf32>
    %461 = vector.broadcast %460 : vector<8x1xf32> to vector<8x16xf32>
    %462 = arith.subf %458, %461 : vector<8x16xf32>
    %463 = math.exp %462 : vector<8x16xf32>
    %cst_129 = arith.constant dense<0.000000e+00> : vector<8xf32>
    %464 = vector.multi_reduction <add>, %463, %cst_129 [1] : vector<8x16xf32> to vector<8xf32>
    %465 = vector.shape_cast %464 : vector<8xf32> to vector<8x1xf32>
    %466 = tpu.reciprocal %465 {approx = true} : vector<8x1xf32> -> vector<8x1xf32>
    %467 = vector.broadcast %466 : vector<8x1xf32> to vector<8x16xf32>
    %468 = arith.mulf %463, %467 : vector<8x16xf32>
    %469 = arith.truncf %468 : vector<8x16xf32> to vector<8x16xbf16>
    %470 = vector.extract_strided_slice %361 {offsets = [0, 80], sizes = [16, 16], strides = [1, 1]} : vector<16x128xbf16> to vector<16x16xbf16>
    %cst_130 = arith.constant dense<0.000000e+00> : vector<8x16xf32>
    %471 = tpu.matmul %469, %470, %cst_130 {dimension_numbers = #tpu.dot_dimension_numbers<[1], [0], [0], [1], [0, 0, 1, 1], [], []>} : vector<8x16xbf16>, vector<16x16xbf16>, vector<8x16xf32> -> vector<8x16xf32>
    %472 = vector.extract_strided_slice %359 {offsets = [0, 96], sizes = [8, 16], strides = [1, 1]} : vector<8x128xbf16> to vector<8x16xbf16>
    %473 = vector.extract_strided_slice %360 {offsets = [0, 96], sizes = [16, 16], strides = [1, 1]} : vector<16x128xbf16> to vector<16x16xbf16>
    %cst_131 = arith.constant dense<0.000000e+00> : vector<8x16xf32>
    %474 = tpu.matmul %472, %473, %cst_131 {dimension_numbers = #tpu.dot_dimension_numbers<[1], [1], [0], [0], [0, 0, 1, 0], [], []>} : vector<8x16xbf16>, vector<16x16xbf16>, vector<8x16xf32> -> vector<8x16xf32>
    %475 = vector.broadcast %363 : vector<1x16xf32> to vector<8x16xf32>
    %476 = arith.addf %474, %475 : vector<8x16xf32>
    %cst_132 = arith.constant dense<0xFF800000> : vector<8xf32>
    %477 = vector.multi_reduction <maximumf>, %476, %cst_132 [1] : vector<8x16xf32> to vector<8xf32>
    %478 = vector.shape_cast %477 : vector<8xf32> to vector<8x1xf32>
    %479 = vector.broadcast %478 : vector<8x1xf32> to vector<8x16xf32>
    %480 = arith.subf %476, %479 : vector<8x16xf32>
    %481 = math.exp %480 : vector<8x16xf32>
    %cst_133 = arith.constant dense<0.000000e+00> : vector<8xf32>
    %482 = vector.multi_reduction <add>, %481, %cst_133 [1] : vector<8x16xf32> to vector<8xf32>
    %483 = vector.shape_cast %482 : vector<8xf32> to vector<8x1xf32>
    %484 = tpu.reciprocal %483 {approx = true} : vector<8x1xf32> -> vector<8x1xf32>
    %485 = vector.broadcast %484 : vector<8x1xf32> to vector<8x16xf32>
    %486 = arith.mulf %481, %485 : vector<8x16xf32>
    %487 = arith.truncf %486 : vector<8x16xf32> to vector<8x16xbf16>
    %488 = vector.extract_strided_slice %361 {offsets = [0, 96], sizes = [16, 16], strides = [1, 1]} : vector<16x128xbf16> to vector<16x16xbf16>
    %cst_134 = arith.constant dense<0.000000e+00> : vector<8x16xf32>
    %489 = tpu.matmul %487, %488, %cst_134 {dimension_numbers = #tpu.dot_dimension_numbers<[1], [0], [0], [1], [0, 0, 1, 1], [], []>} : vector<8x16xbf16>, vector<16x16xbf16>, vector<8x16xf32> -> vector<8x16xf32>
    %490 = vector.extract_strided_slice %359 {offsets = [0, 112], sizes = [8, 16], strides = [1, 1]} : vector<8x128xbf16> to vector<8x16xbf16>
    %491 = vector.extract_strided_slice %360 {offsets = [0, 112], sizes = [16, 16], strides = [1, 1]} : vector<16x128xbf16> to vector<16x16xbf16>
    %cst_135 = arith.constant dense<0.000000e+00> : vector<8x16xf32>
    %492 = tpu.matmul %490, %491, %cst_135 {dimension_numbers = #tpu.dot_dimension_numbers<[1], [1], [0], [0], [0, 0, 1, 0], [], []>} : vector<8x16xbf16>, vector<16x16xbf16>, vector<8x16xf32> -> vector<8x16xf32>
    %493 = vector.broadcast %363 : vector<1x16xf32> to vector<8x16xf32>
    %494 = arith.addf %492, %493 : vector<8x16xf32>
    %cst_136 = arith.constant dense<0xFF800000> : vector<8xf32>
    %495 = vector.multi_reduction <maximumf>, %494, %cst_136 [1] : vector<8x16xf32> to vector<8xf32>
    %496 = vector.shape_cast %495 : vector<8xf32> to vector<8x1xf32>
    %497 = vector.broadcast %496 : vector<8x1xf32> to vector<8x16xf32>
    %498 = arith.subf %494, %497 : vector<8x16xf32>
    %499 = math.exp %498 : vector<8x16xf32>
    %cst_137 = arith.constant dense<0.000000e+00> : vector<8xf32>
    %500 = vector.multi_reduction <add>, %499, %cst_137 [1] : vector<8x16xf32> to vector<8xf32>
    %501 = vector.shape_cast %500 : vector<8xf32> to vector<8x1xf32>
    %502 = tpu.reciprocal %501 {approx = true} : vector<8x1xf32> -> vector<8x1xf32>
    %503 = vector.broadcast %502 : vector<8x1xf32> to vector<8x16xf32>
    %504 = arith.mulf %499, %503 : vector<8x16xf32>
    %505 = arith.truncf %504 : vector<8x16xf32> to vector<8x16xbf16>
    %506 = vector.extract_strided_slice %361 {offsets = [0, 112], sizes = [16, 16], strides = [1, 1]} : vector<16x128xbf16> to vector<16x16xbf16>
    %cst_138 = arith.constant dense<0.000000e+00> : vector<8x16xf32>
    %507 = tpu.matmul %505, %506, %cst_138 {dimension_numbers = #tpu.dot_dimension_numbers<[1], [0], [0], [1], [0, 0, 1, 1], [], []>} : vector<8x16xbf16>, vector<16x16xbf16>, vector<8x16xf32> -> vector<8x16xf32>
    %508 = tpu.concatenate %381, %399, %417, %435, %453, %471, %489, %507 in 1 : vector<8x16xf32>, vector<8x16xf32>, vector<8x16xf32>, vector<8x16xf32>, vector<8x16xf32>, vector<8x16xf32>, vector<8x16xf32>, vector<8x16xf32> -> vector<8x128xf32>
    %509 = vector.extract_strided_slice %349 {offsets = [8, 0], sizes = [8, 128], strides = [1, 1]} : vector<16x128xbf16> to vector<8x128xbf16>
    %510 = vector.extract_strided_slice %356 {offsets = [16, 0], sizes = [16, 128], strides = [1, 1]} : vector<32x128xbf16> to vector<16x128xbf16>
    %511 = vector.extract_strided_slice %358 {offsets = [16, 0], sizes = [16, 128], strides = [1, 1]} : vector<32x128xbf16> to vector<16x128xbf16>
    %512 = vector.extract_strided_slice %5 {offsets = [1, 0, 0], sizes = [1, 1, 16], strides = [1, 1, 1]} : vector<2x1x16xf32> to vector<1x1x16xf32>
    %513 = vector.shape_cast %512 : vector<1x1x16xf32> to vector<1x16xf32>
    %514 = vector.extract_strided_slice %509 {offsets = [0, 0], sizes = [8, 16], strides = [1, 1]} : vector<8x128xbf16> to vector<8x16xbf16>
    %515 = vector.extract_strided_slice %510 {offsets = [0, 0], sizes = [16, 16], strides = [1, 1]} : vector<16x128xbf16> to vector<16x16xbf16>
    %cst_139 = arith.constant dense<0.000000e+00> : vector<8x16xf32>
    %516 = tpu.matmul %514, %515, %cst_139 {dimension_numbers = #tpu.dot_dimension_numbers<[1], [1], [0], [0], [0, 0, 1, 0], [], []>} : vector<8x16xbf16>, vector<16x16xbf16>, vector<8x16xf32> -> vector<8x16xf32>
    %517 = vector.broadcast %513 : vector<1x16xf32> to vector<8x16xf32>
    %518 = arith.addf %516, %517 : vector<8x16xf32>
    %cst_140 = arith.constant dense<0xFF800000> : vector<8xf32>
    %519 = vector.multi_reduction <maximumf>, %518, %cst_140 [1] : vector<8x16xf32> to vector<8xf32>
    %520 = vector.shape_cast %519 : vector<8xf32> to vector<8x1xf32>
    %521 = vector.broadcast %520 : vector<8x1xf32> to vector<8x16xf32>
    %522 = arith.subf %518, %521 : vector<8x16xf32>
    %523 = math.exp %522 : vector<8x16xf32>
    %cst_141 = arith.constant dense<0.000000e+00> : vector<8xf32>
    %524 = vector.multi_reduction <add>, %523, %cst_141 [1] : vector<8x16xf32> to vector<8xf32>
    %525 = vector.shape_cast %524 : vector<8xf32> to vector<8x1xf32>
    %526 = tpu.reciprocal %525 {approx = true} : vector<8x1xf32> -> vector<8x1xf32>
    %527 = vector.broadcast %526 : vector<8x1xf32> to vector<8x16xf32>
    %528 = arith.mulf %523, %527 : vector<8x16xf32>
    %529 = arith.truncf %528 : vector<8x16xf32> to vector<8x16xbf16>
    %530 = vector.extract_strided_slice %511 {offsets = [0, 0], sizes = [16, 16], strides = [1, 1]} : vector<16x128xbf16> to vector<16x16xbf16>
    %cst_142 = arith.constant dense<0.000000e+00> : vector<8x16xf32>
    %531 = tpu.matmul %529, %530, %cst_142 {dimension_numbers = #tpu.dot_dimension_numbers<[1], [0], [0], [1], [0, 0, 1, 1], [], []>} : vector<8x16xbf16>, vector<16x16xbf16>, vector<8x16xf32> -> vector<8x16xf32>
    %532 = vector.extract_strided_slice %509 {offsets = [0, 16], sizes = [8, 16], strides = [1, 1]} : vector<8x128xbf16> to vector<8x16xbf16>
    %533 = vector.extract_strided_slice %510 {offsets = [0, 16], sizes = [16, 16], strides = [1, 1]} : vector<16x128xbf16> to vector<16x16xbf16>
    %cst_143 = arith.constant dense<0.000000e+00> : vector<8x16xf32>
    %534 = tpu.matmul %532, %533, %cst_143 {dimension_numbers = #tpu.dot_dimension_numbers<[1], [1], [0], [0], [0, 0, 1, 0], [], []>} : vector<8x16xbf16>, vector<16x16xbf16>, vector<8x16xf32> -> vector<8x16xf32>
    %535 = vector.broadcast %513 : vector<1x16xf32> to vector<8x16xf32>
    %536 = arith.addf %534, %535 : vector<8x16xf32>
    %cst_144 = arith.constant dense<0xFF800000> : vector<8xf32>
    %537 = vector.multi_reduction <maximumf>, %536, %cst_144 [1] : vector<8x16xf32> to vector<8xf32>
    %538 = vector.shape_cast %537 : vector<8xf32> to vector<8x1xf32>
    %539 = vector.broadcast %538 : vector<8x1xf32> to vector<8x16xf32>
    %540 = arith.subf %536, %539 : vector<8x16xf32>
    %541 = math.exp %540 : vector<8x16xf32>
    %cst_145 = arith.constant dense<0.000000e+00> : vector<8xf32>
    %542 = vector.multi_reduction <add>, %541, %cst_145 [1] : vector<8x16xf32> to vector<8xf32>
    %543 = vector.shape_cast %542 : vector<8xf32> to vector<8x1xf32>
    %544 = tpu.reciprocal %543 {approx = true} : vector<8x1xf32> -> vector<8x1xf32>
    %545 = vector.broadcast %544 : vector<8x1xf32> to vector<8x16xf32>
    %546 = arith.mulf %541, %545 : vector<8x16xf32>
    %547 = arith.truncf %546 : vector<8x16xf32> to vector<8x16xbf16>
    %548 = vector.extract_strided_slice %511 {offsets = [0, 16], sizes = [16, 16], strides = [1, 1]} : vector<16x128xbf16> to vector<16x16xbf16>
    %cst_146 = arith.constant dense<0.000000e+00> : vector<8x16xf32>
    %549 = tpu.matmul %547, %548, %cst_146 {dimension_numbers = #tpu.dot_dimension_numbers<[1], [0], [0], [1], [0, 0, 1, 1], [], []>} : vector<8x16xbf16>, vector<16x16xbf16>, vector<8x16xf32> -> vector<8x16xf32>
    %550 = vector.extract_strided_slice %509 {offsets = [0, 32], sizes = [8, 16], strides = [1, 1]} : vector<8x128xbf16> to vector<8x16xbf16>
    %551 = vector.extract_strided_slice %510 {offsets = [0, 32], sizes = [16, 16], strides = [1, 1]} : vector<16x128xbf16> to vector<16x16xbf16>
    %cst_147 = arith.constant dense<0.000000e+00> : vector<8x16xf32>
    %552 = tpu.matmul %550, %551, %cst_147 {dimension_numbers = #tpu.dot_dimension_numbers<[1], [1], [0], [0], [0, 0, 1, 0], [], []>} : vector<8x16xbf16>, vector<16x16xbf16>, vector<8x16xf32> -> vector<8x16xf32>
    %553 = vector.broadcast %513 : vector<1x16xf32> to vector<8x16xf32>
    %554 = arith.addf %552, %553 : vector<8x16xf32>
    %cst_148 = arith.constant dense<0xFF800000> : vector<8xf32>
    %555 = vector.multi_reduction <maximumf>, %554, %cst_148 [1] : vector<8x16xf32> to vector<8xf32>
    %556 = vector.shape_cast %555 : vector<8xf32> to vector<8x1xf32>
    %557 = vector.broadcast %556 : vector<8x1xf32> to vector<8x16xf32>
    %558 = arith.subf %554, %557 : vector<8x16xf32>
    %559 = math.exp %558 : vector<8x16xf32>
    %cst_149 = arith.constant dense<0.000000e+00> : vector<8xf32>
    %560 = vector.multi_reduction <add>, %559, %cst_149 [1] : vector<8x16xf32> to vector<8xf32>
    %561 = vector.shape_cast %560 : vector<8xf32> to vector<8x1xf32>
    %562 = tpu.reciprocal %561 {approx = true} : vector<8x1xf32> -> vector<8x1xf32>
    %563 = vector.broadcast %562 : vector<8x1xf32> to vector<8x16xf32>
    %564 = arith.mulf %559, %563 : vector<8x16xf32>
    %565 = arith.truncf %564 : vector<8x16xf32> to vector<8x16xbf16>
    %566 = vector.extract_strided_slice %511 {offsets = [0, 32], sizes = [16, 16], strides = [1, 1]} : vector<16x128xbf16> to vector<16x16xbf16>
    %cst_150 = arith.constant dense<0.000000e+00> : vector<8x16xf32>
    %567 = tpu.matmul %565, %566, %cst_150 {dimension_numbers = #tpu.dot_dimension_numbers<[1], [0], [0], [1], [0, 0, 1, 1], [], []>} : vector<8x16xbf16>, vector<16x16xbf16>, vector<8x16xf32> -> vector<8x16xf32>
    %568 = vector.extract_strided_slice %509 {offsets = [0, 48], sizes = [8, 16], strides = [1, 1]} : vector<8x128xbf16> to vector<8x16xbf16>
    %569 = vector.extract_strided_slice %510 {offsets = [0, 48], sizes = [16, 16], strides = [1, 1]} : vector<16x128xbf16> to vector<16x16xbf16>
    %cst_151 = arith.constant dense<0.000000e+00> : vector<8x16xf32>
    %570 = tpu.matmul %568, %569, %cst_151 {dimension_numbers = #tpu.dot_dimension_numbers<[1], [1], [0], [0], [0, 0, 1, 0], [], []>} : vector<8x16xbf16>, vector<16x16xbf16>, vector<8x16xf32> -> vector<8x16xf32>
    %571 = vector.broadcast %513 : vector<1x16xf32> to vector<8x16xf32>
    %572 = arith.addf %570, %571 : vector<8x16xf32>
    %cst_152 = arith.constant dense<0xFF800000> : vector<8xf32>
    %573 = vector.multi_reduction <maximumf>, %572, %cst_152 [1] : vector<8x16xf32> to vector<8xf32>
    %574 = vector.shape_cast %573 : vector<8xf32> to vector<8x1xf32>
    %575 = vector.broadcast %574 : vector<8x1xf32> to vector<8x16xf32>
    %576 = arith.subf %572, %575 : vector<8x16xf32>
    %577 = math.exp %576 : vector<8x16xf32>
    %cst_153 = arith.constant dense<0.000000e+00> : vector<8xf32>
    %578 = vector.multi_reduction <add>, %577, %cst_153 [1] : vector<8x16xf32> to vector<8xf32>
    %579 = vector.shape_cast %578 : vector<8xf32> to vector<8x1xf32>
    %580 = tpu.reciprocal %579 {approx = true} : vector<8x1xf32> -> vector<8x1xf32>
    %581 = vector.broadcast %580 : vector<8x1xf32> to vector<8x16xf32>
    %582 = arith.mulf %577, %581 : vector<8x16xf32>
    %583 = arith.truncf %582 : vector<8x16xf32> to vector<8x16xbf16>
    %584 = vector.extract_strided_slice %511 {offsets = [0, 48], sizes = [16, 16], strides = [1, 1]} : vector<16x128xbf16> to vector<16x16xbf16>
    %cst_154 = arith.constant dense<0.000000e+00> : vector<8x16xf32>
    %585 = tpu.matmul %583, %584, %cst_154 {dimension_numbers = #tpu.dot_dimension_numbers<[1], [0], [0], [1], [0, 0, 1, 1], [], []>} : vector<8x16xbf16>, vector<16x16xbf16>, vector<8x16xf32> -> vector<8x16xf32>
    %586 = vector.extract_strided_slice %509 {offsets = [0, 64], sizes = [8, 16], strides = [1, 1]} : vector<8x128xbf16> to vector<8x16xbf16>
    %587 = vector.extract_strided_slice %510 {offsets = [0, 64], sizes = [16, 16], strides = [1, 1]} : vector<16x128xbf16> to vector<16x16xbf16>
    %cst_155 = arith.constant dense<0.000000e+00> : vector<8x16xf32>
    %588 = tpu.matmul %586, %587, %cst_155 {dimension_numbers = #tpu.dot_dimension_numbers<[1], [1], [0], [0], [0, 0, 1, 0], [], []>} : vector<8x16xbf16>, vector<16x16xbf16>, vector<8x16xf32> -> vector<8x16xf32>
    %589 = vector.broadcast %513 : vector<1x16xf32> to vector<8x16xf32>
    %590 = arith.addf %588, %589 : vector<8x16xf32>
    %cst_156 = arith.constant dense<0xFF800000> : vector<8xf32>
    %591 = vector.multi_reduction <maximumf>, %590, %cst_156 [1] : vector<8x16xf32> to vector<8xf32>
    %592 = vector.shape_cast %591 : vector<8xf32> to vector<8x1xf32>
    %593 = vector.broadcast %592 : vector<8x1xf32> to vector<8x16xf32>
    %594 = arith.subf %590, %593 : vector<8x16xf32>
    %595 = math.exp %594 : vector<8x16xf32>
    %cst_157 = arith.constant dense<0.000000e+00> : vector<8xf32>
    %596 = vector.multi_reduction <add>, %595, %cst_157 [1] : vector<8x16xf32> to vector<8xf32>
    %597 = vector.shape_cast %596 : vector<8xf32> to vector<8x1xf32>
    %598 = tpu.reciprocal %597 {approx = true} : vector<8x1xf32> -> vector<8x1xf32>
    %599 = vector.broadcast %598 : vector<8x1xf32> to vector<8x16xf32>
    %600 = arith.mulf %595, %599 : vector<8x16xf32>
    %601 = arith.truncf %600 : vector<8x16xf32> to vector<8x16xbf16>
    %602 = vector.extract_strided_slice %511 {offsets = [0, 64], sizes = [16, 16], strides = [1, 1]} : vector<16x128xbf16> to vector<16x16xbf16>
    %cst_158 = arith.constant dense<0.000000e+00> : vector<8x16xf32>
    %603 = tpu.matmul %601, %602, %cst_158 {dimension_numbers = #tpu.dot_dimension_numbers<[1], [0], [0], [1], [0, 0, 1, 1], [], []>} : vector<8x16xbf16>, vector<16x16xbf16>, vector<8x16xf32> -> vector<8x16xf32>
    %604 = vector.extract_strided_slice %509 {offsets = [0, 80], sizes = [8, 16], strides = [1, 1]} : vector<8x128xbf16> to vector<8x16xbf16>
    %605 = vector.extract_strided_slice %510 {offsets = [0, 80], sizes = [16, 16], strides = [1, 1]} : vector<16x128xbf16> to vector<16x16xbf16>
    %cst_159 = arith.constant dense<0.000000e+00> : vector<8x16xf32>
    %606 = tpu.matmul %604, %605, %cst_159 {dimension_numbers = #tpu.dot_dimension_numbers<[1], [1], [0], [0], [0, 0, 1, 0], [], []>} : vector<8x16xbf16>, vector<16x16xbf16>, vector<8x16xf32> -> vector<8x16xf32>
    %607 = vector.broadcast %513 : vector<1x16xf32> to vector<8x16xf32>
    %608 = arith.addf %606, %607 : vector<8x16xf32>
    %cst_160 = arith.constant dense<0xFF800000> : vector<8xf32>
    %609 = vector.multi_reduction <maximumf>, %608, %cst_160 [1] : vector<8x16xf32> to vector<8xf32>
    %610 = vector.shape_cast %609 : vector<8xf32> to vector<8x1xf32>
    %611 = vector.broadcast %610 : vector<8x1xf32> to vector<8x16xf32>
    %612 = arith.subf %608, %611 : vector<8x16xf32>
    %613 = math.exp %612 : vector<8x16xf32>
    %cst_161 = arith.constant dense<0.000000e+00> : vector<8xf32>
    %614 = vector.multi_reduction <add>, %613, %cst_161 [1] : vector<8x16xf32> to vector<8xf32>
    %615 = vector.shape_cast %614 : vector<8xf32> to vector<8x1xf32>
    %616 = tpu.reciprocal %615 {approx = true} : vector<8x1xf32> -> vector<8x1xf32>
    %617 = vector.broadcast %616 : vector<8x1xf32> to vector<8x16xf32>
    %618 = arith.mulf %613, %617 : vector<8x16xf32>
    %619 = arith.truncf %618 : vector<8x16xf32> to vector<8x16xbf16>
    %620 = vector.extract_strided_slice %511 {offsets = [0, 80], sizes = [16, 16], strides = [1, 1]} : vector<16x128xbf16> to vector<16x16xbf16>
    %cst_162 = arith.constant dense<0.000000e+00> : vector<8x16xf32>
    %621 = tpu.matmul %619, %620, %cst_162 {dimension_numbers = #tpu.dot_dimension_numbers<[1], [0], [0], [1], [0, 0, 1, 1], [], []>} : vector<8x16xbf16>, vector<16x16xbf16>, vector<8x16xf32> -> vector<8x16xf32>
    %622 = vector.extract_strided_slice %509 {offsets = [0, 96], sizes = [8, 16], strides = [1, 1]} : vector<8x128xbf16> to vector<8x16xbf16>
    %623 = vector.extract_strided_slice %510 {offsets = [0, 96], sizes = [16, 16], strides = [1, 1]} : vector<16x128xbf16> to vector<16x16xbf16>
    %cst_163 = arith.constant dense<0.000000e+00> : vector<8x16xf32>
    %624 = tpu.matmul %622, %623, %cst_163 {dimension_numbers = #tpu.dot_dimension_numbers<[1], [1], [0], [0], [0, 0, 1, 0], [], []>} : vector<8x16xbf16>, vector<16x16xbf16>, vector<8x16xf32> -> vector<8x16xf32>
    %625 = vector.broadcast %513 : vector<1x16xf32> to vector<8x16xf32>
    %626 = arith.addf %624, %625 : vector<8x16xf32>
    %cst_164 = arith.constant dense<0xFF800000> : vector<8xf32>
    %627 = vector.multi_reduction <maximumf>, %626, %cst_164 [1] : vector<8x16xf32> to vector<8xf32>
    %628 = vector.shape_cast %627 : vector<8xf32> to vector<8x1xf32>
    %629 = vector.broadcast %628 : vector<8x1xf32> to vector<8x16xf32>
    %630 = arith.subf %626, %629 : vector<8x16xf32>
    %631 = math.exp %630 : vector<8x16xf32>
    %cst_165 = arith.constant dense<0.000000e+00> : vector<8xf32>
    %632 = vector.multi_reduction <add>, %631, %cst_165 [1] : vector<8x16xf32> to vector<8xf32>
    %633 = vector.shape_cast %632 : vector<8xf32> to vector<8x1xf32>
    %634 = tpu.reciprocal %633 {approx = true} : vector<8x1xf32> -> vector<8x1xf32>
    %635 = vector.broadcast %634 : vector<8x1xf32> to vector<8x16xf32>
    %636 = arith.mulf %631, %635 : vector<8x16xf32>
    %637 = arith.truncf %636 : vector<8x16xf32> to vector<8x16xbf16>
    %638 = vector.extract_strided_slice %511 {offsets = [0, 96], sizes = [16, 16], strides = [1, 1]} : vector<16x128xbf16> to vector<16x16xbf16>
    %cst_166 = arith.constant dense<0.000000e+00> : vector<8x16xf32>
    %639 = tpu.matmul %637, %638, %cst_166 {dimension_numbers = #tpu.dot_dimension_numbers<[1], [0], [0], [1], [0, 0, 1, 1], [], []>} : vector<8x16xbf16>, vector<16x16xbf16>, vector<8x16xf32> -> vector<8x16xf32>
    %640 = vector.extract_strided_slice %509 {offsets = [0, 112], sizes = [8, 16], strides = [1, 1]} : vector<8x128xbf16> to vector<8x16xbf16>
    %641 = vector.extract_strided_slice %510 {offsets = [0, 112], sizes = [16, 16], strides = [1, 1]} : vector<16x128xbf16> to vector<16x16xbf16>
    %cst_167 = arith.constant dense<0.000000e+00> : vector<8x16xf32>
    %642 = tpu.matmul %640, %641, %cst_167 {dimension_numbers = #tpu.dot_dimension_numbers<[1], [1], [0], [0], [0, 0, 1, 0], [], []>} : vector<8x16xbf16>, vector<16x16xbf16>, vector<8x16xf32> -> vector<8x16xf32>
    %643 = vector.broadcast %513 : vector<1x16xf32> to vector<8x16xf32>
    %644 = arith.addf %642, %643 : vector<8x16xf32>
    %cst_168 = arith.constant dense<0xFF800000> : vector<8xf32>
    %645 = vector.multi_reduction <maximumf>, %644, %cst_168 [1] : vector<8x16xf32> to vector<8xf32>
    %646 = vector.shape_cast %645 : vector<8xf32> to vector<8x1xf32>
    %647 = vector.broadcast %646 : vector<8x1xf32> to vector<8x16xf32>
    %648 = arith.subf %644, %647 : vector<8x16xf32>
    %649 = math.exp %648 : vector<8x16xf32>
    %cst_169 = arith.constant dense<0.000000e+00> : vector<8xf32>
    %650 = vector.multi_reduction <add>, %649, %cst_169 [1] : vector<8x16xf32> to vector<8xf32>
    %651 = vector.shape_cast %650 : vector<8xf32> to vector<8x1xf32>
    %652 = tpu.reciprocal %651 {approx = true} : vector<8x1xf32> -> vector<8x1xf32>
    %653 = vector.broadcast %652 : vector<8x1xf32> to vector<8x16xf32>
    %654 = arith.mulf %649, %653 : vector<8x16xf32>
    %655 = arith.truncf %654 : vector<8x16xf32> to vector<8x16xbf16>
    %656 = vector.extract_strided_slice %511 {offsets = [0, 112], sizes = [16, 16], strides = [1, 1]} : vector<16x128xbf16> to vector<16x16xbf16>
    %cst_170 = arith.constant dense<0.000000e+00> : vector<8x16xf32>
    %657 = tpu.matmul %655, %656, %cst_170 {dimension_numbers = #tpu.dot_dimension_numbers<[1], [0], [0], [1], [0, 0, 1, 1], [], []>} : vector<8x16xbf16>, vector<16x16xbf16>, vector<8x16xf32> -> vector<8x16xf32>
    %658 = tpu.concatenate %531, %549, %567, %585, %603, %621, %639, %657 in 1 : vector<8x16xf32>, vector<8x16xf32>, vector<8x16xf32>, vector<8x16xf32>, vector<8x16xf32>, vector<8x16xf32>, vector<8x16xf32>, vector<8x16xf32> -> vector<8x128xf32>
    %659 = tpu.concatenate %508, %658 in 0 : vector<8x128xf32>, vector<8x128xf32> -> vector<16x128xf32>
    %660 = arith.truncf %659 : vector<16x128xf32> to vector<16x128xbf16>
    %c0_171 = arith.constant 0 : index
    %c0_172 = arith.constant 0 : index
    %661 = vector.load %arg14[%c0_171, %c0_172] : memref<128x128xbf16, #tpu.memory_space<vmem>>, vector<128x128xbf16>
    %cst_173 = arith.constant dense<0.000000e+00> : vector<16x128xf32>
    %662 = tpu.matmul %660, %661, %cst_173 {dimension_numbers = #tpu.dot_dimension_numbers<[1], [0], [0], [1], [0, 0, 1, 1], [], []>} : vector<16x128xbf16>, vector<128x128xbf16>, vector<16x128xf32> -> vector<16x128xf32>
    %c0_174 = arith.constant 0 : index
    %c0_175 = arith.constant 0 : index
    %663 = vector.load %arg15[%c0_174, %c0_175] : memref<1x128xf32, #tpu.memory_space<vmem>>, vector<1x128xf32>
    %664 = vector.broadcast %663 : vector<1x128xf32> to vector<16x128xf32>
    %665 = arith.addf %662, %664 : vector<16x128xf32>
    %666 = arith.addf %340, %665 : vector<16x128xf32>
    %cst_176 = arith.constant dense<0.000000e+00> : vector<16xf32>
    %667 = vector.multi_reduction <add>, %666, %cst_176 [1] : vector<16x128xf32> to vector<16xf32>
    %668 = vector.shape_cast %667 : vector<16xf32> to vector<16x1xf32>
    %cst_177 = arith.constant 1.280000e+02 : f32
    %669 = vector.broadcast %cst_177 : f32 to vector<16x1xf32>
    %670 = arith.divf %668, %669 : vector<16x1xf32>
    %671 = vector.broadcast %670 : vector<16x1xf32> to vector<16x128xf32>
    %672 = arith.subf %666, %671 : vector<16x128xf32>
    %673 = arith.mulf %672, %672 : vector<16x128xf32>
    %cst_178 = arith.constant dense<0.000000e+00> : vector<16xf32>
    %674 = vector.multi_reduction <add>, %673, %cst_178 [1] : vector<16x128xf32> to vector<16xf32>
    %675 = vector.shape_cast %674 : vector<16xf32> to vector<16x1xf32>
    %cst_179 = arith.constant 1.280000e+02 : f32
    %676 = vector.broadcast %cst_179 : f32 to vector<16x1xf32>
    %677 = arith.divf %675, %676 : vector<16x1xf32>
    %678 = vector.broadcast %670 : vector<16x1xf32> to vector<16x128xf32>
    %679 = arith.subf %666, %678 : vector<16x128xf32>
    %cst_180 = arith.constant 9.99999974E-6 : f32
    %680 = vector.broadcast %cst_180 : f32 to vector<16x1xf32>
    %681 = arith.addf %677, %680 : vector<16x1xf32>
    %682 = math.rsqrt %681 : vector<16x1xf32>
    %683 = vector.broadcast %682 : vector<16x1xf32> to vector<16x128xf32>
    %684 = arith.mulf %679, %683 : vector<16x128xf32>
    %c0_181 = arith.constant 0 : index
    %c0_182 = arith.constant 0 : index
    %685 = vector.load %arg18[%c0_181, %c0_182] : memref<1x128xf32, #tpu.memory_space<vmem>>, vector<1x128xf32>
    %686 = vector.broadcast %685 : vector<1x128xf32> to vector<16x128xf32>
    %687 = arith.mulf %684, %686 : vector<16x128xf32>
    %c0_183 = arith.constant 0 : index
    %c0_184 = arith.constant 0 : index
    %688 = vector.load %arg19[%c0_183, %c0_184] : memref<1x128xf32, #tpu.memory_space<vmem>>, vector<1x128xf32>
    %689 = vector.broadcast %688 : vector<1x128xf32> to vector<16x128xf32>
    %690 = arith.addf %687, %689 : vector<16x128xf32>
    %691 = arith.truncf %690 : vector<16x128xf32> to vector<16x128xbf16>
    %c0_185 = arith.constant 0 : index
    %c0_186 = arith.constant 0 : index
    %692 = vector.load %arg22[%c0_185, %c0_186] : memref<128x256xbf16, #tpu.memory_space<vmem>>, vector<128x256xbf16>
    %cst_187 = arith.constant dense<0.000000e+00> : vector<16x256xf32>
    %693 = tpu.matmul %691, %692, %cst_187 {dimension_numbers = #tpu.dot_dimension_numbers<[1], [0], [0], [1], [0, 0, 1, 1], [], []>} : vector<16x128xbf16>, vector<128x256xbf16>, vector<16x256xf32> -> vector<16x256xf32>
    %c0_188 = arith.constant 0 : index
    %c0_189 = arith.constant 0 : index
    %694 = vector.load %arg23[%c0_188, %c0_189] : memref<1x256xf32, #tpu.memory_space<vmem>>, vector<1x256xf32>
    %695 = vector.broadcast %694 : vector<1x256xf32> to vector<16x256xf32>
    %696 = arith.addf %693, %695 : vector<16x256xf32>
    %cst_190 = arith.constant 0.000000e+00 : f32
    %697 = vector.broadcast %cst_190 : f32 to vector<16x256xf32>
    %698 = arith.maximumf %696, %697 : vector<16x256xf32>
    %699 = arith.truncf %698 : vector<16x256xf32> to vector<16x256xbf16>
    %c0_191 = arith.constant 0 : index
    %c0_192 = arith.constant 0 : index
    %700 = vector.load %arg24[%c0_191, %c0_192] : memref<256x128xbf16, #tpu.memory_space<vmem>>, vector<256x128xbf16>
    %cst_193 = arith.constant dense<0.000000e+00> : vector<16x128xf32>
    %701 = tpu.matmul %699, %700, %cst_193 {dimension_numbers = #tpu.dot_dimension_numbers<[1], [0], [0], [1], [0, 0, 1, 1], [], []>} : vector<16x256xbf16>, vector<256x128xbf16>, vector<16x128xf32> -> vector<16x128xf32>
    %c0_194 = arith.constant 0 : index
    %c0_195 = arith.constant 0 : index
    %702 = vector.load %arg25[%c0_194, %c0_195] : memref<1x128xf32, #tpu.memory_space<vmem>>, vector<1x128xf32>
    %703 = vector.broadcast %702 : vector<1x128xf32> to vector<16x128xf32>
    %704 = arith.addf %701, %703 : vector<16x128xf32>
    %705 = arith.addf %690, %704 : vector<16x128xf32>
    %cst_196 = arith.constant dense<0.000000e+00> : vector<16xf32>
    %706 = vector.multi_reduction <add>, %705, %cst_196 [1] : vector<16x128xf32> to vector<16xf32>
    %707 = vector.shape_cast %706 : vector<16xf32> to vector<16x1xf32>
    %cst_197 = arith.constant 1.280000e+02 : f32
    %708 = vector.broadcast %cst_197 : f32 to vector<16x1xf32>
    %709 = arith.divf %707, %708 : vector<16x1xf32>
    %710 = vector.broadcast %709 : vector<16x1xf32> to vector<16x128xf32>
    %711 = arith.subf %705, %710 : vector<16x128xf32>
    %712 = arith.mulf %711, %711 : vector<16x128xf32>
    %cst_198 = arith.constant dense<0.000000e+00> : vector<16xf32>
    %713 = vector.multi_reduction <add>, %712, %cst_198 [1] : vector<16x128xf32> to vector<16xf32>
    %714 = vector.shape_cast %713 : vector<16xf32> to vector<16x1xf32>
    %cst_199 = arith.constant 1.280000e+02 : f32
    %715 = vector.broadcast %cst_199 : f32 to vector<16x1xf32>
    %716 = arith.divf %714, %715 : vector<16x1xf32>
    %717 = vector.broadcast %709 : vector<16x1xf32> to vector<16x128xf32>
    %718 = arith.subf %705, %717 : vector<16x128xf32>
    %cst_200 = arith.constant 9.99999974E-6 : f32
    %719 = vector.broadcast %cst_200 : f32 to vector<16x1xf32>
    %720 = arith.addf %716, %719 : vector<16x1xf32>
    %721 = math.rsqrt %720 : vector<16x1xf32>
    %722 = vector.broadcast %721 : vector<16x1xf32> to vector<16x128xf32>
    %723 = arith.mulf %718, %722 : vector<16x128xf32>
    %c0_201 = arith.constant 0 : index
    %c0_202 = arith.constant 0 : index
    %724 = vector.load %arg20[%c0_201, %c0_202] : memref<1x128xf32, #tpu.memory_space<vmem>>, vector<1x128xf32>
    %725 = vector.broadcast %724 : vector<1x128xf32> to vector<16x128xf32>
    %726 = arith.mulf %723, %725 : vector<16x128xf32>
    %c0_203 = arith.constant 0 : index
    %c0_204 = arith.constant 0 : index
    %727 = vector.load %arg21[%c0_203, %c0_204] : memref<1x128xf32, #tpu.memory_space<vmem>>, vector<1x128xf32>
    %728 = vector.broadcast %727 : vector<1x128xf32> to vector<16x128xf32>
    %729 = arith.addf %726, %728 : vector<16x128xf32>
    %730 = arith.truncf %729 : vector<16x128xf32> to vector<16x128xbf16>
    %c0_205 = arith.constant 0 : index
    %c0_206 = arith.constant 0 : index
    %731 = vector.load %arg26[%c0_205, %c0_206] : memref<128x128xbf16, #tpu.memory_space<vmem>>, vector<128x128xbf16>
    %cst_207 = arith.constant dense<0.000000e+00> : vector<16x128xf32>
    %732 = tpu.matmul %730, %731, %cst_207 {dimension_numbers = #tpu.dot_dimension_numbers<[1], [0], [0], [1], [0, 0, 1, 1], [], []>} : vector<16x128xbf16>, vector<128x128xbf16>, vector<16x128xf32> -> vector<16x128xf32>
    %c0_208 = arith.constant 0 : index
    %c0_209 = arith.constant 0 : index
    %733 = vector.load %arg27[%c0_208, %c0_209] : memref<1x128xf32, #tpu.memory_space<vmem>>, vector<1x128xf32>
    %734 = vector.broadcast %733 : vector<1x128xf32> to vector<16x128xf32>
    %735 = arith.addf %732, %734 : vector<16x128xf32>
    %736 = vector.shape_cast %735 : vector<16x128xf32> to vector<2x8x128xf32>
    %c0_210 = arith.constant 0 : index
    %c0_211 = arith.constant 0 : index
    %c0_212 = arith.constant 0 : index
    %737 = vector.load %arg28[%c0_210, %c0_211, %c0_212] : memref<2x8x128xf32, #tpu.memory_space<vmem>>, vector<2x8x128xf32>
    tpu.vector_store %arg28[%c0_210, %c0_211, %c0_212], %736 {strides = array<i32>} : memref<2x8x128xf32, #tpu.memory_space<vmem>>, vector<2x8x128xf32>,
    return
  }
  func.func @transform_0(%arg0: i32) -> (i32, i32, i32) {
    %c0_i32 = arith.constant 0 : i32
    %c0_i32_0 = arith.constant 0 : i32
    %c0_i32_1 = arith.constant 0 : i32
    return %arg0, %c0_i32, %c0_i32_0 : i32, i32, i32
  }
  func.func @transform_1(%arg0: i32) -> (i32, i32, i32) {
    %c0_i32 = arith.constant 0 : i32
    %c0_i32_0 = arith.constant 0 : i32
    %c0_i32_1 = arith.constant 0 : i32
    return %arg0, %c0_i32, %c0_i32_0 : i32, i32, i32
  }
  func.func @transform_2(%arg0: i32) -> (i32, i32, i32) {
    %c0_i32 = arith.constant 0 : i32
    %c0_i32_0 = arith.constant 0 : i32
    %c0_i32_1 = arith.constant 0 : i32
    return %arg0, %c0_i32, %c0_i32_0 : i32, i32, i32
  }
  func.func @transform_3(%arg0: i32) -> (i32, i32, i32) {
    %c0_i32 = arith.constant 0 : i32
    %c0_i32_0 = arith.constant 0 : i32
    %c0_i32_1 = arith.constant 0 : i32
    return %arg0, %c0_i32, %c0_i32_0 : i32, i32, i32
  }
  func.func @transform_4(%arg0: i32) -> (i32, i32) {
    %c0_i32 = arith.constant 0 : i32
    %c0_i32_0 = arith.constant 0 : i32
    %c0_i32_1 = arith.constant 0 : i32
    return %c0_i32, %c0_i32_0 : i32, i32
  }
  func.func @transform_5(%arg0: i32) -> (i32, i32) {
    %c0_i32 = arith.constant 0 : i32
    %c0_i32_0 = arith.constant 0 : i32
    %c0_i32_1 = arith.constant 0 : i32
    return %c0_i32, %c0_i32_0 : i32, i32
  }
  func.func @transform_6(%arg0: i32) -> (i32, i32) {
    %c0_i32 = arith.constant 0 : i32
    %c0_i32_0 = arith.constant 0 : i32
    %c0_i32_1 = arith.constant 0 : i32
    return %c0_i32, %c0_i32_0 : i32, i32
  }
  func.func @transform_7(%arg0: i32) -> (i32, i32) {
    %c0_i32 = arith.constant 0 : i32
    %c0_i32_0 = arith.constant 0 : i32
    %c0_i32_1 = arith.constant 0 : i32
    return %c0_i32, %c0_i32_0 : i32, i32
  }
  func.func @transform_8(%arg0: i32) -> (i32, i32) {
    %c0_i32 = arith.constant 0 : i32
    %c0_i32_0 = arith.constant 0 : i32
    %c0_i32_1 = arith.constant 0 : i32
    return %c0_i32, %c0_i32_0 : i32, i32
  }
  func.func @transform_9(%arg0: i32) -> (i32, i32) {
    %c0_i32 = arith.constant 0 : i32
    %c0_i32_0 = arith.constant 0 : i32
    %c0_i32_1 = arith.constant 0 : i32
    return %c0_i32, %c0_i32_0 : i32, i32
  }
  func.func @transform_10(%arg0: i32) -> (i32, i32) {
    %c0_i32 = arith.constant 0 : i32
    %c0_i32_0 = arith.constant 0 : i32
    %c0_i32_1 = arith.constant 0 : i32
    return %c0_i32, %c0_i32_0 : i32, i32
  }
  func.func @transform_11(%arg0: i32) -> (i32, i32) {
    %c0_i32 = arith.constant 0 : i32
    %c0_i32_0 = arith.constant 0 : i32
    %c0_i32_1 = arith.constant 0 : i32
    return %c0_i32, %c0_i32_0 : i32, i32
  }
  func.func @transform_12(%arg0: i32) -> (i32, i32) {
    %c0_i32 = arith.constant 0 : i32
    %c0_i32_0 = arith.constant 0 : i32
    %c0_i32_1 = arith.constant 0 : i32
    return %c0_i32, %c0_i32_0 : i32, i32
  }
  func.func @transform_13(%arg0: i32) -> (i32, i32) {
    %c0_i32 = arith.constant 0 : i32
    %c0_i32_0 = arith.constant 0 : i32
    %c0_i32_1 = arith.constant 0 : i32
    return %c0_i32, %c0_i32_0 : i32, i32
  }
  func.func @transform_14(%arg0: i32) -> (i32, i32) {
    %c0_i32 = arith.constant 0 : i32
    %c0_i32_0 = arith.constant 0 : i32
    %c0_i32_1 = arith.constant 0 : i32
    return %c0_i32, %c0_i32_0 : i32, i32
  }
  func.func @transform_15(%arg0: i32) -> (i32, i32) {
    %c0_i32 = arith.constant 0 : i32
    %c0_i32_0 = arith.constant 0 : i32
    %c0_i32_1 = arith.constant 0 : i32
    return %c0_i32, %c0_i32_0 : i32, i32
  }
  func.func @transform_16(%arg0: i32) -> (i32, i32) {
    %c0_i32 = arith.constant 0 : i32
    %c0_i32_0 = arith.constant 0 : i32
    %c0_i32_1 = arith.constant 0 : i32
    return %c0_i32, %c0_i32_0 : i32, i32
  }
  func.func @transform_17(%arg0: i32) -> (i32, i32) {
    %c0_i32 = arith.constant 0 : i32
    %c0_i32_0 = arith.constant 0 : i32
    %c0_i32_1 = arith.constant 0 : i32
    return %c0_i32, %c0_i32_0 : i32, i32
  }
  func.func @transform_18(%arg0: i32) -> (i32, i32) {
    %c0_i32 = arith.constant 0 : i32
    %c0_i32_0 = arith.constant 0 : i32
    %c0_i32_1 = arith.constant 0 : i32
    return %c0_i32, %c0_i32_0 : i32, i32
  }
  func.func @transform_19(%arg0: i32) -> (i32, i32) {
    %c0_i32 = arith.constant 0 : i32
    %c0_i32_0 = arith.constant 0 : i32
    %c0_i32_1 = arith.constant 0 : i32
    return %c0_i32, %c0_i32_0 : i32, i32
  }
  func.func @transform_20(%arg0: i32) -> (i32, i32) {
    %c0_i32 = arith.constant 0 : i32
    %c0_i32_0 = arith.constant 0 : i32
    %c0_i32_1 = arith.constant 0 : i32
    return %c0_i32, %c0_i32_0 : i32, i32
  }
  func.func @transform_21(%arg0: i32) -> (i32, i32) {
    %c0_i32 = arith.constant 0 : i32
    %c0_i32_0 = arith.constant 0 : i32
    %c0_i32_1 = arith.constant 0 : i32
    return %c0_i32, %c0_i32_0 : i32, i32
  }
  func.func @transform_22(%arg0: i32) -> (i32, i32) {
    %c0_i32 = arith.constant 0 : i32
    %c0_i32_0 = arith.constant 0 : i32
    %c0_i32_1 = arith.constant 0 : i32
    return %c0_i32, %c0_i32_0 : i32, i32
  }
  func.func @transform_23(%arg0: i32) -> (i32, i32) {
    %c0_i32 = arith.constant 0 : i32
    %c0_i32_0 = arith.constant 0 : i32
    %c0_i32_1 = arith.constant 0 : i32
    return %c0_i32, %c0_i32_0 : i32, i32
  }
  func.func @transform_24(%arg0: i32) -> (i32, i32) {
    %c0_i32 = arith.constant 0 : i32
    %c0_i32_0 = arith.constant 0 : i32
    %c0_i32_1 = arith.constant 0 : i32
    return %c0_i32, %c0_i32_0 : i32, i32
  }
  func.func @transform_25(%arg0: i32) -> (i32, i32) {
    %c0_i32 = arith.constant 0 : i32
    %c0_i32_0 = arith.constant 0 : i32
    %c0_i32_1 = arith.constant 0 : i32
    return %c0_i32, %c0_i32_0 : i32, i32
  }
  func.func @transform_26(%arg0: i32) -> (i32, i32) {
    %c0_i32 = arith.constant 0 : i32
    %c0_i32_0 = arith.constant 0 : i32
    %c0_i32_1 = arith.constant 0 : i32
    return %c0_i32, %c0_i32_0 : i32, i32
  }
  func.func @transform_27(%arg0: i32) -> (i32, i32, i32) {
    %c0_i32 = arith.constant 0 : i32
    %c0_i32_0 = arith.constant 0 : i32
    %c0_i32_1 = arith.constant 0 : i32
    return %arg0, %c0_i32, %c0_i32_0 : i32, i32, i32
  }
}

</mosaic_0001>

<bundles_post_ra>
// kernel: div.30
= control target key start
LH: loop header
LB: loop body
LE: loop exit
PB: predicated region body
PF: predicated region fallthrough
CT: control target
= control target key end

     0   :  { %v5_v0 = vlaneseq  ;;  %s29_s0 = inlined_call_operand.vmem [shape: f32[2], index: 0, kind: input, shape index: {}]   ;;  %s30_s1 = inlined_call_operand.vmem [shape: f32[2,1,64], index: 1, kind: output, shape index: {}]  }
   0x1   :  { %v4_v2 = vld [vmem:[%s29_s0] ss:$0 sm:$0xff] }
   0x2   :  { %v6_v1 = vshrl.u32 %v5_v0, 7 }
   0x4   :  { %12 = vset.pattern.permute.xlu0 %v6_v1 }
   0xc   :  { %9 = vperm.xlu0 %12, %v4_v2  }
  0x7e   :  { %v10_v3 = vpop.permute.xlu0 %9 }
  0x7f   :  { %11 = vst [vmem:[%s30_s1] sm:$0x3] %v10_v3 }

// kernel: peptide_decoder_forward.1
= control target key start
LH: loop header
LB: loop body
LE: loop exit
PB: predicated region body
PF: predicated region fallthrough
CT: control target
= control target key end

     0   :  { %s5684_s0 = inlined_call_operand.vmem [shape: f32[2,8,128], index: 0, kind: input, shape index: {}]   ;;  %s5685_s1 = inlined_call_operand.vmem [shape: bf16[2,16,128], index: 1, kind: input, shape index: {}]   ;;  %s5686_s2 = inlined_call_operand.vmem [shape: f32[2,1,8], index: 2, kind: input, shape index: {}]   ;;  %s5687_s3 = inlined_call_operand.vmem [shape: f32[2,1,16], index: 3, kind: input, shape index: {}]   ;;  %s5688_s4 = inlined_call_operand.vmem [shape: f32[8,8], index: 4, kind: input, shape index: {}]   ;;  %s5689_s5 = inlined_call_operand.vmem [shape: bf16[128,384], index: 5, kind: input, shape index: {}]   ;;  %s5690_s6 = inlined_call_operand.vmem [shape: f32[1,384], index: 6, kind: input, shape index: {}]   ;;  %s5691_s7 = inlined_call_operand.hbm [shape: bf16[128,128], index: 7, kind: input, shape index: {}]   ;;  %s5692_s8 = inlined_call_operand.vmem [shape: f32[1,128], index: 8, kind: input, shape index: {}]   ;;  %s5693_s9 = inlined_call_operand.hbm [shape: bf16[128,128], index: 9, kind: input, shape index: {}]   ;;  %s5694_s10 = inlined_call_operand.vmem [shape: f32[1,128], index: 10, kind: input, shape index: {}]   ;;  %s5695_s11 = inlined_call_operand.vmem [shape: bf16[128,256], index: 11, kind: input, shape index: {}]   ;;  %s5696_s12 = inlined_call_operand.vmem [shape: f32[1,256], index: 12, kind: input, shape index: {}]   ;;  %s5697_s13 = inlined_call_operand.hbm [shape: bf16[128,128], index: 13, kind: input, shape index: {}]   ;;  %s5698_s14 = inlined_call_operand.vmem [shape: f32[1,128], index: 14, kind: input, shape index: {}]   ;;  %s5699_s15 = inlined_call_operand.vmem [shape: f32[1,128], index: 15, kind: input, shape index: {}]   ;;  %s5700_s16 = inlined_call_operand.vmem [shape: f32[1,128], index: 16, kind: input, shape index: {}]   ;;  %s5701_s17 = inlined_call_operand.vmem [shape: f32[1,128], index: 17, kind: input, shape index: {}]   ;;  %s5702_s18 = inlined_call_operand.vmem [shape: f32[1,128], index: 18, kind: input, shape index: {}]   ;;  %s5703_s19 = inlined_call_operand.vmem [shape: f32[1,128], index: 19, kind: input, shape index: {}]   ;;  %s5704_s20 = inlined_call_operand.vmem [shape: f32[1,128], index: 20, kind: input, shape index: {}]   ;;  %s5705_s21 = inlined_call_operand.hbm [shape: bf16[128,256], index: 21, kind: input, shape index: {}]   ;;  %s5706_s22 = inlined_call_operand.vmem [shape: f32[1,256], index: 22, kind: input, shape index: {}]   ;;  %s5707_s23 = inlined_call_operand.hbm [shape: bf16[256,128], index: 23, kind: input, shape index: {}]   ;;  %s5708_s24 = inlined_call_operand.vmem [shape: f32[1,128], index: 24, kind: input, shape index: {}]   ;;  %s5709_s25 = inlined_call_operand.hbm [shape: bf16[128,128], index: 25, kind: input, shape index: {}]   ;;  %s5710_s26 = inlined_call_operand.vmem [shape: f32[1,128], index: 26, kind: input, shape index: {}]   ;;  %s5711_s27 = inlined_call_operand.hbm [shape: f32[2,8,128], index: 27, kind: output, shape index: {}]  }
   0x1   :  { %5719 = sst [smem:[#allocation19_spill]] %s5684_s0 }
   0x2   :  { %5720 = sst [smem:[#allocation20_spill]] %s5685_s1 }
   0x3   :  { %5721 = sst [smem:[#allocation21_spill]] %s5686_s2 }
   0x4   :  { %5722 = sst [smem:[#allocation22_spill]] %s5687_s3 }
   0x5   :  { %5723 = sst [smem:[#allocation23_spill]] %s5688_s4 }
   0x6   :  { %5724 = sst [smem:[#allocation24_spill]] %s5689_s5 }
   0x7   :  { %5725 = sst [smem:[#allocation25_spill]] %s5690_s6 }
   0x8   :  { %5726 = sst [smem:[#allocation26_spill]] %s5691_s7 }
   0x9   :  { %5727 = sst [smem:[#allocation27_spill]] %s5692_s8 }
   0xa   :  { %5728 = sst [smem:[#allocation28_spill]] %s5693_s9 }
   0xb   :  { %5729 = sst [smem:[#allocation29_spill]] %s5694_s10 }
   0xc   :  { %5730 = sst [smem:[#allocation30_spill]] %s5695_s11 }
   0xd   :  { %5731 = sst [smem:[#allocation31_spill]] %s5711_s27 }
   0xe   :  { %32 = vsyncpa [#allocation3], 0 }
   0xf   :  { %33 = vsyncpa [#allocation6], 0 }
  0x10   :  { %34 = vsyncpa [#allocation9], 0 }
  0x11   :  { %35 = vsyncpa [#allocation12], 0 }
  0x12   :  { %36 = vsyncpa [#allocation4], 0  ;;  %s5732_s8 = sld [smem:[#allocation28_spill]]  ;;  %s4360_s9 = smov [#allocation5]  }
  0x13   :  { %s72_s5 = sshll.u32 %s4360_s9, 4  ;;  %s116_s10 = sshll.u32 %s5705_s21, 4  ;;  %s73_s5 = int_to_ptr.vmem [resolvable:$true] %s72_s5  ;;  %s117_s10 = int_to_ptr.hbm [resolvable:$true] %s116_s10 }
  0x14   :  { %s4361_s29 = smov 64   ;;  %s4362_s1 = smov 4  }
  0x15   :  { %s4363_s6 = smov [#allocation8]   ;;  %s5718_s2 = smov 128  }
  0x16   :  { %s118_s11 = sshll.u32 %s4363_s6, 4  ;;  %s4365_s3 = smov 8   ;;  %s119_s11 = int_to_ptr.vmem [resolvable:$true] %s118_s11 }
  0x17   :  { %124 = dma.hbm_to_vmem [thread:$0]  %s117_s10, 2048, %s119_s11, [#allocation9], %s5718_s2, %s5718_s2, %s4365_s3  }
  0x18   :  { %s70_s30 = sshll.u32 %s5732_s8, 4  ;;  %s5733_s8 = sld [smem:[#allocation26_spill]]  ;;  %s71_s30 = int_to_ptr.hbm [resolvable:$true] %s70_s30 }
  0x19   :  { %78 = dma.hbm_to_vmem [thread:$0]  %s71_s30, 1024, %s73_s5, [#allocation6], %s4361_s29, %s4361_s29, %s4362_s1  }
  0x1a   :  { %s4366_s9 = smov [#allocation2]   ;;  %s89_s5 = sshll.u32 %s5697_s13, 4  ;;  %s90_s5 = int_to_ptr.hbm [resolvable:$true] %s89_s5 }
  0x1b   :  { %s57_s28 = sshll.u32 %s4366_s9, 4  ;;  %s4367_s6 = smov [#allocation7]   ;;  %s58_s28 = int_to_ptr.vmem [resolvable:$true] %s57_s28 }
  0x1c   :  { %s91_s27 = sshll.u32 %s4367_s6, 4  ;;  %s131_s7 = sshll.u32 %s5707_s23, 4  ;;  %s92_s27 = int_to_ptr.vmem [resolvable:$true] %s91_s27  ;;  %s132_s7 = int_to_ptr.hbm [resolvable:$true] %s131_s7 }
  0x1d   :  { %97 = dma.hbm_to_vmem [thread:$0]  %s90_s5, 1024, %s92_s27, [#allocation6], %s4361_s29, %s4361_s29, %s4362_s1  }
  0x1e   :  { %s55_s21 = sshll.u32 %s5733_s8, 4  ;;  %s146_s13 = sshll.u32 %s5709_s25, 4  ;;  %s56_s21 = int_to_ptr.hbm [resolvable:$true] %s55_s21  ;;  %s147_s13 = int_to_ptr.hbm [resolvable:$true] %s146_s13 }
  0x1f   :  { %63 = dma.hbm_to_vmem [thread:$0]  %s56_s21, 1024, %s58_s28, [#allocation3], %s4361_s29, %s4361_s29, %s4362_s1  }
  0x20   :  { %s4368_s9 = smov [#allocation10]   ;;  %s4369_s21 = smov [#allocation11]  }
  0x21   :  { %s133_s0 = sshll.u32 %s4368_s9, 4  ;;  %s148_s23 = sshll.u32 %s4369_s21, 4  ;;  %s134_s0 = int_to_ptr.vmem [resolvable:$true] %s133_s0  ;;  %s149_s23 = int_to_ptr.vmem [resolvable:$true] %s148_s23 }
  0x22   :  { %139 = dma.hbm_to_vmem [thread:$0]  %s132_s7, 2048, %s134_s0, [#allocation9], %s4361_s29, %s4361_s29, %s4362_s1  }
  0x23   :  { %154 = dma.hbm_to_vmem [thread:$0]  %s147_s13, 1024, %s149_s23, [#allocation12], %s4361_s29, %s4361_s29, %s4362_s1  }
  0x24   :  { %4350 = dma.done.wait [#allocation3], 1024  }
  0x25   :  { %4351 = vsyncadd [#allocation3], 4294966272 }
  0x26   :  { %4352 = dma.done.wait [#allocation6], 2048  }
  0x27   :  { %4353 = vsyncadd [#allocation6], 4294965248 }
  0x28   :  { %4354 = dma.done.wait [#allocation9], 4096  }
  0x29   :  { %4355 = vsyncadd [#allocation9], 4294963200 }
  0x2a   :  { %4356 = dma.done.wait [#allocation12], 1024  }
  0x2b   :  { %4357 = vsyncadd [#allocation12], 4294966272  ;;  %s5734_s28 = sld [smem:[#allocation24_spill]]  ;;  %vm416_vm0 = vcmask 130048   ;;  %s4371_s4 = smov 96   ;;  %vm452_vm1 = vcmask 1043456  }
  0x2c   :  { %s5735_s1 = sld [smem:[#allocation19_spill]]  ;;  %s4372_s8 = smov 80   ;;  %vm436_vm2 = vcmask 64512   ;;  %vm899_vm3 = vcmask 261120   ;;  %vm901_vm4 = vcmask 392192   ;;  %vm903_vm5 = vcmask 523264  }
  0x2d   :  { %s5736_s7 = sld [smem:[#allocation25_spill]]  ;;  %s4373_s13 = smov 48   ;;  %vm905_vm6 = vcmask 654336   ;;  %vm907_vm7 = vcmask 785408   ;;  %vm909_vm8 = vcmask 916480  }
  0x2e   :  { %s4374_s9 = smov 32   ;;  %s4375_s0 = smov 16  }
  0x2f   :  { %s5737_s25 = sld [smem:[#allocation21_spill]] }
  0x30   :  { %s5738_s5 = sld [smem:[#allocation23_spill]] }
  0x31   :  { %v3427_v0 = vld [vmem:[%s5734_s28 + $0xa8] sm:$0xf]  ;;  %v3853_v1 = vld [vmem:[%s5734_s28 + $0xb0] sm:$0xf0]  ;;  %v3852_v2 = vld [vmem:[%s5734_s28 + $0xac] sm:$0xf] }
  0x32   :  { %v3428_v3 = vor.u32 %v3853_v1, %v3427_v0  ;;  %v3429_v4 = vld [vmem:[%s5734_s28 + $0xb4] sm:$0xf0]  ;;  %v3415_v5 = vld [vmem:[%s5734_s28 + $0x90] sm:$0xf]  ;;  %v3850_v6 = vld [vmem:[%s5734_s28 + $0x98] sm:$0xf0] }
  0x33   :  { %v3432_v7 = vor.u32 %v3852_v2, %v3429_v4  ;;  %v3849_v8 = vld [vmem:[%s5734_s28 + $0x94] sm:$0xf]  ;;  %v3417_v9 = vld [vmem:[%s5734_s28 + $0x9c] sm:$0xf0]  ;;  %v3416_v10 = vor.u32 %v3850_v6, %v3415_v5  ;;  %v3403_v12 = vld [vmem:[%s5734_s28 + $0x78] sm:$0xf] }
  0x34   :  { %362 = vmatpush.bf16.msra.mxu0 %v3428_v3  ;;  %v3420_v11 = vor.u32 %v3849_v8, %v3417_v9  ;;  %v3847_v13 = vld [vmem:[%s5734_s28 + $0x80] sm:$0xf0]  ;;  %v3846_v14 = vld [vmem:[%s5734_s28 + $0x7c] sm:$0xf]  ;;  %v3405_v15 = vld [vmem:[%s5734_s28 + $0x84] sm:$0xf0] }
  0x35   :  { %376 = vmatpush.bf16.msra.mxu1 %v3432_v7  ;;  %v3404_v16 = vor.u32 %v3847_v13, %v3403_v12  ;;  %v3408_v17 = vor.u32 %v3846_v14, %v3405_v15  ;;  %v3391_v18 = vld [vmem:[%s5734_s28 + $0x60] sm:$0xf]  ;;  %v3844_v19 = vld [vmem:[%s5734_s28 + $0x68] sm:$0xf0]  ;;  %v3843_v20 = vld [vmem:[%s5734_s28 + $0x64] sm:$0xf] }
  0x36   :  { %v3393_v21 = vld [vmem:[%s5734_s28 + $0x6c] sm:$0xf0]  ;;  %v3392_v22 = vor.u32 %v3844_v19, %v3391_v18  ;;  %v3379_v23 = vld [vmem:[%s5734_s28 + $0x48] sm:$0xf]  ;;  %v3854_v25 = vld [vmem:[%s5734_s28 + $0xb8] sm:$0xf0] }
  0x37   :  { %v3435_v24 = vld [vmem:[%s5734_s28 + $0xb0] sm:$0xf]  ;;  %v3396_v26 = vor.u32 %v3843_v20, %v3393_v21  ;;  %v3841_v27 = vld [vmem:[%s5734_s28 + $0x50] sm:$0xf0]  ;;  %v3423_v29 = vld [vmem:[%s5734_s28 + $0x98] sm:$0xf] }
  0x38   :  { %363 = vmatpush.bf16.msra.mxu0 %v3416_v10  ;;  %v3436_v28 = vor.u32 %v3854_v25, %v3435_v24  ;;  %v3851_v30 = vld [vmem:[%s5734_s28 + $0xa0] sm:$0xf0]  ;;  %v3840_v31 = vld [vmem:[%s5734_s28 + $0x4c] sm:$0xf]  ;;  %v3381_v32 = vld [vmem:[%s5734_s28 + $0x54] sm:$0xf0]  ;;  %v3380_v34 = vor.u32 %v3841_v27, %v3379_v23 }
  0x39   :  { %377 = vmatpush.bf16.msra.mxu1 %v3420_v11  ;;  %v3424_v33 = vor.u32 %v3851_v30, %v3423_v29  ;;  %v3367_v35 = vld [vmem:[%s5734_s28 + $0x30] sm:$0xf]  ;;  %v3411_v36 = vld [vmem:[%s5734_s28 + $0x80] sm:$0xf]  ;;  %v3848_v37 = vld [vmem:[%s5734_s28 + $0x88] sm:$0xf0]  ;;  %v3384_v38 = vor.u32 %v3840_v31, %v3381_v32 }
  0x3a   :  { %390 = vmatpush.bf16.msra.mxu2 %v3436_v28  ;;  %v3838_v39 = vld [vmem:[%s5734_s28 + $0x38] sm:$0xf0]  ;;  %v3837_v40 = vld [vmem:[%s5734_s28 + $0x34] sm:$0xf]  ;;  %v3369_v41 = vld [vmem:[%s5734_s28 + $0x3c] sm:$0xf0]  ;;  %v3412_v46 = vor.u32 %v3848_v37, %v3411_v36 }
  0x3b   :  { %v3399_v42 = vld [vmem:[%s5734_s28 + $0x68] sm:$0xf]  ;;  %v3845_v43 = vld [vmem:[%s5734_s28 + $0x70] sm:$0xf0]  ;;  %v3355_v44 = vld [vmem:[%s5734_s28 + $0x18] sm:$0xf]  ;;  %v3368_v47 = vor.u32 %v3838_v39, %v3367_v35  ;;  %v3372_v50 = vor.u32 %v3837_v40, %v3369_v41 }
  0x3c   :  { %364 = vmatpush.bf16.msra.mxu0 %v3404_v16  ;;  %v3835_v45 = vld [vmem:[%s5734_s28 + $0x20] sm:$0xf0]  ;;  %v3834_v48 = vld [vmem:[%s5734_s28 + $0x1c] sm:$0xf]  ;;  %v3357_v49 = vld [vmem:[%s5734_s28 + $0x24] sm:$0xf0]  ;;  %v3400_v51 = vor.u32 %v3845_v43, %v3399_v42 }
  0x3d   :  { %378 = vmatpush.bf16.msra.mxu1 %v3408_v17  ;;  %v3356_v52 = vor.u32 %v3835_v45, %v3355_v44  ;;  %v3387_v53 = vld [vmem:[%s5734_s28 + $0x50] sm:$0xf]  ;;  %v3842_v54 = vld [vmem:[%s5734_s28 + $0x58] sm:$0xf0]  ;;  %v3360_v55 = vor.u32 %v3834_v48, %v3357_v49  ;;  %v3343_v56 = vld [vmem:[%s5734_s28] sm:$0xf] }
  0x3e   :  { %391 = vmatpush.bf16.msra.mxu2 %v3424_v33  ;;  %v3832_v57 = vld [vmem:[%s5734_s28 + $0x8] sm:$0xf0]  ;;  %v3831_v58 = vld [vmem:[%s5734_s28 + $0x4] sm:$0xf]  ;;  %v3345_v59 = vld [vmem:[%s5734_s28 + $0xc] sm:$0xf0]  ;;  %v3388_v61 = vor.u32 %v3842_v54, %v3387_v53 }
  0x3f   :  { %v182_v60 = vld [vmem:[%s5735_s1] sm:$0xff]  ;;  %v3344_v62 = vor.u32 %v3832_v57, %v3343_v56  ;;  %v183_v63 = vld [vmem:[%s5735_s1 + $0x8] sm:$0xff]  ;;  %v3375_v0 = vld [vmem:[%s5734_s28 + $0x38] sm:$0xf]  ;;  %v3348_v2 = vor.u32 %v3831_v58, %v3345_v59  ;;  %s5739_s21 = sld [smem:[#allocation27_spill]] }
  0x40   :  { %365 = vmatpush.bf16.msra.mxu0 %v3392_v22  ;;  %v3839_v1 = vld [vmem:[%s5734_s28 + $0x40] sm:$0xf0]  ;;  %v193_v3 = vpack.c.bf16 %v183_v63, %v182_v60  ;;  %v3363_v5 = vld [vmem:[%s5734_s28 + $0x20] sm:$0xf]  ;;  %v3836_v6 = vld [vmem:[%s5734_s28 + $0x28] sm:$0xf0] }
  0x41   :  { %379 = vmatpush.bf16.msra.mxu1 %v3396_v26  ;;  %v3376_v4 = vor.u32 %v3839_v1, %v3375_v0  ;;  %v3364_v7 = vor.u32 %v3836_v6, %v3363_v5  ;;  %v3351_v8 = vld [vmem:[%s5734_s28 + $0x8] sm:$0xf]  ;;  %v3833_v9 = vld [vmem:[%s5734_s28 + $0x10] sm:$0xf0]  ;;  %v4707_v11 = vld [vmem:[%s5736_s7] sm:$0x7] }
  0x42   :  { %392 = vmatpush.bf16.msra.mxu2 %v3412_v46  ;;  %v3352_v10 = vor.u32 %v3833_v9, %v3351_v8  ;;  %v228_v12 = vperm.slane %v4707_v11, 0  ;;  %v229_v13 = vperm.slane %v4707_v11, 1  ;;  %s4370_s28 = smov 112   ;;  %v230_v37 = vperm.slane %v4707_v11, 2  ;;  %v4023_v48 = vld [vmem:[%s5737_s25] ss:$0 sm:$0xff] }
  0x43   :  { %v4768_v49 = vld [vmem:[%s5738_s5] sm:$0xff]  ;;  %s5740_s10 = sld [smem:[#allocation30_spill]] }
  0x44   :  { %366 = vmatpush.bf16.msra.mxu0 %v3380_v34  ;;  %s5742_s30 = sld [smem:[#allocation29_spill]] }
  0x45   :  { %380 = vmatpush.bf16.msra.mxu1 %v3384_v38  ;;  %s5743_s11 = sld [smem:[#allocation22_spill]] }
  0x46   :  { %393 = vmatpush.bf16.msra.mxu2 %v3400_v51  ;;  %v4771_v51 = vadd.f32 %v4023_v48, %v4768_v49 }
  0x48   :  { %367 = vmatpush.bf16.msra.mxu0 %v3368_v47 }
  0x49   :  { %381 = vmatpush.bf16.msra.mxu1 %v3372_v50 }
  0x4a   :  { %394 = vmatpush.bf16.msra.mxu2 %v3388_v61 }
  0x4c   :  { %368 = vmatpush.bf16.msra.mxu0 %v3356_v52 }
  0x4d   :  { %382 = vmatpush.bf16.msra.mxu1 %v3360_v55 }
  0x4e   :  { %395 = vmatpush.bf16.msra.mxu2 %v3376_v4 }
  0x50   :  { %369 = vmatpush.bf16.msra.mxu0 %v3344_v62 }
  0x51   :  { %383 = vmatpush.bf16.msra.mxu1 %v3348_v2 }
  0x52   :  { %396 = vmatpush.bf16.msra.mxu2 %v3364_v7 }
  0x53   :  { %370 = vmatmul.bf16.vlgmr.msra.gmra.mxu0 %v193_v3 }
  0x54   :  { %384 = vmatmul.bf16.vlgmr.msra.gmra.mxu1 %v193_v3 }
  0x56   :  { %397 = vmatpush.bf16.msra.mxu2 %v3352_v10 }
  0x59   :  { %398 = vmatmul.bf16.vlgmr.msra.gmra.mxu2 %v193_v3 }
  0xd0   :  { %v371_v14 = vpop.f32.mrf.mxu0 }
  0xd1   :  { %v372_v15 = vadd.f32 %v371_v14, %v228_v12  ;;  %v385_v16 = vpop.f32.mrf.mxu1 }
  0xd2   :  { %v386_v17 = vadd.f32 %v385_v16, %v229_v13 }
  0xd3   :  { %v404_v18 = vmul.f32 0.25, %v372_v15 }
  0xd4   :  { %v408_v19 = vpack.c.bf16 %v386_v17, %v386_v17 }
  0xd5   :  { %v406_v20 = vpack.c.bf16 %v404_v18, %v404_v18 }
  0xd6   :  { %v475_v21 = vunpack.c.l.b16 %v408_v19  ;;  %v421_v22 = vsel %vm416_vm0, %v408_v19, 0 }
  0xd7   :  { %430 = vmatpush.bf16.xpose.msrb.mxu2 %v421_v22  ;;  %v470_v24 = vunpack.c.l.b16 %v406_v20 }
  0xd8   :  { %v4712_v23 = vpack.c.b16 %v475_v21, %v475_v21  ;;  %v373_v28 = vpop.f32.mrf.mxu0 }
  0xd9   :  { %v4716_v25 = vpack.c.b16 %v470_v24, %v470_v24  ;;  %v387_v26 = vpop.f32.mrf.mxu1  ;;  %v374_v29 = vadd.f32 %v373_v28, %v228_v12 }
  0xda   :  { %477 = vrot.lane.b32.xlu1 %v4712_v23, %s4370_s28  ;;  %v388_v27 = vadd.f32 %v387_v26, %v229_v13 }
  0xdb   :  { %v405_v31 = vmul.f32 0.25, %v374_v29 }
  0xdc   :  { %v4731_v30 = vpack.c.bf16 %v388_v27, %v388_v27  ;;  %v399_v38 = vpop.f32.mrf.mxu2 }
  0xdd   :  { %v4736_v33 = vpack.c.bf16 %v405_v31, %v405_v31  ;;  %v400_v39 = vadd.f32 %v399_v38, %v230_v37 }
  0xde   :  { %3437 = vmatmul.msk.bf16.vlgmr.msrb.gmra.mxu2 %vm416_vm0, %v406_v20  ;;  %v971_v32 = vunpack.c.l.b16 %v4731_v30 }
  0xdf   :  { %v966_v35 = vunpack.c.l.b16 %v4736_v33  ;;  %v410_v40 = vpack.c.bf16 %v400_v39, %v400_v39 }
  0xe0   :  { %v4738_v34 = vpack.c.b16 %v971_v32, %v971_v32 }
  0xe1   :  { %v4743_v36 = vpack.c.b16 %v966_v35, %v966_v35  ;;  %v454_v41 = vsel %vm452_vm1, %v410_v40, 0  ;;  %v511_v42 = vunpack.c.l.b16 %v410_v40 }
  0xe2   :  { %472 = vrot.lane.b32.xlu1 %v4716_v25, %s4370_s28  ;;  %463 = vmatpush.bf16.msra.mxu3 %v454_v41 }
  0xe3   :  { %v4755_v43 = vpack.c.b16 %v511_v42, %v511_v42 }
  0xe4   :  { %v4760_v47 = vpop.f32.mrf.mxu2 }
  0xea   :  { %536 = vrot.lane.b32.xlu1 %v4712_v23, %s4371_s4 }
  0xf2   :  { %534 = vrot.lane.b32.xlu1 %v4716_v25, %s4371_s4 }
  0xfa   :  { %590 = vrot.lane.b32.xlu1 %v4716_v25, %s4372_s8 }
 0x102   :  { %704 = vrot.lane.b32.xlu1 %v4712_v23, %s4373_s13 }
 0x10a   :  { %760 = vrot.lane.b32.xlu1 %v4712_v23, %s4374_s9 }
 0x112   :  { %814 = vrot.lane.b32.xlu1 %v4716_v25, %s4375_s0 }
 0x11a   :  { %1032 = vrot.lane.b32.xlu1 %v4738_v34, %s4371_s4 }
 0x122   :  { %1086 = vrot.lane.b32.xlu1 %v4743_v36, %s4372_s8 }
 0x12a   :  { %1142 = vrot.lane.b32.xlu1 %v4743_v36, %s4361_s29 }
 0x132   :  { %1312 = vrot.lane.b32.xlu1 %v4738_v34, %s4375_s0 }
 0x13a   :  { %569 = vrot.lane.b32.xlu1 %v4755_v43, %s4371_s4 }
 0x14c   :  { %v478_v44 = vpop.permute.xlu1 %477 }
 0x14d   :  { %v483_v45 = vsel %vm416_vm0, %v478_v44, 0 }
 0x14e   :  { %492 = vmatpush.bf16.xpose.msrb.mxu3 %v483_v45 }
 0x154   :  { %v473_v46 = vpop.permute.xlu1 %472 }
 0x15c   :  { %v537_v50 = vpop.permute.xlu1 %536 }
 0x15d   :  { %v542_v15 = vsel %vm416_vm0, %v537_v50, 0 }
 0x161   :  { %v432_v52 = vpop.f32.mrf.mxu2 }
 0x162   :  { %v433_v53 = vadd.f32 %v432_v52, %v4771_v51 }
 0x164   :  { %v4774_v54 = vpop.permute.xlu1 %534  ;;  %v437_v55 = vsel %vm436_vm2, %v433_v53, -inf }
 0x165   :  { %438 = vmax.xlane.f32.xlu0 %v437_v55 }
 0x169   :  { %v434_v56 = vpop.f32.mrf.mxu2 }
 0x16c   :  { %v591_v57 = vpop.permute.xlu1 %590 }
 0x174   :  { %v705_v58 = vpop.permute.xlu1 %704 }
 0x175   :  { %v710_v29 = vsel %vm416_vm0, %v705_v58, 0 }
 0x17c   :  { %v4777_v59 = vpop.permute.xlu1 %760 }
 0x17d   :  { %v766_v55 = vsel %vm416_vm0, %v4777_v59, 0 }
 0x184   :  { %v4779_v60 = vpop.permute.xlu1 %814 }
 0x18c   :  { %v4781_v61 = vpop.permute.xlu1 %1032 }
 0x194   :  { %v4783_v62 = vpop.permute.xlu1 %1086 }
 0x19c   :  { %v4785_v63 = vpop.permute.xlu1 %1142 }
 0x1a4   :  { %v4787_v0 = vpop.permute.xlu1 %1312 }
 0x1ac   :  { %v570_v1 = vpop.permute.xlu1 %569 }
 0x1ad   :  { %v575_v2 = vsel %vm452_vm1, %v570_v1, 0 }
 0x1ae   :  { %584 = vmatpush.bf16.msra.mxu2 %v575_v2 }
 0x1d8   :  { %v439_v3 = vpop.xlane.xlu0 %438 }
 0x1d9   :  { %v440_v4 = vsub.f32 %v433_v53, %v439_v3 }
 0x1db   :  { %v441_v5 = vmul.f32 1.442695, %v440_v4 }
 0x1dd   :  { %4038 = vpow2.f32 %v441_v5  ;;  %v919_v5 = vsel %vm416_vm0, %v4731_v30, 0 }
 0x1e3   :  { %v4039_v6 = vpop.eup %4038 }
 0x1e4   :  { %v443_v7 = vsel %vm436_vm2, %v4039_v6, 0.0 }
 0x1e5   :  { %444 = vadd.xlane.f32.xlu0 %v443_v7  ;;  %v1038_v7 = vsel %vm416_vm0, %v4781_v61, 0 }
 0x1f9   :  { %513 = vrot.lane.b32.xlu0 %v4755_v43, %s4370_s28 }
 0x201   :  { %648 = vrot.lane.b32.xlu0 %v4712_v23, %s4361_s29 }
 0x209   :  { %702 = vrot.lane.b32.xlu0 %v4716_v25, %s4373_s13 }
 0x211   :  { %758 = vrot.lane.b32.xlu0 %v4716_v25, %s4374_s9 }
 0x219   :  { %968 = vrot.lane.b32.xlu0 %v4743_v36, %s4370_s28 }
 0x221   :  { %1030 = vrot.lane.b32.xlu0 %v4743_v36, %s4371_s4 }
 0x229   :  { %1200 = vrot.lane.b32.xlu0 %v4738_v34, %s4373_s13 }
 0x231   :  { %1256 = vrot.lane.b32.xlu0 %v4738_v34, %s4374_s9 }
 0x239   :  { %1310 = vrot.lane.b32.xlu0 %v4743_v36, %s4375_s0 }
 0x258   :  { %v445_v8 = vpop.xlane.xlu0 %444 }
 0x259   :  { %4040 = vrcp.f32 %v445_v8 }
 0x25f   :  { %v4041_v9 = vpop.eup %4040 }
 0x260   :  { %v447_v10 = vmul.f32 %v4041_v9, %v4039_v6  ;;  %v1318_v6 = vsel %vm416_vm0, %v4787_v0, 0 }
 0x262   :  { %v448_v12 = vpack.c.bf16 %v447_v10, %v447_v10 }
 0x264   :  { %3438 = vmatmul.msk.bf16.vlgmr.msra.gmra.mxu3 %vm436_vm2, %v448_v12 }
 0x26b   :  { %v514_v13 = vpop.permute.xlu0 %513 }
 0x26c   :  { %v519_v14 = vsel %vm452_vm1, %v514_v13, 0 }
 0x26d   :  { %528 = vmatpush.bf16.msrb.mxu1 %v519_v14 }
 0x271   :  { %551 = vmatpush.bf16.xpose.msra.mxu1 %v542_v15 }
 0x273   :  { %v649_v35 = vpop.permute.xlu0 %648 }
 0x274   :  { %3439 = vmatmul.msk.bf16.vlgmr.msrb.gmra.mxu3 %vm416_vm0, %v473_v46  ;;  %v654_v44 = vsel %vm416_vm0, %v649_v35, 0 }
 0x27b   :  { %v703_v38 = vpop.permute.xlu0 %702 }
 0x283   :  { %v759_v40 = vpop.permute.xlu0 %758 }
 0x28b   :  { %v969_v46 = vpop.permute.xlu0 %968 }
 0x293   :  { %v1031_v56 = vpop.permute.xlu0 %1030 }
 0x29b   :  { %v1201_v4 = vpop.permute.xlu0 %1200 }
 0x29c   :  { %v1206_v59 = vsel %vm416_vm0, %v1201_v4, 0 }
 0x2e7   :  { %v4813_v16 = vpop.f32.mrf.mxu3 }
 0x2ef   :  { %v467_v17 = vpop.f32.mrf.mxu3 }
 0x2f7   :  { %v494_v18 = vpop.f32.mrf.mxu3 }
 0x2f8   :  { %v495_v19 = vadd.f32 %v494_v18, %v4771_v51 }
 0x2fa   :  { %v498_v20 = vsel %vm436_vm2, %v495_v19, -inf }
 0x2fb   :  { %499 = vmax.xlane.f32.xlu2 %v498_v20 }
 0x2ff   :  { %v496_v21 = vpop.f32.mrf.mxu3 }
 0x313   :  { %592 = vrot.lane.b32.xlu2 %v4712_v23, %s4372_s8 }
 0x36e   :  { %v500_v22 = vpop.xlane.xlu2 %499 }
 0x36f   :  { %v501_v24 = vsub.f32 %v495_v19, %v500_v22 }
 0x371   :  { %v502_v26 = vmul.f32 1.442695, %v501_v24 }
 0x373   :  { %4042 = vpow2.f32 %v502_v26 }
 0x376   :  { %v593_v27 = vpop.permute.xlu2 %592 }
 0x377   :  { %v598_v28 = vsel %vm416_vm0, %v593_v27, 0 }
 0x378   :  { %607 = vmatpush.bf16.xpose.msra.mxu3 %v598_v28 }
 0x379   :  { %v4043_v31 = vpop.eup %4042 }
 0x37a   :  { %v504_v32 = vsel %vm436_vm2, %v4043_v31, 0.0 }
 0x37b   :  { %505 = vadd.xlane.f32.xlu2 %v504_v32 }
 0x37f   :  { %3443 = vmatmul.msk.bf16.vlgmr.msra.gmra.mxu3 %vm416_vm0, %v591_v57 }
 0x380   :  { %719 = vmatpush.bf16.xpose.msrb.mxu3 %v710_v29  ;;  %v4024_v29 = vld [vmem:[%s5737_s25 + $0x1] ss:$0 sm:$0xff] }
 0x381   :  { %v4896_v32 = vadd.f32 %v4024_v29, %v4768_v49 }
 0x38f   :  { %3447 = vmatmul.msk.bf16.vlgmr.msrb.gmra.mxu3 %vm416_vm0, %v703_v38 }
 0x393   :  { %646 = vrot.lane.b32.xlu2 %v4716_v25, %s4361_s29 }
 0x39b   :  { %816 = vrot.lane.b32.xlu2 %v4712_v23, %s4375_s0 }
 0x3a3   :  { %973 = vrot.lane.b32.xlu2 %v4738_v34, %s4370_s28 }
 0x3ab   :  { %1088 = vrot.lane.b32.xlu2 %v4738_v34, %s4372_s8 }
 0x3b3   :  { %1144 = vrot.lane.b32.xlu2 %v4738_v34, %s4361_s29 }
 0x3bb   :  { %1198 = vrot.lane.b32.xlu2 %v4743_v36, %s4373_s13 }
 0x3c3   :  { %1254 = vrot.lane.b32.xlu2 %v4743_v36, %s4374_s9 }
 0x3ee   :  { %v506_v39 = vpop.xlane.xlu2 %505 }
 0x3ef   :  { %4044 = vrcp.f32 %v506_v39 }
 0x3f5   :  { %v4045_v25 = vpop.eup %4044 }
 0x3f6   :  { %v647_v23 = vpop.permute.xlu2 %646  ;;  %v508_v41 = vmul.f32 %v4045_v25, %v4043_v31 }
 0x3f8   :  { %v509_v42 = vpack.c.bf16 %v508_v41, %v508_v41 }
 0x3fa   :  { %3440 = vmatmul.msk.bf16.vlgmr.msrb.gmra.mxu1 %vm436_vm2, %v509_v42 }
 0x3fb   :  { %663 = vmatpush.bf16.xpose.msrb.mxu1 %v654_v44 }
 0x3fe   :  { %v817_v45 = vpop.permute.xlu2 %816 }
 0x3ff   :  { %v822_v34 = vsel %vm416_vm0, %v817_v45, 0 }
 0x400   :  { %831 = vmatpush.bf16.xpose.msra.mxu3 %v822_v34 }
 0x402   :  { %v609_v48 = vpop.f32.mrf.mxu3 }
 0x403   :  { %v610_v36 = vadd.f32 %v609_v48, %v4771_v51 }
 0x405   :  { %v613_v50 = vsel %vm436_vm2, %v610_v36, -inf }
 0x406   :  { %614 = vmax.xlane.f32.xlu2 %v613_v50  ;;  %v974_v52 = vpop.permute.xlu2 %973 }
 0x407   :  { %v979_v53 = vsel %vm416_vm0, %v974_v52, 0  ;;  %3451 = vmatmul.msk.bf16.vlgmr.msra.gmra.mxu3 %vm416_vm0, %v4779_v60 }
 0x408   :  { %988 = vmatpush.bf16.xpose.msrb.mxu3 %v979_v53 }
 0x40a   :  { %3441 = vmatmul.msk.bf16.vlgmr.msra.gmra.mxu1 %vm416_vm0, %v4774_v54  ;;  %v611_v57 = vpop.f32.mrf.mxu3 }
 0x40b   :  { %775 = vmatpush.bf16.xpose.msra.mxu1 %v766_v55 }
 0x40e   :  { %v1089_v58 = vpop.permute.xlu2 %1088 }
 0x40f   :  { %v1094_v1 = vsel %vm416_vm0, %v1089_v58, 0 }
 0x410   :  { %1103 = vmatpush.bf16.xpose.msra.mxu3 %v1094_v1 }
 0x412   :  { %v721_v2 = vpop.f32.mrf.mxu3 }
 0x413   :  { %v4852_v3 = vadd.f32 %v721_v2, %v4771_v51 }
 0x415   :  { %v725_v60 = vsel %vm436_vm2, %v4852_v3, -inf }
 0x416   :  { %726 = vmax.xlane.f32.xlu2 %v725_v60  ;;  %v1145_v8 = vpop.permute.xlu2 %1144 }
 0x417   :  { %3455 = vmatmul.msk.bf16.vlgmr.msrb.gmra.mxu3 %vm416_vm0, %v969_v46  ;;  %v1150_v30 = vsel %vm416_vm0, %v1145_v8, 0 }
 0x418   :  { %1215 = vmatpush.bf16.xpose.msrb.mxu3 %v1206_v59 }
 0x41a   :  { %3445 = vmatmul.msk.bf16.vlgmr.msrb.gmra.mxu1 %vm416_vm0, %v647_v23  ;;  %v723_v54 = vpop.f32.mrf.mxu3 }
 0x41b   :  { %928 = vmatpush.bf16.xpose.msrb.mxu1 %v919_v5 }
 0x41e   :  { %v1199_v9 = vpop.permute.xlu2 %1198 }
 0x426   :  { %v1255_v10 = vpop.permute.xlu2 %1254 }
 0x427   :  { %3459 = vmatmul.msk.bf16.vlgmr.msra.gmra.mxu3 %vm416_vm0, %v4783_v62  ;;  %v1257_v62 = vpop.permute.xlu0 %1256 }
 0x428   :  { %1327 = vmatpush.bf16.xpose.msra.mxu3 %v1318_v6  ;;  %v1262_v61 = vsel %vm416_vm0, %v1257_v62, 0 }
 0x42a   :  { %3449 = vmatmul.msk.bf16.vlgmr.msra.gmra.mxu1 %vm416_vm0, %v759_v40 }
 0x42b   :  { %1047 = vmatpush.bf16.xpose.msra.mxu1 %v1038_v7 }
 0x42e   :  { %625 = vrot.lane.b32.xlu2 %v4755_v43, %s4372_s8 }
 0x42f   :  { %v1311_v0 = vpop.permute.xlu0 %1310 }
 0x437   :  { %3463 = vmatmul.msk.bf16.vlgmr.msrb.gmra.mxu3 %vm416_vm0, %v1199_v9 }
 0x43a   :  { %3453 = vmatmul.msk.bf16.vlgmr.msrb.gmra.mxu1 %vm416_vm0, %v4736_v33 }
 0x43b   :  { %1159 = vmatpush.bf16.xpose.msrb.mxu1 %v1150_v30 }
 0x447   :  { %3467 = vmatmul.msk.bf16.vlgmr.msra.gmra.mxu3 %vm416_vm0, %v1311_v0 }
 0x44a   :  { %3457 = vmatmul.msk.bf16.vlgmr.msra.gmra.mxu1 %vm416_vm0, %v1031_v56 }
 0x44b   :  { %1271 = vmatpush.bf16.xpose.msra.mxu1 %v1262_v61 }
 0x45a   :  { %3461 = vmatmul.msk.bf16.vlgmr.msrb.gmra.mxu1 %vm416_vm0, %v4785_v63 }
 0x46a   :  { %3465 = vmatmul.msk.bf16.vlgmr.msra.gmra.mxu1 %vm416_vm0, %v1255_v10 }
 0x477   :  { %v4880_v12 = vpop.f32.mrf.mxu1 }
 0x479   :  { %v615_v13 = vpop.xlane.xlu2 %614 }
 0x47a   :  { %v616_v33 = vsub.f32 %v610_v36, %v615_v13 }
 0x47c   :  { %v617_v14 = vmul.f32 1.442695, %v616_v33 }
 0x47e   :  { %4046 = vpow2.f32 %v617_v14 }
 0x47f   :  { %v532_v15 = vpop.f32.mrf.mxu1 }
 0x484   :  { %v4882_v17 = vpop.eup %4046 }
 0x485   :  { %v619_v18 = vsel %vm436_vm2, %v4882_v17, 0.0 }
 0x486   :  { %620 = vadd.xlane.f32.xlu2 %v619_v18 }
 0x487   :  { %v553_v19 = vpop.f32.mrf.mxu1 }
 0x488   :  { %v4921_v1 = vadd.f32 %v553_v19, %v4771_v51 }
 0x489   :  { %v727_v20 = vpop.xlane.xlu2 %726 }
 0x48a   :  { %v833_v21 = vpop.f32.mrf.mxu3  ;;  %v728_v34 = vsub.f32 %v4852_v3, %v727_v20  ;;  %v557_v3 = vsel %vm436_vm2, %v4921_v1, -inf }
 0x48b   :  { %v4887_v63 = vadd.f32 %v833_v21, %v4771_v51 }
 0x48c   :  { %v729_v48 = vmul.f32 1.442695, %v728_v34 }
 0x48d   :  { %v837_v22 = vsel %vm436_vm2, %v4887_v63, -inf }
 0x48e   :  { %838 = vmax.xlane.f32.xlu0 %v837_v22  ;;  %4048 = vpow2.f32 %v729_v48 }
 0x48f   :  { %v555_v24 = vpop.f32.mrf.mxu1 }
 0x491   :  { %v626_v26 = vpop.permute.xlu2 %625 }
 0x492   :  { %v835_v27 = vpop.f32.mrf.mxu3  ;;  %v631_v28 = vsel %vm452_vm1, %v626_v26, 0 }
 0x493   :  { %640 = vmatpush.bf16.msrb.mxu0 %v631_v28 }
 0x494   :  { %v4914_v55 = vpop.eup %4048 }
 0x495   :  { %v731_v57 = vsel %vm436_vm2, %v4914_v55, 0.0 }
 0x497   :  { %v665_v31 = vpop.f32.mrf.mxu1 }
 0x498   :  { %v4935_v8 = vadd.f32 %v665_v31, %v4771_v51  ;;  %v402_v31 = vadd.f32 %v4760_v47, %v230_v37 }
 0x49a   :  { %v990_v35 = vpop.f32.mrf.mxu3  ;;  %v669_v30 = vsel %vm436_vm2, %v4935_v8, -inf }
 0x49b   :  { %v4899_v38 = vadd.f32 %v990_v35, %v4896_v32 }
 0x49d   :  { %v994_v39 = vsel %vm436_vm2, %v4899_v38, -inf }
 0x49e   :  { %995 = vmax.xlane.f32.xlu0 %v994_v39 }
 0x49f   :  { %v667_v25 = vpop.f32.mrf.mxu1 }
 0x4a2   :  { %v992_v40 = vpop.f32.mrf.mxu3 }
 0x4a7   :  { %v777_v23 = vpop.f32.mrf.mxu1 }
 0x4a8   :  { %v4930_v60 = vadd.f32 %v777_v23, %v4771_v51 }
 0x4aa   :  { %v1105_v41 = vpop.f32.mrf.mxu3  ;;  %v781_v54 = vsel %vm436_vm2, %v4930_v60, -inf }
 0x4ab   :  { %v4904_v42 = vadd.f32 %v1105_v41, %v4896_v32 }
 0x4ad   :  { %v1109_v44 = vsel %vm436_vm2, %v4904_v42, -inf }
 0x4ae   :  { %1110 = vmax.xlane.f32.xlu0 %v1109_v44 }
 0x4af   :  { %v779_v49 = vpop.f32.mrf.mxu1 }
 0x4b2   :  { %v1107_v45 = vpop.f32.mrf.mxu3 }
 0x4b7   :  { %v930_v46 = vpop.f32.mrf.mxu1 }
 0x4b8   :  { %v4952_v20 = vadd.f32 %v930_v46, %v4896_v32 }
 0x4ba   :  { %v1217_v36 = vpop.f32.mrf.mxu3 }
 0x4bb   :  { %v4910_v50 = vadd.f32 %v1217_v36, %v4896_v32 }
 0x4bd   :  { %v1221_v52 = vsel %vm436_vm2, %v4910_v50, -inf }
 0x4be   :  { %1222 = vmax.xlane.f32.xlu1 %v1221_v52 }
 0x4bf   :  { %v932_v53 = vpop.f32.mrf.mxu1 }
 0x4c2   :  { %681 = vrot.lane.b32.xlu0 %v4755_v43, %s4361_s29  ;;  %v1219_v56 = vpop.f32.mrf.mxu3 }
 0x4c6   :  { %732 = vadd.xlane.f32.xlu1 %v731_v57 }
 0x4c7   :  { %v1049_v58 = vpop.f32.mrf.mxu1 }
 0x4c8   :  { %v4940_v62 = vadd.f32 %v1049_v58, %v4896_v32 }
 0x4ca   :  { %737 = vrot.lane.b32.xlu0 %v4755_v43, %s4373_s13  ;;  %v4925_v2 = vpop.f32.mrf.mxu3  ;;  %v1053_v61 = vsel %vm436_vm2, %v4940_v62, -inf }
 0x4ce   :  { %558 = vmax.xlane.f32.xlu1 %v557_v3 }
 0x4cf   :  { %v1051_v4 = vpop.f32.mrf.mxu1 }
 0x4d2   :  { %v1331_v59 = vpop.f32.mrf.mxu3 }
 0x4d6   :  { %782 = vmax.xlane.f32.xlu1 %v781_v54 }
 0x4d7   :  { %v1161_v5 = vpop.f32.mrf.mxu1 }
 0x4d8   :  { %v4958_v24 = vadd.f32 %v1161_v5, %v4896_v32 }
 0x4da   :  { %v1165_v27 = vsel %vm436_vm2, %v4958_v24, -inf }
 0x4df   :  { %v1163_v6 = vpop.f32.mrf.mxu1 }
 0x4e7   :  { %v1273_v7 = vpop.f32.mrf.mxu1 }
 0x4e8   :  { %v4967_v29 = vadd.f32 %v1273_v7, %v4896_v32 }
 0x4ea   :  { %v1277_v35 = vsel %vm436_vm2, %v4967_v29, -inf }
 0x4ef   :  { %v1275_v9 = vpop.f32.mrf.mxu1 }
 0x4f4   :  { %670 = vmax.xlane.f32.xlu0 %v669_v30 }
 0x4f9   :  { %v621_v0 = vpop.xlane.xlu2 %620 }
 0x4fa   :  { %4050 = vrcp.f32 %v621_v0  ;;  %v5019_v0 = vadd.f32 %v4925_v2, %v4896_v32 }
 0x4fc   :  { %1054 = vmax.xlane.f32.xlu0 %v1053_v61  ;;  %v1333_v61 = vsel %vm436_vm2, %v5019_v0, -inf }
 0x500   :  { %v4051_v10 = vpop.eup %4050 }
 0x501   :  { %v623_v13 = vmul.f32 %v4051_v10, %v4882_v17  ;;  %v839_v33 = vpop.xlane.xlu0 %838 }
 0x502   :  { %v840_v51 = vsub.f32 %v4887_v63, %v839_v33  ;;  %v934_v63 = vsel %vm436_vm2, %v4952_v20, -inf }
 0x503   :  { %v624_v14 = vpack.c.bf16 %v623_v13, %v623_v13 }
 0x504   :  { %v841_v15 = vmul.f32 1.442695, %v840_v51 }
 0x505   :  { %3444 = vmatmul.msk.bf16.vlgmr.msrb.gmra.mxu0 %vm436_vm2, %v624_v14 }
 0x506   :  { %4052 = vpow2.f32 %v841_v15 }
 0x50c   :  { %v4947_v18 = vpop.eup %4052 }
 0x50d   :  { %v843_v19 = vsel %vm436_vm2, %v4947_v18, 0.0 }
 0x50e   :  { %844 = vadd.xlane.f32.xlu2 %v843_v19 }
 0x511   :  { %v996_v21 = vpop.xlane.xlu0 %995 }
 0x512   :  { %v997_v17 = vsub.f32 %v4899_v38, %v996_v21  ;;  %v4974_v38 = vpack.c.bf16 %v402_v31, %v402_v31 }
 0x514   :  { %v998_v22 = vmul.f32 1.442695, %v997_v17  ;;  %v1007_v39 = vunpack.c.l.b16 %v4974_v38 }
 0x516   :  { %4054 = vpow2.f32 %v998_v22  ;;  %935 = vmax.xlane.f32.xlu2 %v934_v63  ;;  %v4977_v40 = vpack.c.b16 %v1007_v39, %v1007_v39 }
 0x51c   :  { %v4960_v26 = vpop.eup %4054 }
 0x51d   :  { %v1000_v28 = vsel %vm436_vm2, %v4960_v26, 0.0 }
 0x51e   :  { %1166 = vmax.xlane.f32.xlu2 %v1165_v27  ;;  %1001 = vadd.xlane.f32.xlu0 %v1000_v28 }
 0x521   :  { %v1111_v25 = vpop.xlane.xlu0 %1110 }
 0x522   :  { %v1112_v56 = vsub.f32 %v4904_v42, %v1111_v25 }
 0x526   :  { %1278 = vmax.xlane.f32.xlu2 %v1277_v35 }
 0x531   :  { %v4979_v23 = vpop.xlane.xlu1 %1222 }
 0x532   :  { %1065 = vrot.lane.b32.xlu0 %v4977_v40, %s4371_s4 }
 0x534   :  { %v682_v41 = vpop.permute.xlu0 %681 }
 0x535   :  { %v687_v11 = vsel %vm452_vm1, %v682_v41, 0 }
 0x536   :  { %696 = vmatpush.bf16.msrb.mxu2 %v687_v11 }
 0x539   :  { %v733_v37 = vpop.xlane.xlu1 %732 }
 0x53a   :  { %4056 = vrcp.f32 %v733_v37 }
 0x53c   :  { %v738_v47 = vpop.permute.xlu0 %737 }
 0x53d   :  { %v743_v44 = vsel %vm452_vm1, %v738_v47, 0 }
 0x53e   :  { %849 = vrot.lane.b32.xlu2 %v4755_v43, %s4375_s0  ;;  %752 = vmatpush.bf16.msra.mxu0 %v743_v44 }
 0x540   :  { %v4057_v49 = vpop.eup %4056 }
 0x541   :  { %v735_v45 = vmul.f32 %v4057_v49, %v4914_v55  ;;  %v559_v34 = vpop.xlane.xlu1 %558  ;;  %v1113_v55 = vmul.f32 1.442695, %v1112_v56 }
 0x542   :  { %v560_v46 = vsub.f32 %v4921_v1, %v559_v34 }
 0x543   :  { %v736_v48 = vpack.c.bf16 %v735_v45, %v735_v45 }
 0x544   :  { %v561_v36 = vmul.f32 1.442695, %v560_v46 }
 0x545   :  { %3448 = vmatmul.msk.bf16.vlgmr.msra.gmra.mxu0 %vm436_vm2, %v736_v48 }
 0x546   :  { %4058 = vpow2.f32 %v561_v36  ;;  %1009 = vrot.lane.b32.xlu2 %v4977_v40, %s4370_s28 }
 0x547   :  { %4060 = vpow2.f32 %v1113_v55 }
 0x549   :  { %v783_v57 = vpop.xlane.xlu1 %782 }
 0x54a   :  { %v784_v3 = vsub.f32 %v4930_v60, %v783_v57 }
 0x54c   :  { %v4992_v52 = vpop.eup %4058  ;;  %v785_v54 = vmul.f32 1.442695, %v784_v3 }
 0x54d   :  { %v563_v53 = vsel %vm436_vm2, %v4992_v52, 0.0  ;;  %v5001_v59 = vpop.eup %4060 }
 0x54e   :  { %564 = vadd.xlane.f32.xlu1 %v563_v53  ;;  %v1115_v5 = vsel %vm436_vm2, %v5001_v59, 0.0 }
 0x567   :  { %793 = vrot.lane.b32.xlu1 %v4755_v43, %s4374_s9  ;;  %v671_v58 = vpop.xlane.xlu0 %670 }
 0x568   :  { %v672_v1 = vsub.f32 %v4935_v8, %v671_v58 }
 0x56a   :  { %v673_v4 = vmul.f32 1.442695, %v672_v1 }
 0x56c   :  { %4062 = vpow2.f32 %v673_v4 }
 0x56d   :  { %4064 = vpow2.f32 %v785_v54 }
 0x56f   :  { %1116 = vadd.xlane.f32.xlu2 %v1115_v5  ;;  %v1055_v15 = vpop.xlane.xlu0 %1054  ;;  %v950_v5 = vsel %vm452_vm1, %v4974_v38, 0 }
 0x572   :  { %v5005_v42 = vpop.eup %4062 }
 0x573   :  { %v675_v43 = vsel %vm436_vm2, %v5005_v42, 0.0  ;;  %v5009_v6 = vpop.eup %4064 }
 0x574   :  { %676 = vadd.xlane.f32.xlu0 %v675_v43  ;;  %v787_v60 = vsel %vm436_vm2, %v5009_v6, 0.0 }
 0x57c   :  { %788 = vadd.xlane.f32.xlu0 %v787_v60 }
 0x581   :  { %v845_v7 = vpop.xlane.xlu2 %844 }
 0x582   :  { %v5013_v8 = vpop.f32.mrf.mxu0 }
 0x587   :  { %1233 = vrot.lane.b32.xlu2 %v4977_v40, %s4373_s13 }
 0x589   :  { %v936_v9 = vpop.xlane.xlu2 %935 }
 0x58a   :  { %v644_v30 = vpop.f32.mrf.mxu0 }
 0x590   :  { %1121 = vrot.lane.b32.xlu0 %v4977_v40, %s4372_s8 }
 0x591   :  { %1334 = vmax.xlane.f32.xlu1 %v1333_v61  ;;  %v1167_v10 = vpop.xlane.xlu2 %1166  ;;  %v1002_v63 = vpop.xlane.xlu0 %1001 }
 0x592   :  { %v1168_v13 = vsub.f32 %v4958_v24, %v1167_v10  ;;  %v937_v24 = vsub.f32 %v4952_v20, %v936_v9  ;;  %v1056_v20 = vsub.f32 %v4940_v62, %v1055_v15 }
 0x594   :  { %v1169_v33 = vmul.f32 1.442695, %v1168_v13  ;;  %v938_v31 = vmul.f32 1.442695, %v937_v24 }
 0x596   :  { %4066 = vpow2.f32 %v1169_v33 }
 0x597   :  { %4068 = vrcp.f32 %v845_v7 }
 0x598   :  { %4070 = vrcp.f32 %v1002_v63 }
 0x599   :  { %v1279_v51 = vpop.xlane.xlu2 %1278  ;;  %4072 = vpow2.f32 %v938_v31 }
 0x59a   :  { %v1280_v36 = vsub.f32 %v4967_v29, %v1279_v51 }
 0x59c   :  { %v5026_v14 = vpop.eup %4066  ;;  %v1281_v53 = vmul.f32 1.442695, %v1280_v36 }
 0x59d   :  { %v4069_v19 = vpop.eup %4068  ;;  %v1171_v32 = vsel %vm436_vm2, %v5026_v14, 0.0 }
 0x59e   :  { %1172 = vadd.xlane.f32.xlu1 %v1171_v32  ;;  %v847_v2 = vmul.f32 %v4069_v19, %v4947_v18  ;;  %v4071_v35 = vpop.eup %4070  ;;  %v1224_v18 = vsub.f32 %v4910_v50, %v4979_v23  ;;  %v1057_v50 = vmul.f32 1.442695, %v1056_v20 }
 0x59f   :  { %v1004_v39 = vmul.f32 %v4071_v35, %v4960_v26  ;;  %v5038_v11 = vpop.eup %4072 }
 0x5a0   :  { %v848_v22 = vpack.c.bf16 %v847_v2, %v847_v2  ;;  %v1225_v25 = vmul.f32 1.442695, %v1224_v18  ;;  %v940_v37 = vsel %vm436_vm2, %v5038_v11, 0.0 }
 0x5a1   :  { %v850_v21 = vpop.permute.xlu2 %849  ;;  %v1005_v41 = vpack.c.bf16 %v1004_v39, %v1004_v39 }
 0x5a2   :  { %v855_v17 = vsel %vm452_vm1, %v850_v21, 0  ;;  %4074 = vpow2.f32 %v1225_v25 }
 0x5a3   :  { %864 = vmatpush.bf16.msrb.mxu0 %v855_v17  ;;  %4076 = vpow2.f32 %v1057_v50 }
 0x5a6   :  { %3452 = vmatmul.msk.bf16.vlgmr.msrb.gmra.mxu0 %vm436_vm2, %v848_v22 }
 0x5a8   :  { %v5046_v23 = vpop.eup %4074 }
 0x5a9   :  { %v1010_v27 = vpop.permute.xlu2 %1009  ;;  %v1227_v47 = vsel %vm436_vm2, %v5046_v23, 0.0  ;;  %v5052_v49 = vpop.eup %4076 }
 0x5aa   :  { %v1015_v28 = vsel %vm452_vm1, %v1010_v27, 0  ;;  %v1059_v34 = vsel %vm436_vm2, %v5052_v49, 0.0 }
 0x5ab   :  { %1024 = vmatpush.bf16.msra.mxu0 %v1015_v28 }
 0x5b6   :  { %3456 = vmatmul.msk.bf16.vlgmr.msra.gmra.mxu0 %vm436_vm2, %v1005_v41 }
 0x5b7   :  { %1177 = vrot.lane.b32.xlu1 %v4977_v40, %s4361_s29 }
 0x5ba   :  { %941 = vadd.xlane.f32.xlu0 %v940_v37 }
 0x5c1   :  { %v565_v26 = vpop.xlane.xlu1 %564 }
 0x5c2   :  { %4078 = vrcp.f32 %v565_v26  ;;  %v5050_v44 = vpop.f32.mrf.mxu0  ;;  %1228 = vadd.xlane.f32.xlu0 %v1227_v47 }
 0x5c3   :  { %4080 = vpow2.f32 %v1281_v53 }
 0x5c8   :  { %v4079_v45 = vpop.eup %4078 }
 0x5c9   :  { %v567_v62 = vmul.f32 %v4079_v45, %v4992_v52  ;;  %v5060_v57 = vpop.eup %4080  ;;  %v1066_v52 = vpop.permute.xlu0 %1065 }
 0x5ca   :  { %v756_v46 = vpop.f32.mrf.mxu0  ;;  %1060 = vadd.xlane.f32.xlu0 %v1059_v34  ;;  %v1283_v58 = vsel %vm436_vm2, %v5060_v57, 0.0  ;;  %v1071_v10 = vsel %vm452_vm1, %v1066_v52, 0 }
 0x5cb   :  { %v568_v48 = vpack.c.bf16 %v567_v62, %v567_v62 }
 0x5cd   :  { %3442 = vmatmul.msk.bf16.vlgmr.msra.gmra.mxu2 %vm436_vm2, %v568_v48 }
 0x5d9   :  { %v794_v56 = vpop.permute.xlu1 %793 }
 0x5da   :  { %v799_v55 = vsel %vm452_vm1, %v794_v56, 0 }
 0x5db   :  { %808 = vmatpush.bf16.msra.mxu2 %v799_v55 }
 0x5de   :  { %1289 = vrot.lane.b32.xlu0 %v4977_v40, %s4374_s9 }
 0x5e1   :  { %1284 = vadd.xlane.f32.xlu1 %v1283_v58 }
 0x5e2   :  { %v1117_v43 = vpop.xlane.xlu2 %1116 }
 0x5e6   :  { %1345 = vrot.lane.b32.xlu0 %v4977_v40, %s4375_s0 }
 0x5e7   :  { %v677_v29 = vpop.xlane.xlu0 %676 }
 0x5e8   :  { %4082 = vrcp.f32 %v677_v29 }
 0x5ea   :  { %v1234_v30 = vpop.permute.xlu2 %1233 }
 0x5eb   :  { %v1239_v38 = vsel %vm452_vm1, %v1234_v30, 0 }
 0x5ee   :  { %v4083_v1 = vpop.eup %4082 }
 0x5ef   :  { %v679_v3 = vmul.f32 %v4083_v1, %v5005_v42  ;;  %v789_v54 = vpop.xlane.xlu0 %788 }
 0x5f0   :  { %4084 = vrcp.f32 %v789_v54 }
 0x5f1   :  { %v680_v4 = vpack.c.bf16 %v679_v3, %v679_v3  ;;  %4086 = vrcp.f32 %v1117_v43 }
 0x5f3   :  { %3446 = vmatmul.msk.bf16.vlgmr.msrb.gmra.mxu2 %vm436_vm2, %v680_v4 }
 0x5f4   :  { %959 = vmatpush.bf16.msrb.mxu2 %v950_v5 }
 0x5f6   :  { %v4085_v60 = vpop.eup %4084 }
 0x5f7   :  { %v791_v7 = vmul.f32 %v4085_v60, %v5009_v6  ;;  %v4087_v40 = vpop.eup %4086 }
 0x5f8   :  { %v1119_v9 = vmul.f32 %v4087_v40, %v5001_v59 }
 0x5f9   :  { %v792_v61 = vpack.c.bf16 %v791_v7, %v791_v7 }
 0x5fa   :  { %v1120_v51 = vpack.c.bf16 %v1119_v9, %v1119_v9 }
 0x602   :  { %v1122_v42 = vpop.permute.xlu0 %1121 }
 0x603   :  { %v1127_v13 = vsel %vm452_vm1, %v1122_v42, 0  ;;  %3450 = vmatmul.msk.bf16.vlgmr.msra.gmra.mxu2 %vm436_vm2, %v792_v61 }
 0x604   :  { %1080 = vmatpush.bf16.msra.mxu2 %v1071_v10  ;;  %v1335_v33 = vpop.xlane.xlu1 %1334  ;;  %1136 = vmatpush.bf16.msrb.mxu0 %v1127_v13 }
 0x605   :  { %v1336_v6 = vsub.f32 %v5019_v0, %v1335_v33 }
 0x607   :  { %v1337_v15 = vmul.f32 1.442695, %v1336_v6  ;;  %3460 = vmatmul.msk.bf16.vlgmr.msrb.gmra.mxu0 %vm436_vm2, %v1120_v51 }
 0x608   :  { %1248 = vmatpush.bf16.msra.mxu0 %v1239_v38 }
 0x609   :  { %4088 = vpow2.f32 %v1337_v15 }
 0x60f   :  { %v4089_v59 = vpop.eup %4088 }
 0x610   :  { %v1339_v19 = vsel %vm436_vm2, %v4089_v59, 0.0 }
 0x611   :  { %1340 = vadd.xlane.f32.xlu2 %v1339_v19  ;;  %v1173_v17 = vpop.xlane.xlu1 %1172  ;;  %v3861_v19 = vld [vmem:[#allocation2 + $0x30] sm:$0xff] }
 0x623   :  { %v5081_v32 = vpop.f32.mrf.mxu0 }
 0x629   :  { %v1178_v28 = vpop.permute.xlu1 %1177 }
 0x62a   :  { %v1183_v35 = vsel %vm452_vm1, %v1178_v28, 0 }
 0x62b   :  { %v868_v2 = vpop.f32.mrf.mxu0 }
 0x62c   :  { %v3860_v2 = vld [vmem:[#allocation2 + $0x28] sm:$0xff] }
 0x62d   :  { %v942_v21 = vpop.xlane.xlu0 %941 }
 0x62e   :  { %4090 = vrcp.f32 %v942_v21  ;;  %v3859_v21 = vld [vmem:[#allocation2 + $0x20] sm:$0xff] }
 0x633   :  { %v1026_v22 = vpop.f32.mrf.mxu0 }
 0x634   :  { %v4091_v63 = vpop.eup %4090  ;;  %v3953_v24 = vpack.i.bf16 %v1026_v22, %v4880_v12  ;;  %v3857_v22 = vld [vmem:[#allocation2 + $0x10] sm:$0xff] }
 0x635   :  { %v944_v0 = vmul.f32 %v4091_v63, %v5038_v11  ;;  %v1229_v27 = vpop.xlane.xlu0 %1228  ;;  %v3856_v63 = vld [vmem:[#allocation2 + $0x8] sm:$0xff] }
 0x636   :  { %4092 = vrcp.f32 %v1229_v27  ;;  %3954 = vrot.lane.b32.xlu1 %v3953_v24, %s4375_s0  ;;  %v3855_v24 = vld [vmem:[#allocation2] sm:$0xff] }
 0x637   :  { %v945_v31 = vpack.c.bf16 %v944_v0, %v944_v0 }
 0x639   :  { %3454 = vmatmul.msk.bf16.vlgmr.msrb.gmra.mxu2 %vm436_vm2, %v945_v31 }
 0x63a   :  { %1192 = vmatpush.bf16.msrb.mxu2 %v1183_v35 }
 0x63b   :  { %v1028_v18 = vpop.f32.mrf.mxu0 }
 0x63c   :  { %v4093_v39 = vpop.eup %4092 }
 0x63d   :  { %v1231_v25 = vmul.f32 %v4093_v39, %v5046_v23  ;;  %v1061_v41 = vpop.xlane.xlu0 %1060 }
 0x63e   :  { %4094 = vrcp.f32 %v1061_v41 }
 0x63f   :  { %v1232_v12 = vpack.c.bf16 %v1231_v25, %v1231_v25  ;;  %4096 = vrcp.f32 %v1173_v17  ;;  %v3858_v17 = vld [vmem:[#allocation2 + $0x18] sm:$0xff] }
 0x641   :  { %3464 = vmatmul.msk.bf16.vlgmr.msra.gmra.mxu0 %vm436_vm2, %v1232_v12 }
 0x644   :  { %v4095_v11 = vpop.eup %4094 }
 0x645   :  { %v1063_v20 = vmul.f32 %v4095_v11, %v5052_v49  ;;  %v4097_v50 = vpop.eup %4096 }
 0x646   :  { %v1175_v23 = vmul.f32 %v4097_v50, %v5026_v14 }
 0x647   :  { %v1064_v37 = vpack.c.bf16 %v1063_v20, %v1063_v20 }
 0x648   :  { %v1176_v62 = vpack.c.bf16 %v1175_v23, %v1175_v23 }
 0x649   :  { %3458 = vmatmul.msk.bf16.vlgmr.msra.gmra.mxu2 %vm436_vm2, %v1064_v37 }
 0x650   :  { %v586_v26 = vpop.f32.mrf.mxu2  ;;  %v1290_v47 = vpop.permute.xlu0 %1289 }
 0x651   :  { %v1295_v45 = vsel %vm452_vm1, %v1290_v47, 0 }
 0x652   :  { %1304 = vmatpush.bf16.msra.mxu2 %v1295_v45 }
 0x654   :  { %v1285_v34 = vpop.xlane.xlu1 %1284 }
 0x655   :  { %4098 = vrcp.f32 %v1285_v34 }
 0x658   :  { %v588_v46 = vpop.f32.mrf.mxu2  ;;  %v1346_v48 = vpop.permute.xlu0 %1345 }
 0x659   :  { %v1351_v36 = vsel %vm452_vm1, %v1346_v48, 0  ;;  %3462 = vmatmul.msk.bf16.vlgmr.msrb.gmra.mxu2 %vm436_vm2, %v1176_v62 }
 0x65a   :  { %1360 = vmatpush.bf16.msrb.mxu0 %v1351_v36 }
 0x65b   :  { %v4099_v49 = vpop.eup %4098 }
 0x65c   :  { %v1287_v53 = vmul.f32 %v4099_v49, %v5060_v57 }
 0x65e   :  { %v1288_v56 = vpack.c.bf16 %v1287_v53, %v1287_v53 }
 0x669   :  { %3466 = vmatmul.msk.bf16.vlgmr.msra.gmra.mxu2 %vm436_vm2, %v1288_v56 }
 0x676   :  { %v698_v55 = vpop.f32.mrf.mxu2 }
 0x67e   :  { %v700_v52 = vpop.f32.mrf.mxu2 }
 0x684   :  { %v1341_v58 = vpop.xlane.xlu2 %1340  ;;  %v1138_v14 = vpop.f32.mrf.mxu0 }
 0x685   :  { %4100 = vrcp.f32 %v1341_v58  ;;  %v3958_v29 = vpack.i.bf16 %v1138_v14, %v5013_v8 }
 0x686   :  { %v810_v1 = vpop.f32.mrf.mxu2 }
 0x687   :  { %3959 = vrot.lane.b32.xlu2 %v3958_v29, %s4373_s13 }
 0x68b   :  { %v4101_v3 = vpop.eup %4100 }
 0x68c   :  { %v1343_v4 = vmul.f32 %v4101_v3, %v4089_v59  ;;  %v1140_v54 = vpop.f32.mrf.mxu0  ;;  %v3862_v59 = vld [vmem:[#allocation2 + $0x38] sm:$0xff] }
 0x68d   :  { %1470 = vmatpush.bf16.msrb.mxu1 %v3862_v59  ;;  %v4025_v54 = vld [vmem:[%s5739_s21] ss:$0 sm:$0xff]  ;;  %v3882_v59 = vld [vmem:[%s5740_s10 + $0x54] sm:$0xf0]  ;;  %s5741_s21 = sld [smem:[#allocation20_spill]] }
 0x68e   :  { %v1344_v5 = vpack.c.bf16 %v1343_v4, %v1343_v4  ;;  %v812_v43 = vpop.f32.mrf.mxu2 }
 0x690   :  { %3468 = vmatmul.msk.bf16.vlgmr.msrb.gmra.mxu0 %vm436_vm2, %v1344_v5 }
 0x691   :  { %1471 = vmatpush.bf16.msrb.mxu1 %v3861_v19 }
 0x695   :  { %1472 = vmatpush.bf16.msrb.mxu1 %v3860_v2 }
 0x699   :  { %1473 = vmatpush.bf16.msrb.mxu1 %v3859_v21  ;;  %v3575_v21 = vld [vmem:[%s5740_s10 + $0x40] sm:$0xf] }
 0x69d   :  { %1474 = vmatpush.bf16.msrb.mxu1 %v3858_v17  ;;  %v3880_v17 = vld [vmem:[%s5740_s10 + $0x44] sm:$0xf0] }
 0x6a1   :  { %1475 = vmatpush.bf16.msrb.mxu1 %v3857_v22 }
 0x6a5   :  { %1476 = vmatpush.bf16.msrb.mxu1 %v3856_v63  ;;  %v3576_v63 = vor.u32 %v3880_v17, %v3575_v21  ;;  %v3875_v17 = vld [vmem:[%s5740_s10 + $0x24] sm:$0xf] }
 0x6a8   :  { %v3955_v27 = vpop.permute.xlu1 %3954 }
 0x6a9   :  { %1477 = vmatpush.bf16.msrb.mxu1 %v3855_v24  ;;  %v3956_v28 = vunpack.i.l.bf16 %v3955_v27  ;;  %v3957_v18 = vunpack.i.h.bf16 %v3955_v27  ;;  %v3567_v24 = vld [vmem:[%s5740_s10 + $0x30] sm:$0xf] }
 0x6ab   :  { %v898_v41 = vsel %vm416_vm0, %v4813_v16, %v3956_v28  ;;  %v3559_v28 = vld [vmem:[%s5740_s10 + $0x20] sm:$0xf] }
 0x6bc   :  { %v961_v57 = vpop.f32.mrf.mxu2 }
 0x6bd   :  { %v1394_v12 = vsel %vm416_vm0, %v961_v57, %v3957_v18  ;;  %v4180_v57 = vld [vmem:[%s5735_s1] sm:$0xff] }
 0x6be   :  { %v1250_v60 = vpop.f32.mrf.mxu0 }
 0x6bf   :  { %v3963_v7 = vpack.i.bf16 %v1250_v60, %v5050_v44 }
 0x6c1   :  { %3964 = vrot.lane.b32.xlu0 %v3963_v7, %s4372_s8 }
 0x6c4   :  { %v963_v40 = vpop.f32.mrf.mxu2 }
 0x6c6   :  { %v1252_v9 = vpop.f32.mrf.mxu0 }
 0x6c7   :  { %v4181_v9 = vld [vmem:[%s5735_s1 + $0x8] sm:$0xff] }
 0x6cc   :  { %v1082_v30 = vpop.f32.mrf.mxu2 }
 0x6cd   :  { %v3968_v8 = vpack.i.bf16 %v1082_v30, %v586_v26 }
 0x6cf   :  { %3969 = vrot.lane.b32.xlu0 %v3968_v8, %s4374_s9  ;;  %v4376_v8 = vmov 128.0  }
 0x6d0   :  { %4102 = vrcp.f32 %v4376_v8 }
 0x6d4   :  { %v1084_v61 = vpop.f32.mrf.mxu2 }
 0x6d6   :  { %v4103_v61 = vpop.eup %4102 }
 0x6d7   :  { %vm1495_vm9 = vweird.f32 %v4103_v61 }
 0x6dc   :  { %v1194_v42 = vpop.f32.mrf.mxu2 }
 0x6dd   :  { %v3973_v10 = vpack.i.bf16 %v1194_v42, %v698_v55  ;;  %v1491_v42 = vmul.f32 128.0, %v4103_v61 }
 0x6df   :  { %3974 = vrot.lane.b32.xlu0 %v3973_v10, %s4361_s29  ;;  %v3599_v10 = vld [vmem:[%s5740_s10 + $0x70] sm:$0xf] }
 0x6e1   :  { %v3960_v25 = vpop.permute.xlu2 %3959 }
 0x6e2   :  { %v3962_v26 = vunpack.i.h.bf16 %v3960_v25  ;;  %v3961_v47 = vunpack.i.l.bf16 %v3960_v25 }
 0x6e4   :  { %v1196_v13 = vpop.f32.mrf.mxu2 }
 0x6e5   :  { %v3886_v13 = vld [vmem:[%s5740_s10 + $0x74] sm:$0xf0] }
 0x6ec   :  { %v1306_v38 = vpop.f32.mrf.mxu2 }
 0x6ed   :  { %v3978_v33 = vpack.i.bf16 %v1306_v38, %v810_v1  ;;  %v3591_v38 = vld [vmem:[%s5740_s10 + $0x60] sm:$0xf] }
 0x6ef   :  { %3979 = vrot.lane.b32.xlu1 %v3978_v33, %s4371_s4  ;;  %v3600_v33 = vor.u32 %v3886_v13, %v3599_v10  ;;  %v3879_v10 = vld [vmem:[%s5740_s10 + $0x44] sm:$0xf]  ;;  %v3577_v13 = vld [vmem:[%s5740_s10 + $0x48] sm:$0xf0] }
 0x6f1   :  { %1746 = vmatpush.bf16.msrb.mxu3 %v3600_v33 }
 0x6f4   :  { %v1308_v51 = vpop.f32.mrf.mxu2 }
 0x6f5   :  { %v3884_v51 = vld [vmem:[%s5740_s10 + $0x64] sm:$0xf0] }
 0x70d   :  { %v1362_v44 = vpop.f32.mrf.mxu0 }
 0x70e   :  { %v3983_v6 = vpack.i.bf16 %v1362_v44, %v5081_v32  ;;  %v1492_v44 = vsub.f32 1.0, %v1491_v42 }
 0x710   :  { %3984 = vrot.lane.b32.xlu0 %v3983_v6, %s4370_s28  ;;  %v3592_v6 = vor.u32 %v3884_v51, %v3591_v38  ;;  %v1493_v19 = vmul.f32 %v4103_v61, %v1492_v44  ;;  %v3580_v51 = vor.u32 %v3879_v10, %v3577_v13 }
 0x712   :  { %1747 = vmatpush.bf16.msrb.mxu3 %v3592_v6  ;;  %v1494_v22 = vadd.f32 %v4103_v61, %v1493_v19  ;;  %v3877_v6 = vld [vmem:[%s5740_s10 + $0x34] sm:$0xf] }
 0x715   :  { %v1364_v15 = vpop.f32.mrf.mxu0 }
 0x716   :  { %v3583_v15 = vld [vmem:[%s5740_s10 + $0x50] sm:$0xf] }
 0x717   :  { %v3584_v2 = vor.u32 %v3882_v59, %v3583_v15  ;;  %v3569_v15 = vld [vmem:[%s5740_s10 + $0x38] sm:$0xf0] }
 0x718   :  { %v3572_v21 = vor.u32 %v3877_v6, %v3569_v15 }
 0x719   :  { %1748 = vmatpush.bf16.msrb.mxu3 %v3584_v2 }
 0x71d   :  { %1749 = vmatpush.bf16.msrb.mxu3 %v3576_v63 }
 0x733   :  { %v3965_v32 = vpop.permute.xlu0 %3964 }
 0x734   :  { %v3967_v36 = vunpack.i.h.bf16 %v3965_v32  ;;  %v3966_v49 = vunpack.i.l.bf16 %v3965_v32  ;;  %v3878_v32 = vld [vmem:[%s5740_s10 + $0x34] sm:$0xf0] }
 0x735   :  { %v3568_v27 = vor.u32 %v3878_v32, %v3567_v24 }
 0x737   :  { %1750 = vmatpush.bf16.msrb.mxu3 %v3568_v27 }
 0x741   :  { %v3970_v0 = vpop.permute.xlu0 %3969 }
 0x742   :  { %v3972_v31 = vunpack.i.h.bf16 %v3970_v0  ;;  %v3971_v35 = vunpack.i.l.bf16 %v3970_v0  ;;  %v5162_v0 = vsel %vm1495_vm9, %v4103_v61, %v1494_v22  ;;  %v3561_v22 = vld [vmem:[%s5740_s10 + $0x28] sm:$0xf0] }
 0x743   :  { %v3564_v27 = vor.u32 %v3875_v17, %v3561_v22 }
 0x744   :  { %v1395_v11 = vsel %vm899_vm3, %v1394_v12, %v3972_v31  ;;  %v900_v20 = vsel %vm899_vm3, %v898_v41, %v3971_v35  ;;  %v3876_v31 = vld [vmem:[%s5740_s10 + $0x24] sm:$0xf0] }
 0x745   :  { %v902_v23 = vsel %vm901_vm4, %v900_v20, %v3961_v47  ;;  %v1396_v62 = vsel %vm901_vm4, %v1395_v11, %v3962_v26  ;;  %v3874_v26 = vld [vmem:[%s5740_s10 + $0x14] sm:$0xf0] }
 0x751   :  { %v3975_v39 = vpop.permute.xlu0 %3974 }
 0x752   :  { %v3977_v37 = vunpack.i.h.bf16 %v3975_v39  ;;  %v3976_v50 = vunpack.i.l.bf16 %v3975_v39  ;;  %v3560_v39 = vor.u32 %v3876_v31, %v3559_v28  ;;  %v4026_v31 = vld [vmem:[%s5699_s15] ss:$0 sm:$0xff] }
 0x754   :  { %v904_v16 = vsel %vm903_vm5, %v902_v23, %v3976_v50  ;;  %v1397_v34 = vsel %vm903_vm5, %v1396_v62, %v3977_v37  ;;  %1751 = vmatpush.bf16.msrb.mxu3 %v3560_v39  ;;  %v3551_v50 = vld [vmem:[%s5740_s10 + $0x10] sm:$0xf]  ;;  %v3872_v23 = vld [vmem:[%s5740_s10 + $0x4] sm:$0xf0] }
 0x755   :  { %v906_v56 = vsel %vm905_vm6, %v904_v16, %v3966_v49  ;;  %v1398_v55 = vsel %vm905_vm6, %v1397_v34, %v3967_v36  ;;  %v3552_v47 = vor.u32 %v3874_v26, %v3551_v50  ;;  %v3870_v16 = vld [vmem:[#allocation5 + $0x38] sm:$0xff]  ;;  %v5195_v34 = vld [vmem:[%s5741_s21] sm:$0xff]  ;;  %v3545_v26 = vld [vmem:[%s5740_s10 + $0x8] sm:$0xf0] }
 0x756   :  { %1614 = vmatpush.bf16.msrb.mxu2 %v3870_v16  ;;  %v3867_v36 = vld [vmem:[#allocation5 + $0x20] sm:$0xff]  ;;  %v3866_v49 = vld [vmem:[#allocation5 + $0x18] sm:$0xff] }
 0x757   :  { %v3871_v50 = vld [vmem:[%s5740_s10 + $0x4] sm:$0xf]  ;;  %v1648_v16 = vld [vmem:[%s5696_s12] sm:$0x3]  ;;  %s5744_s12 = sld [smem:[#allocation31_spill]] }
 0x758   :  { %1752 = vmatpush.bf16.msrb.mxu3 %v3552_v47 }
 0x761   :  { %v3980_v45 = vpop.permute.xlu1 %3979 }
 0x762   :  { %v3982_v46 = vunpack.i.h.bf16 %v3980_v45  ;;  %v3981_v48 = vunpack.i.l.bf16 %v3980_v45  ;;  %v3543_v45 = vld [vmem:[%s5740_s10] sm:$0xf] }
 0x763   :  { %v3544_v62 = vor.u32 %v3872_v23, %v3543_v45  ;;  %v3548_v45 = vor.u32 %v3871_v50, %v3545_v26 }
 0x764   :  { %v908_v14 = vsel %vm907_vm7, %v906_v56, %v3981_v48  ;;  %v1399_v29 = vsel %vm907_vm7, %v1398_v55, %v3982_v46  ;;  %v3869_v46 = vld [vmem:[#allocation5 + $0x30] sm:$0xff]  ;;  %v3868_v48 = vld [vmem:[#allocation5 + $0x28] sm:$0xff] }
 0x765   :  { %1753 = vmatpush.bf16.msrb.mxu3 %v3544_v62  ;;  %1615 = vmatpush.bf16.msrb.mxu2 %v3869_v46  ;;  %v3864_v56 = vld [vmem:[#allocation5 + $0x8] sm:$0xff]  ;;  %v1650_v46 = vperm.slane %v1648_v16, 0 }
 0x768   :  { %1754 = vmatmul.bf16.vlgmr.msrb.gmra.mxu3 %v5195_v34 }
 0x769   :  { %1616 = vmatpush.bf16.msrb.mxu2 %v3868_v48 }
 0x76d   :  { %1617 = vmatpush.bf16.msrb.mxu2 %v3867_v36 }
 0x771   :  { %1618 = vmatpush.bf16.msrb.mxu2 %v3866_v49 }
 0x782   :  { %v3985_v53 = vpop.permute.xlu0 %3984 }
 0x783   :  { %v3987_v52 = vunpack.i.h.bf16 %v3985_v53  ;;  %v3986_v58 = vunpack.i.l.bf16 %v3985_v53  ;;  %v3865_v53 = vld [vmem:[#allocation5 + $0x10] sm:$0xff] }
 0x784   :  { %1619 = vmatpush.bf16.msrb.mxu2 %v3865_v53 }
 0x785   :  { %v910_v1 = vsel %vm909_vm8, %v908_v14, %v3986_v58  ;;  %v1400_v3 = vsel %vm909_vm8, %v1399_v29, %v3987_v52  ;;  %v3863_v58 = vld [vmem:[#allocation5] sm:$0xff]  ;;  %v5202_v29 = vld [vmem:[%s5741_s21 + $0x8] sm:$0xff] }
 0x786   :  { %v1401_v4 = vpack.c.bf16 %v1400_v3, %v910_v1  ;;  %v3885_v1 = vld [vmem:[%s5740_s10 + $0x74] sm:$0xf]  ;;  %v3601_v3 = vld [vmem:[%s5740_s10 + $0x78] sm:$0xf0]  ;;  %1759 = vmatmul.bf16.gmra.mxu3 %v5202_v29 }
 0x788   :  { %1478 = vmatmul.bf16.vlgmr.msrb.gmra.mxu1 %v1401_v4  ;;  %1620 = vmatpush.bf16.msrb.mxu2 %v3864_v56 }
 0x78c   :  { %1621 = vmatpush.bf16.msrb.mxu2 %v3863_v58 }
 0x7eb   :  { %v1755_v48 = vpop.f32.mrf.mxu3 }
 0x7ec   :  { %v1756_v36 = vadd.f32 %v1755_v48, %v1650_v46 }
 0x7ee   :  { %v1784_v49 = vpack.c.bf16 %v1756_v36, %v1756_v36 }
 0x7f3   :  { %v1757_v53 = vpop.f32.mrf.mxu3 }
 0x7f4   :  { %v1758_v56 = vadd.f32 %v1757_v53, %v1650_v46 }
 0x805   :  { %v1479_v5 = vpop.f32.mrf.mxu1 }
 0x806   :  { %v1480_v43 = vadd.f32 %v4025_v54, %v1479_v5  ;;  %v3883_v5 = vld [vmem:[%s5740_s10 + $0x64] sm:$0xf] }
 0x808   :  { %v1484_v60 = vadd.f32 %v4180_v57, %v1480_v43  ;;  %v3593_v43 = vld [vmem:[%s5740_s10 + $0x68] sm:$0xf0] }
 0x80a   :  { %1486 = vadd.xlane.f32.xlu1 %v1484_v60 }
 0x80d   :  { %v1481_v7 = vpop.f32.mrf.mxu1 }
 0x80e   :  { %v1482_v40 = vadd.f32 %v4025_v54, %v1481_v7  ;;  %v3604_v54 = vor.u32 %v3885_v1, %v3601_v3  ;;  %v1760_v1 = vpop.f32.mrf.mxu3 }
 0x810   :  { %v1485_v30 = vadd.f32 %v4181_v9, %v1482_v40  ;;  %1765 = vmatpush.bf16.msra.mxu0 %v3604_v54  ;;  %v3881_v9 = vld [vmem:[%s5740_s10 + $0x54] sm:$0xf] }
 0x812   :  { %1488 = vadd.xlane.f32.xlu2 %v1485_v30 }
 0x87d   :  { %v1487_v35 = vpop.xlane.xlu1 %1486 }
 0x87e   :  { %v1497_v18 = vmul.f32 %v5162_v0, %v1487_v35  ;;  %v3873_v35 = vld [vmem:[%s5740_s10 + $0x14] sm:$0xf] }
 0x880   :  { %v5171_v25 = vsub.f32 %v1484_v60, %v1497_v18  ;;  %v3596_v60 = vor.u32 %v3883_v5, %v3593_v43  ;;  %v3553_v18 = vld [vmem:[%s5740_s10 + $0x18] sm:$0xf0]  ;;  %v5280_v5 = vperm.slane %v1648_v16, 1 }
 0x882   :  { %v1501_v41 = vmul.f32 %v5171_v25, %v5171_v25  ;;  %1766 = vmatpush.bf16.msra.mxu0 %v3596_v60 }
 0x884   :  { %1503 = vadd.xlane.f32.xlu0 %v1501_v41 }
 0x885   :  { %v1489_v12 = vpop.xlane.xlu2 %1488 }
 0x886   :  { %v1498_v11 = vmul.f32 %v5162_v0, %v1489_v12  ;;  %v3556_v12 = vor.u32 %v3873_v35, %v3553_v18 }
 0x888   :  { %v5176_v20 = vsub.f32 %v1485_v30, %v1498_v11  ;;  %v3585_v30 = vld [vmem:[%s5740_s10 + $0x58] sm:$0xf0]  ;;  %s5745_s10 = smov 128  }
 0x889   :  { %v3588_v42 = vor.u32 %v3881_v9, %v3585_v30  ;;  %v1761_v30 = vadd.f32 %v1760_v1, %v1650_v46 }
 0x88a   :  { %v1502_v37 = vmul.f32 %v5176_v20, %v5176_v20 }
 0x88b   :  { %1767 = vmatpush.bf16.msra.mxu0 %v3588_v42  ;;  %v1786_v13 = vpack.c.bf16 %v1761_v30, %v1761_v30 }
 0x88c   :  { %1505 = vadd.xlane.f32.xlu2 %v1502_v37  ;;  %v4027_v37 = vld [vmem:[%s5700_s16] ss:$0 sm:$0xff] }
 0x88d   :  { %v2274_v6 = vunpack.c.l.b16 %v1786_v13 }
 0x88f   :  { %1768 = vmatpush.bf16.msra.mxu0 %v3580_v51 }
 0x893   :  { %1769 = vmatpush.bf16.msra.mxu0 %v3572_v21 }
 0x897   :  { %1770 = vmatpush.bf16.msra.mxu0 %v3564_v27 }
 0x89b   :  { %1771 = vmatpush.bf16.msra.mxu0 %v3556_v12  ;;  %v5345_v12 = vld [vmem:[%s5743_s11] ss:$0 sm:$0xff] }
 0x89f   :  { %1772 = vmatpush.bf16.msra.mxu0 %v3548_v45 }
 0x8a2   :  { %1773 = vmatmul.bf16.vlgmr.msra.gmra.mxu0 %v5195_v34 }
 0x8b2   :  { %1778 = vmatmul.bf16.gmra.mxu0 %v5202_v29  ;;  %v4028_v29 = vld [vmem:[%s5742_s30] ss:$0 sm:$0xff] }
 0x8f7   :  { %v1504_v55 = vpop.xlane.xlu0 %1503 }
 0x8f8   :  { %v1507_v52 = vmul.f32 %v1504_v55, %v5162_v0  ;;  %v1797_v55 = vunpack.c.l.b16 %v1784_v49 }
 0x8fa   :  { %v1509_v14 = vadd.f32 1e-05, %v1507_v52  ;;  %v1785_v52 = vpack.c.bf16 %v1758_v56, %v1758_v56 }
 0x8fc   :  { %4104 = vrsqrt.f32 %v1509_v14  ;;  %vm1517_vm11 = vweird.f32 %v1509_v14  ;;  %v1798_v58 = vunpack.c.l.b16 %v1785_v52 }
 0x8ff   :  { %v1506_v4 = vpop.xlane.xlu2 %1505 }
 0x900   :  { %v1508_v57 = vmul.f32 %v1506_v4, %v5162_v0 }
 0x902   :  { %v4105_v7 = vpop.eup %4104  ;;  %v1510_v40 = vadd.f32 1e-05, %v1508_v57 }
 0x903   :  { %v1512_v8 = vmul.f32 %v4105_v7, %v1509_v14  ;;  %vm1518_vm10 = vweird.f32 %v4105_v7  ;;  %v1799_v14 = vpack.c.b16 %v1798_v58, %v1797_v55 }
 0x904   :  { %4106 = vrsqrt.f32 %v1510_v40  ;;  %vm1519_vm12 = vmor %vm1517_vm11, %vm1518_vm10  ;;  %vm1527_vm14 = vweird.f32 %v1510_v40 }
 0x905   :  { %v1513_v61 = vmul.f32 %v4105_v7, %v1512_v8  ;;  %1912 = vrot.lane.b32.xlu2 %v1799_v14, %s4371_s4  ;;  %1858 = vrot.lane.b32.xlu1 %v1799_v14, %s4370_s28  ;;  %v1804_v34 = vsel %vm416_vm0, %v1799_v14, 0 }
 0x906   :  { %1813 = vmatpush.bf16.xpose.msra.mxu1 %v1804_v34 }
 0x907   :  { %v1514_v38 = vmul.f32 0.5, %v1513_v61 }
 0x909   :  { %v1515_v33 = vsub.f32 1.5, %v1514_v38 }
 0x90a   :  { %v4107_v44 = vpop.eup %4106 }
 0x90b   :  { %v1516_v59 = vmul.f32 %v4105_v7, %v1515_v33  ;;  %v1522_v19 = vmul.f32 %v4107_v44, %v1510_v40  ;;  %vm1528_vm13 = vweird.f32 %v4107_v44  ;;  %v1762_v40 = vpop.f32.mrf.mxu3 }
 0x90c   :  { %vm1529_vm15 = vmor %vm1527_vm14, %vm1528_vm13  ;;  %v1763_v8 = vadd.f32 %v1762_v40, %v1650_v46 }
 0x90d   :  { %v1523_v2 = vmul.f32 %v4107_v44, %v1522_v19  ;;  %v1520_v63 = vsel %vm1519_vm12, %v4105_v7, %v1516_v59  ;;  %2020 = vrot.lane.b32.xlu2 %v1799_v14, %s4361_s29 }
 0x90e   :  { %v1531_v28 = vmul.f32 %v1520_v63, %v5171_v25  ;;  %v1787_v38 = vpack.c.bf16 %v1763_v8, %v1763_v8 }
 0x90f   :  { %v1524_v24 = vmul.f32 0.5, %v1523_v2 }
 0x910   :  { %v1537_v11 = vmul.f32 %v4026_v31, %v1531_v28  ;;  %v2275_v15 = vunpack.c.l.b16 %v1787_v38 }
 0x911   :  { %v1525_v32 = vsub.f32 1.5, %v1524_v24 }
 0x912   :  { %v5262_v23 = vadd.f32 %v4027_v37, %v1537_v11  ;;  %v5294_v2 = vpack.c.b16 %v2275_v15, %v2274_v6 }
 0x913   :  { %v1526_v39 = vmul.f32 %v4107_v44, %v1525_v32 }
 0x914   :  { %v2281_v56 = vsel %vm416_vm0, %v5294_v2, 0 }
 0x915   :  { %v1530_v41 = vsel %vm1529_vm15, %v4107_v44, %v1526_v39 }
 0x916   :  { %v1532_v25 = vmul.f32 %v1530_v41, %v5176_v20 }
 0x918   :  { %v1538_v47 = vmul.f32 %v4026_v31, %v1532_v25 }
 0x91a   :  { %v5264_v62 = vadd.f32 %v4027_v37, %v1538_v47 }
 0x91c   :  { %v1545_v20 = vpack.c.bf16 %v5264_v62, %v5262_v23 }
 0x91e   :  { %1622 = vmatmul.bf16.vlgmr.msrb.gmra.mxu2 %v1545_v20 }
 0x91f   :  { %v1774_v43 = vpop.f32.mrf.mxu0 }
 0x920   :  { %v1775_v7 = vadd.f32 %v1774_v43, %v5280_v5 }
 0x922   :  { %v1788_v61 = vpack.c.bf16 %v1775_v7, %v1775_v7 }
 0x924   :  { %v1833_v33 = vunpack.c.l.b16 %v1788_v61 }
 0x927   :  { %v1776_v42 = vpop.f32.mrf.mxu0 }
 0x928   :  { %v1777_v10 = vadd.f32 %v1776_v42, %v5280_v5 }
 0x92a   :  { %v1789_v51 = vpack.c.bf16 %v1777_v10, %v1777_v10 }
 0x92c   :  { %v1834_v44 = vunpack.c.l.b16 %v1789_v51 }
 0x92e   :  { %v5290_v59 = vpack.c.b16 %v1834_v44, %v1833_v33 }
 0x930   :  { %1847 = vmatpush.bf16.msra.mxu2 %v5290_v59 }
 0x95f   :  { %v1913_v32 = vpop.permute.xlu2 %1912 }
 0x960   :  { %v1918_v27 = vsel %vm416_vm0, %v1913_v32, 0 }
 0x961   :  { %1927 = vmatpush.bf16.xpose.msra.mxu3 %v1918_v27 }
 0x967   :  { %v2021_v28 = vpop.permute.xlu2 %2020 }
 0x968   :  { %v2026_v31 = vsel %vm416_vm0, %v2021_v28, 0 }
 0x969   :  { %2035 = vmatpush.bf16.xpose.msrb.mxu3 %v2026_v31 }
 0x977   :  { %v1859_v35 = vpop.permute.xlu1 %1858 }
 0x978   :  { %v1864_v18 = vsel %vm416_vm0, %v1859_v35, 0 }
 0x979   :  { %1873 = vmatpush.bf16.xpose.msrb.mxu1 %v1864_v18 }
 0x9a1   :  { %v1623_v3 = vpop.f32.mrf.mxu2 }
 0x9a2   :  { %v1624_v4 = vadd.f32 %v4028_v29, %v1623_v3 }
 0x9a4   :  { %v1628_v54 = vmul.f32 0.25, %v1624_v4 }
 0x9a6   :  { %v1630_v57 = vpack.c.bf16 %v1628_v54, %v1628_v54 }
 0x9a8   :  { %v1854_v60 = vunpack.c.l.b16 %v1630_v57  ;;  %3605 = vmatmul.msk.bf16.vlgmr.msra.gmra.mxu1 %vm416_vm0, %v1630_v57 }
 0x9a9   :  { %v1625_v19 = vpop.f32.mrf.mxu2 }
 0x9aa   :  { %v1855_v9 = vpack.c.b16 %v1854_v60, %v1854_v60  ;;  %v1626_v21 = vadd.f32 %v4028_v29, %v1625_v19 }
 0x9ac   :  { %2072 = vrot.lane.b32.xlu2 %v1855_v9, %s4373_s13  ;;  %1910 = vrot.lane.b32.xlu1 %v1855_v9, %s4371_s4  ;;  %v1629_v17 = vmul.f32 0.25, %v1626_v21 }
 0x9ad   :  { %1856 = vrot.lane.b32.xlu0 %v1855_v9, %s4370_s28 }
 0x9ae   :  { %v5300_v22 = vpack.c.bf16 %v1629_v17, %v1629_v17 }
 0x9b0   :  { %v2331_v63 = vunpack.c.l.b16 %v5300_v22 }
 0x9b2   :  { %v2332_v24 = vpack.c.b16 %v2331_v63, %v2331_v63 }
 0x9b4   :  { %2126 = vrot.lane.b32.xlu2 %v1855_v9, %s4374_s9  ;;  %2074 = vrot.lane.b32.xlu1 %v1799_v14, %s4373_s13 }
 0x9b5   :  { %1966 = vrot.lane.b32.xlu0 %v1799_v14, %s4372_s8 }
 0x9bc   :  { %2551 = vrot.lane.b32.xlu2 %v5294_v2, %s4373_s13  ;;  %2128 = vrot.lane.b32.xlu1 %v1799_v14, %s4374_s9 }
 0x9bd   :  { %1964 = vrot.lane.b32.xlu0 %v1855_v9, %s4372_s8 }
 0x9c4   :  { %2605 = vrot.lane.b32.xlu2 %v5294_v2, %s4374_s9  ;;  %2180 = vrot.lane.b32.xlu1 %v1855_v9, %s4375_s0 }
 0x9c5   :  { %2018 = vrot.lane.b32.xlu0 %v1855_v9, %s4361_s29 }
 0x9cc   :  { %2333 = vrot.lane.b32.xlu2 %v2332_v24, %s4370_s28  ;;  %2389 = vrot.lane.b32.xlu1 %v5294_v2, %s4371_s4 }
 0x9cd   :  { %2182 = vrot.lane.b32.xlu0 %v1799_v14, %s4375_s0 }
 0x9d4   :  { %2387 = vrot.lane.b32.xlu2 %v2332_v24, %s4371_s4  ;;  %2441 = vrot.lane.b32.xlu1 %v2332_v24, %s4372_s8 }
 0x9d5   :  { %2335 = vrot.lane.b32.xlu0 %v5294_v2, %s4370_s28 }
 0x9dc   :  { %1999 = vrot.lane.b32.xlu2 %v5290_v59, %s4372_s8  ;;  %2659 = vrot.lane.b32.xlu1 %v5294_v2, %s4375_s0 }
 0x9dd   :  { %2443 = vrot.lane.b32.xlu0 %v5294_v2, %s4372_s8 }
 0x9e4   :  { %2107 = vrot.lane.b32.xlu2 %v5290_v59, %s4373_s13  ;;  %2495 = vrot.lane.b32.xlu1 %v2332_v24, %s4361_s29 }
 0x9e5   :  { %2497 = vrot.lane.b32.xlu0 %v5294_v2, %s4361_s29 }
 0x9ec   :  { %2053 = vrot.lane.b32.xlu2 %v5290_v59, %s4361_s29  ;;  %2215 = vrot.lane.b32.xlu1 %v5290_v59, %s4375_s0 }
 0x9ed   :  { %2549 = vrot.lane.b32.xlu0 %v2332_v24, %s4373_s13 }
 0x9f4   :  { %2657 = vrot.lane.b32.xlu2 %v2332_v24, %s4375_s0 }
 0x9f5   :  { %2603 = vrot.lane.b32.xlu0 %v2332_v24, %s4374_s9 }
 0x9fd   :  { %1891 = vrot.lane.b32.xlu0 %v5290_v59, %s4370_s28 }
 0xa05   :  { %1945 = vrot.lane.b32.xlu0 %v5290_v59, %s4371_s4 }
 0xa06   :  { %v2073_v47 = vpop.permute.xlu2 %2072 }
 0xa0e   :  { %v2127_v49 = vpop.permute.xlu2 %2126 }
 0xa16   :  { %v2552_v52 = vpop.permute.xlu2 %2551 }
 0xa17   :  { %v2557_v9 = vsel %vm416_vm0, %v2552_v52, 0 }
 0xa1e   :  { %v1911_v39 = vpop.permute.xlu1 %1910  ;;  %v2606_v29 = vpop.permute.xlu2 %2605 }
 0xa1f   :  { %v1857_v41 = vpop.permute.xlu0 %1856  ;;  %3609 = vmatmul.msk.bf16.vlgmr.msra.gmra.mxu3 %vm416_vm0, %v1911_v39  ;;  %v2611_v10 = vsel %vm416_vm0, %v2606_v29, 0 }
 0xa20   :  { %3607 = vmatmul.msk.bf16.vlgmr.msrb.gmra.mxu1 %vm416_vm0, %v1857_v41 }
 0xa25   :  { %v1815_v25 = vpop.f32.mrf.mxu1 }
 0xa26   :  { %v5348_v11 = vadd.f32 %v5345_v12, %v1815_v25  ;;  %v2075_v37 = vpop.permute.xlu1 %2074  ;;  %v2334_v43 = vpop.permute.xlu2 %2333 }
 0xa27   :  { %v1967_v50 = vpop.permute.xlu0 %1966  ;;  %v2080_v26 = vsel %vm416_vm0, %v2075_v37, 0  ;;  %v1779_v25 = vpop.f32.mrf.mxu0 }
 0xa28   :  { %v1972_v45 = vsel %vm416_vm0, %v1967_v50, 0  ;;  %v1819_v20 = vsel %vm416_vm0, %v5348_v11, -inf }
 0xa29   :  { %1981 = vmatpush.bf16.xpose.msra.mxu1 %v1972_v45  ;;  %1820 = vmax.xlane.f32.xlu1 %v1819_v20  ;;  %v1780_v45 = vadd.f32 %v1779_v25, %v5280_v5 }
 0xa2d   :  { %v1817_v16 = vpop.f32.mrf.mxu1 }
 0xa2e   :  { %v2129_v46 = vpop.permute.xlu1 %2128  ;;  %v2388_v40 = vpop.permute.xlu2 %2387 }
 0xa2f   :  { %v1965_v48 = vpop.permute.xlu0 %1964  ;;  %v2134_v36 = vsel %vm416_vm0, %v2129_v46, 0 }
 0xa30   :  { %3611 = vmatmul.msk.bf16.vlgmr.msra.gmra.mxu1 %vm416_vm0, %v1965_v48  ;;  %2143 = vmatpush.bf16.xpose.msra.mxu3 %v2134_v36  ;;  %v1790_v48 = vpack.c.bf16 %v1780_v45, %v1780_v45 }
 0xa31   :  { %2089 = vmatpush.bf16.xpose.msrb.mxu1 %v2080_v26 }
 0xa32   :  { %v2310_v52 = vunpack.c.l.b16 %v1790_v48 }
 0xa36   :  { %v2181_v55 = vpop.permute.xlu1 %2180  ;;  %v5371_v61 = vpop.permute.xlu2 %1999 }
 0xa37   :  { %v2019_v53 = vpop.permute.xlu0 %2018 }
 0xa38   :  { %3613 = vmatmul.msk.bf16.vlgmr.msrb.gmra.mxu3 %vm416_vm0, %v2019_v53 }
 0xa39   :  { %2290 = vmatpush.bf16.xpose.msrb.mxu3 %v2281_v56 }
 0xa3e   :  { %v2390_v34 = vpop.permute.xlu1 %2389  ;;  %v5375_v38 = vpop.permute.xlu2 %2107 }
 0xa3f   :  { %v2183_v58 = vpop.permute.xlu0 %2182  ;;  %v2395_v1 = vsel %vm416_vm0, %v2390_v34, 0 }
 0xa40   :  { %v2188_v14 = vsel %vm416_vm0, %v2183_v58, 0  ;;  %3615 = vmatmul.msk.bf16.vlgmr.msrb.gmra.mxu1 %vm416_vm0, %v2073_v47  ;;  %v1781_v47 = vpop.f32.mrf.mxu0 }
 0xa41   :  { %2197 = vmatpush.bf16.xpose.msra.mxu1 %v2188_v14  ;;  %v1782_v20 = vadd.f32 %v1781_v47, %v5280_v5 }
 0xa46   :  { %v2442_v8 = vpop.permute.xlu1 %2441  ;;  %v2054_v15 = vpop.permute.xlu2 %2053 }
 0xa47   :  { %v2336_v3 = vpop.permute.xlu0 %2335 }
 0xa48   :  { %v2341_v4 = vsel %vm416_vm0, %v2336_v3, 0  ;;  %3617 = vmatmul.msk.bf16.vlgmr.msra.gmra.mxu3 %vm416_vm0, %v2127_v49  ;;  %v1791_v49 = vpack.c.bf16 %v1782_v20, %v1782_v20 }
 0xa49   :  { %2350 = vmatpush.bf16.xpose.msrb.mxu1 %v2341_v4  ;;  %2404 = vmatpush.bf16.xpose.msra.mxu3 %v2395_v1 }
 0xa4a   :  { %v2311_v58 = vunpack.c.l.b16 %v1791_v49 }
 0xa4c   :  { %v5417_v14 = vpack.c.b16 %v2311_v58, %v2310_v52 }
 0xa4e   :  { %v2660_v13 = vpop.permute.xlu1 %2659  ;;  %v2658_v19 = vpop.permute.xlu2 %2657 }
 0xa4f   :  { %v2444_v54 = vpop.permute.xlu0 %2443  ;;  %v2665_v33 = vsel %vm416_vm0, %v2660_v13, 0 }
 0xa50   :  { %v2449_v57 = vsel %vm416_vm0, %v2444_v54, 0  ;;  %3619 = vmatmul.msk.bf16.vlgmr.msra.gmra.mxu1 %vm416_vm0, %v2181_v55 }
 0xa51   :  { %2458 = vmatpush.bf16.xpose.msra.mxu1 %v2449_v57 }
 0xa56   :  { %v2496_v44 = vpop.permute.xlu1 %2495 }
 0xa57   :  { %v2498_v60 = vpop.permute.xlu0 %2497 }
 0xa58   :  { %v2503_v7 = vsel %vm416_vm0, %v2498_v60, 0  ;;  %3621 = vmatmul.msk.bf16.vlgmr.msrb.gmra.mxu3 %vm416_vm0, %v5300_v22 }
 0xa59   :  { %2512 = vmatpush.bf16.xpose.msrb.mxu3 %v2503_v7 }
 0xa5e   :  { %v5383_v2 = vpop.permute.xlu1 %2215 }
 0xa5f   :  { %v2550_v30 = vpop.permute.xlu0 %2549 }
 0xa60   :  { %3623 = vmatmul.msk.bf16.vlgmr.msrb.gmra.mxu1 %vm416_vm0, %v2334_v43 }
 0xa61   :  { %2566 = vmatpush.bf16.xpose.msrb.mxu1 %v2557_v9  ;;  %v5431_v9 = vld [vmem:[%s5743_s11 + $0x1] ss:$0 sm:$0xff] }
 0xa67   :  { %v2604_v42 = vpop.permute.xlu0 %2603 }
 0xa68   :  { %3625 = vmatmul.msk.bf16.vlgmr.msra.gmra.mxu3 %vm416_vm0, %v2388_v40 }
 0xa69   :  { %2620 = vmatpush.bf16.xpose.msra.mxu3 %v2611_v10 }
 0xa6f   :  { %v1892_v51 = vpop.permute.xlu0 %1891 }
 0xa70   :  { %3627 = vmatmul.msk.bf16.vlgmr.msra.gmra.mxu1 %vm416_vm0, %v2442_v8  ;;  %1904 = vmatpush.bf16.msrb.mxu2 %v1892_v51 }
 0xa71   :  { %2674 = vmatpush.bf16.xpose.msra.mxu1 %v2665_v33 }
 0xa77   :  { %v1946_v6 = vpop.permute.xlu0 %1945 }
 0xa78   :  { %3629 = vmatmul.msk.bf16.vlgmr.msrb.gmra.mxu3 %vm416_vm0, %v2496_v44  ;;  %1958 = vmatpush.bf16.msrb.mxu0 %v1946_v6 }
 0xa7c   :  { %2066 = vmatpush.bf16.msra.mxu0 %v2054_v15 }
 0xa80   :  { %3631 = vmatmul.msk.bf16.vlgmr.msrb.gmra.mxu1 %vm416_vm0, %v2550_v30 }
 0xa88   :  { %3633 = vmatmul.msk.bf16.vlgmr.msra.gmra.mxu3 %vm416_vm0, %v2604_v42 }
 0xa90   :  { %3635 = vmatmul.msk.bf16.vlgmr.msra.gmra.mxu1 %vm416_vm0, %v2658_v19 }
 0xa9c   :  { %v1821_v21 = vpop.xlane.xlu1 %1820 }
 0xa9d   :  { %v1875_v17 = vpop.f32.mrf.mxu1  ;;  %v1822_v22 = vsub.f32 %v5348_v11, %v1821_v21 }
 0xa9e   :  { %v5387_v63 = vadd.f32 %v5345_v12, %v1875_v17 }
 0xa9f   :  { %v1823_v24 = vmul.f32 1.442695, %v1822_v22 }
 0xaa0   :  { %v1879_v32 = vsel %vm416_vm0, %v5387_v63, -inf }
 0xaa1   :  { %4108 = vpow2.f32 %v1823_v24  ;;  %1880 = vmax.xlane.f32.xlu0 %v1879_v32 }
 0xaa2   :  { %v1929_v27 = vpop.f32.mrf.mxu3 }
 0xaa3   :  { %v5392_v28 = vadd.f32 %v5345_v12, %v1929_v27 }
 0xaa5   :  { %v1877_v31 = vpop.f32.mrf.mxu1  ;;  %v1933_v35 = vsel %vm416_vm0, %v5392_v28, -inf }
 0xaa6   :  { %1934 = vmax.xlane.f32.xlu1 %v1933_v35 }
 0xaa7   :  { %v5396_v18 = vpop.eup %4108 }
 0xaa8   :  { %v1825_v39 = vsel %vm416_vm0, %v5396_v18, 0.0 }
 0xaa9   :  { %1826 = vadd.xlane.f32.xlu2 %v1825_v39 }
 0xaaa   :  { %v1931_v41 = vpop.f32.mrf.mxu3 }
 0xaad   :  { %v1983_v11 = vpop.f32.mrf.mxu1 }
 0xaae   :  { %v5401_v37 = vadd.f32 %v5345_v12, %v1983_v11 }
 0xab0   :  { %v1987_v50 = vsel %vm416_vm0, %v5401_v37, -inf }
 0xab1   :  { %1988 = vmax.xlane.f32.xlu2 %v1987_v50 }
 0xab5   :  { %v1985_v26 = vpop.f32.mrf.mxu1 }
 0xabb   :  { %v2037_v16 = vpop.f32.mrf.mxu3 }
 0xabc   :  { %v5408_v46 = vadd.f32 %v5345_v12, %v2037_v16 }
 0xabd   :  { %v2091_v36 = vpop.f32.mrf.mxu1 }
 0xabe   :  { %v5411_v53 = vadd.f32 %v5345_v12, %v2091_v36  ;;  %v2041_v56 = vsel %vm416_vm0, %v5408_v46, -inf }
 0xabf   :  { %2042 = vmax.xlane.f32.xlu1 %v2041_v56 }
 0xac0   :  { %v2095_v55 = vsel %vm416_vm0, %v5411_v53, -inf }
 0xac1   :  { %2096 = vmax.xlane.f32.xlu0 %v2095_v55 }
 0xac3   :  { %v2039_v5 = vpop.f32.mrf.mxu3 }
 0xac5   :  { %v2093_v34 = vpop.f32.mrf.mxu1 }
 0xac9   :  { %2368 = vrot.lane.b32.xlu2 %v5417_v14, %s4370_s28 }
 0xacb   :  { %v2145_v29 = vpop.f32.mrf.mxu3 }
 0xacc   :  { %v5422_v1 = vadd.f32 %v5345_v12, %v2145_v29 }
 0xacd   :  { %v2199_v3 = vpop.f32.mrf.mxu1 }
 0xace   :  { %v2149_v4 = vsel %vm416_vm0, %v5422_v1, -inf  ;;  %v5449_v15 = vadd.f32 %v5345_v12, %v2199_v3 }
 0xacf   :  { %2150 = vmax.xlane.f32.xlu1 %v2149_v4 }
 0xad0   :  { %v2203_v24 = vsel %vm416_vm0, %v5449_v15, -inf }
 0xad3   :  { %v2147_v54 = vpop.f32.mrf.mxu3 }
 0xad5   :  { %2161 = vrot.lane.b32.xlu0 %v5290_v59, %s4374_s9  ;;  %v2201_v43 = vpop.f32.mrf.mxu1 }
 0xadb   :  { %v2292_v57 = vpop.f32.mrf.mxu3 }
 0xadc   :  { %v5434_v8 = vadd.f32 %v5431_v9, %v2292_v57 }
 0xadd   :  { %v2352_v60 = vpop.f32.mrf.mxu1 }
 0xade   :  { %v2296_v13 = vsel %vm416_vm0, %v5434_v8, -inf  ;;  %v5444_v51 = vadd.f32 %v5431_v9, %v2352_v60 }
 0xae0   :  { %v2356_v6 = vsel %vm416_vm0, %v5444_v51, -inf }
 0xae3   :  { %v2294_v7 = vpop.f32.mrf.mxu3 }
 0xae5   :  { %v2354_v40 = vpop.f32.mrf.mxu1 }
 0xaeb   :  { %v2406_v30 = vpop.f32.mrf.mxu3 }
 0xaec   :  { %v5464_v27 = vadd.f32 %v5431_v9, %v2406_v30 }
 0xaed   :  { %v2460_v42 = vpop.f32.mrf.mxu1 }
 0xaee   :  { %v5437_v10 = vadd.f32 %v5431_v9, %v2460_v42  ;;  %v2410_v39 = vsel %vm416_vm0, %v5464_v27, -inf }
 0xaf0   :  { %v2464_v59 = vsel %vm416_vm0, %v5437_v10, -inf }
 0xaf1   :  { %2465 = vmax.xlane.f32.xlu1 %v2464_v59 }
 0xaf2   :  { %2297 = vmax.xlane.f32.xlu2 %v2296_v13 }
 0xaf3   :  { %v2408_v33 = vpop.f32.mrf.mxu3 }
 0xaf5   :  { %v2462_v44 = vpop.f32.mrf.mxu1 }
 0xafa   :  { %2357 = vmax.xlane.f32.xlu2 %v2356_v6 }
 0xafb   :  { %v2514_v19 = vpop.f32.mrf.mxu3 }
 0xafc   :  { %v5452_v21 = vadd.f32 %v5431_v9, %v2514_v19 }
 0xafd   :  { %v2568_v17 = vpop.f32.mrf.mxu1 }
 0xafe   :  { %v5455_v22 = vadd.f32 %v5431_v9, %v2568_v17  ;;  %v2518_v12 = vsel %vm416_vm0, %v5452_v21, -inf }
 0xaff   :  { %2204 = vmax.xlane.f32.xlu0 %v2203_v24 }
 0xb00   :  { %v2572_v32 = vsel %vm416_vm0, %v5455_v22, -inf }
 0xb01   :  { %2573 = vmax.xlane.f32.xlu1 %v2572_v32 }
 0xb02   :  { %2519 = vmax.xlane.f32.xlu2 %v2518_v12 }
 0xb03   :  { %v2516_v31 = vpop.f32.mrf.mxu3 }
 0xb05   :  { %v2570_v35 = vpop.f32.mrf.mxu1 }
 0xb07   :  { %2411 = vmax.xlane.f32.xlu0 %v2410_v39 }
 0xb0b   :  { %v2622_v41 = vpop.f32.mrf.mxu3 }
 0xb0c   :  { %v5469_v25 = vadd.f32 %v5431_v9, %v2622_v41 }
 0xb0d   :  { %v2676_v11 = vpop.f32.mrf.mxu1 }
 0xb0e   :  { %v2626_v50 = vsel %vm416_vm0, %v5469_v25, -inf  ;;  %v5502_v42 = vadd.f32 %v5431_v9, %v2676_v11 }
 0xb0f   :  { %2627 = vmax.xlane.f32.xlu2 %v2626_v50 }
 0xb10   :  { %v2680_v13 = vsel %vm416_vm0, %v5502_v42, -inf }
 0xb13   :  { %v2624_v26 = vpop.f32.mrf.mxu3 }
 0xb14   :  { %v1881_v47 = vpop.xlane.xlu0 %1880 }
 0xb15   :  { %v1882_v45 = vsub.f32 %v5387_v63, %v1881_v47  ;;  %v2678_v20 = vpop.f32.mrf.mxu1 }
 0xb17   :  { %v1883_v16 = vmul.f32 1.442695, %v1882_v45 }
 0xb19   :  { %4110 = vpow2.f32 %v1883_v16  ;;  %v1935_v48 = vpop.xlane.xlu1 %1934 }
 0xb1a   :  { %v1936_v36 = vsub.f32 %v5392_v28, %v1935_v48 }
 0xb1b   :  { %2476 = vrot.lane.b32.xlu0 %v5417_v14, %s4372_s8 }
 0xb1c   :  { %v1937_v49 = vmul.f32 1.442695, %v1936_v36  ;;  %v1827_v56 = vpop.xlane.xlu2 %1826 }
 0xb1d   :  { %4112 = vrcp.f32 %v1827_v56 }
 0xb1e   :  { %4114 = vpow2.f32 %v1937_v49 }
 0xb1f   :  { %v5477_v55 = vpop.eup %4110 }
 0xb20   :  { %v1885_v52 = vsel %vm416_vm0, %v5477_v55, 0.0 }
 0xb21   :  { %1886 = vadd.xlane.f32.xlu2 %v1885_v52 }
 0xb23   :  { %v4113_v63 = vpop.eup %4112 }
 0xb24   :  { %v5481_v58 = vpop.eup %4114  ;;  %v1829_v5 = vmul.f32 %v4113_v63, %v5396_v18  ;;  %v1989_v34 = vpop.xlane.xlu2 %1988 }
 0xb25   :  { %v1990_v28 = vsub.f32 %v5401_v37, %v1989_v34  ;;  %v1939_v29 = vsel %vm416_vm0, %v5481_v58, 0.0 }
 0xb26   :  { %v1830_v3 = vpack.c.bf16 %v1829_v5, %v1829_v5  ;;  %1940 = vadd.xlane.f32.xlu1 %v1939_v29 }
 0xb27   :  { %v1991_v4 = vmul.f32 1.442695, %v1990_v28 }
 0xb28   :  { %3606 = vmatmul.msk.bf16.vlgmr.msra.gmra.mxu2 %vm416_vm0, %v1830_v3 }
 0xb29   :  { %4116 = vpow2.f32 %v1991_v4  ;;  %2012 = vmatpush.bf16.msra.mxu2 %v5371_v61 }
 0xb2c   :  { %v5515_v19 = vpop.permute.xlu2 %2368 }
 0xb2f   :  { %v5489_v54 = vpop.eup %4116 }
 0xb30   :  { %v1993_v43 = vsel %vm416_vm0, %v5489_v54, 0.0 }
 0xb31   :  { %1994 = vadd.xlane.f32.xlu1 %v1993_v43 }
 0xb32   :  { %v2043_v18 = vpop.xlane.xlu1 %2042 }
 0xb33   :  { %v2044_v37 = vsub.f32 %v5408_v46, %v2043_v18 }
 0xb34   :  { %v2097_v57 = vpop.xlane.xlu0 %2096 }
 0xb35   :  { %v2045_v60 = vmul.f32 1.442695, %v2044_v37  ;;  %v2098_v7 = vsub.f32 %v5411_v53, %v2097_v57 }
 0xb37   :  { %4118 = vpow2.f32 %v2045_v60  ;;  %v2099_v40 = vmul.f32 1.442695, %v2098_v7 }
 0xb39   :  { %2584 = vrot.lane.b32.xlu2 %v5417_v14, %s4373_s13  ;;  %4120 = vpow2.f32 %v2099_v40 }
 0xb3d   :  { %v5497_v30 = vpop.eup %4118 }
 0xb3e   :  { %v2047_v61 = vsel %vm416_vm0, %v5497_v30, 0.0 }
 0xb3f   :  { %2048 = vadd.xlane.f32.xlu1 %v2047_v61  ;;  %v5504_v59 = vpop.eup %4120 }
 0xb40   :  { %v2101_v44 = vsel %vm416_vm0, %v5504_v59, 0.0 }
 0xb42   :  { %v2151_v46 = vpop.xlane.xlu1 %2150 }
 0xb43   :  { %v2152_v53 = vsub.f32 %v5422_v1, %v2151_v46 }
 0xb45   :  { %v2153_v33 = vmul.f32 1.442695, %v2152_v53  ;;  %2681 = vmax.xlane.f32.xlu0 %v2680_v13 }
 0xb47   :  { %4122 = vpow2.f32 %v2153_v33  ;;  %2102 = vadd.xlane.f32.xlu1 %v2101_v44  ;;  %v2162_v35 = vpop.permute.xlu0 %2161 }
 0xb4d   :  { %v5511_v6 = vpop.eup %4122 }
 0xb4e   :  { %v2155_v9 = vsel %vm416_vm0, %v5511_v6, 0.0 }
 0xb4f   :  { %2156 = vadd.xlane.f32.xlu1 %v2155_v9 }
 0xb64   :  { %v2466_v17 = vpop.xlane.xlu1 %2465 }
 0xb65   :  { %v2467_v1 = vsub.f32 %v5437_v10, %v2466_v17  ;;  %v2298_v24 = vpop.xlane.xlu2 %2297 }
 0xb66   :  { %v2299_v32 = vsub.f32 %v5434_v8, %v2298_v24 }
 0xb67   :  { %v2468_v12 = vmul.f32 1.442695, %v2467_v1 }
 0xb68   :  { %v2300_v31 = vmul.f32 1.442695, %v2299_v32 }
 0xb69   :  { %4124 = vpow2.f32 %v2468_v12 }
 0xb6a   :  { %4126 = vpow2.f32 %v2300_v31 }
 0xb6d   :  { %v2358_v16 = vpop.xlane.xlu2 %2357 }
 0xb6f   :  { %v5519_v39 = vpop.eup %4124 }
 0xb70   :  { %v5521_v41 = vpop.eup %4126  ;;  %v2470_v11 = vsel %vm416_vm0, %v5519_v39, 0.0 }
 0xb71   :  { %2471 = vadd.xlane.f32.xlu2 %v2470_v11  ;;  %v2302_v50 = vsel %vm416_vm0, %v5521_v41, 0.0 }
 0xb72   :  { %v2205_v10 = vpop.xlane.xlu0 %2204  ;;  %2303 = vadd.xlane.f32.xlu0 %v2302_v50 }
 0xb73   :  { %v2206_v8 = vsub.f32 %v5449_v15, %v2205_v10 }
 0xb74   :  { %v2574_v26 = vpop.xlane.xlu1 %2573 }
 0xb75   :  { %v2207_v47 = vmul.f32 1.442695, %v2206_v8  ;;  %v2575_v45 = vsub.f32 %v5455_v22, %v2574_v26  ;;  %v5537_v15 = vpop.xlane.xlu2 %2519 }
 0xb77   :  { %4128 = vpow2.f32 %v2207_v47  ;;  %v2576_v20 = vmul.f32 1.442695, %v2575_v45 }
 0xb79   :  { %4130 = vpow2.f32 %v2576_v20 }
 0xb7a   :  { %v2412_v57 = vpop.xlane.xlu0 %2411 }
 0xb7d   :  { %v5529_v48 = vpop.eup %4128 }
 0xb7e   :  { %v2209_v36 = vsel %vm416_vm0, %v5529_v48, 0.0 }
 0xb7f   :  { %v5533_v49 = vpop.eup %4130  ;;  %2210 = vadd.xlane.f32.xlu1 %v2209_v36 }
 0xb80   :  { %v2578_v56 = vsel %vm416_vm0, %v5533_v49, 0.0 }
 0xb81   :  { %2579 = vadd.xlane.f32.xlu0 %v2578_v56 }
 0xb82   :  { %v2628_v22 = vpop.xlane.xlu2 %2627 }
 0xb83   :  { %v2629_v3 = vsub.f32 %v5469_v25, %v2628_v22 }
 0xb85   :  { %v2630_v18 = vmul.f32 1.442695, %v2629_v3 }
 0xb89   :  { %2530 = vrot.lane.b32.xlu2 %v5417_v14, %s4361_s29 }
 0xb94   :  { %v1887_v52 = vpop.xlane.xlu2 %1886 }
 0xb95   :  { %4132 = vrcp.f32 %v1887_v52 }
 0xb98   :  { %2422 = vrot.lane.b32.xlu1 %v5417_v14, %s4371_s4 }
 0xb99   :  { %v1941_v63 = vpop.xlane.xlu1 %1940 }
 0xb9a   :  { %4134 = vrcp.f32 %v1941_v63 }
 0xb9b   :  { %v4133_v5 = vpop.eup %4132 }
 0xb9c   :  { %v1889_v34 = vmul.f32 %v4133_v5, %v5477_v55  ;;  %v2585_v22 = vpop.permute.xlu2 %2584 }
 0xb9e   :  { %v1890_v28 = vpack.c.bf16 %v1889_v34, %v1889_v34 }
 0xba0   :  { %v4135_v29 = vpop.eup %4134  ;;  %3608 = vmatmul.msk.bf16.vlgmr.msrb.gmra.mxu2 %vm416_vm0, %v1890_v28 }
 0xba1   :  { %v1943_v4 = vmul.f32 %v4135_v29, %v5481_v58  ;;  %2120 = vmatpush.bf16.msrb.mxu2 %v5375_v38  ;;  %v2359_v58 = vsub.f32 %v5444_v51, %v2358_v16  ;;  %v5555_v38 = vpop.permute.xlu0 %2476 }
 0xba3   :  { %v1944_v43 = vpack.c.bf16 %v1943_v4, %v1943_v4  ;;  %v2360_v13 = vmul.f32 1.442695, %v2359_v58 }
 0xba4   :  { %v1995_v37 = vpop.xlane.xlu1 %1994 }
 0xba5   :  { %4136 = vrcp.f32 %v1995_v37  ;;  %3610 = vmatmul.msk.bf16.vlgmr.msrb.gmra.mxu0 %vm416_vm0, %v1944_v43 }
 0xba6   :  { %2174 = vmatpush.bf16.msrb.mxu0 %v2162_v35  ;;  %4138 = vpow2.f32 %v2630_v18 }
 0xbab   :  { %v4137_v55 = vpop.eup %4136  ;;  %v5549_v60 = vpop.f32.mrf.mxu2 }
 0xbac   :  { %v1997_v25 = vmul.f32 %v4137_v55, %v5489_v54  ;;  %v5552_v7 = vpop.eup %4138  ;;  %v2413_v54 = vsub.f32 %v5464_v27, %v2412_v57  ;;  %v2521_v27 = vsub.f32 %v5452_v21, %v5537_v15 }
 0xbad   :  { %v2632_v61 = vsel %vm416_vm0, %v5552_v7, 0.0 }
 0xbae   :  { %v1998_v40 = vpack.c.bf16 %v1997_v25, %v1997_v25  ;;  %v2522_v11 = vmul.f32 1.442695, %v2521_v27 }
 0xbb0   :  { %3612 = vmatmul.msk.bf16.vlgmr.msra.gmra.mxu2 %vm416_vm0, %v1998_v40 }
 0xbb1   :  { %2228 = vmatpush.bf16.msra.mxu2 %v5383_v2  ;;  %v2414_v2 = vmul.f32 1.442695, %v2413_v54 }
 0xbb2   :  { %2633 = vadd.xlane.f32.xlu2 %v2632_v61  ;;  %v2049_v46 = vpop.xlane.xlu1 %2048 }
 0xbb3   :  { %4140 = vrcp.f32 %v2049_v46  ;;  %v1851_v53 = vpop.f32.mrf.mxu2 }
 0xbb4   :  { %4142 = vpow2.f32 %v2360_v13 }
 0xbb8   :  { %v2682_v33 = vpop.xlane.xlu0 %2681 }
 0xbb9   :  { %v4141_v44 = vpop.eup %4140  ;;  %v2683_v51 = vsub.f32 %v5502_v42, %v2682_v33 }
 0xbba   :  { %v2051_v9 = vmul.f32 %v4141_v44, %v5497_v30  ;;  %v2103_v17 = vpop.xlane.xlu1 %2102  ;;  %v4143_v32 = vpop.eup %4142 }
 0xbbb   :  { %v2684_v1 = vmul.f32 1.442695, %v2683_v51  ;;  %4144 = vrcp.f32 %v2103_v17  ;;  %v2362_v42 = vsel %vm416_vm0, %v4143_v32, 0.0 }
 0xbbc   :  { %v2052_v24 = vpack.c.bf16 %v2051_v9, %v2051_v9 }
 0xbbd   :  { %4146 = vpow2.f32 %v2684_v1 }
 0xbbe   :  { %3614 = vmatmul.msk.bf16.vlgmr.msra.gmra.mxu0 %vm416_vm0, %v2052_v24  ;;  %4148 = vpow2.f32 %v2414_v2 }
 0xbbf   :  { %2324 = vmatpush.bf16.msra.mxu0 %v5417_v14 }
 0xbc1   :  { %v4145_v12 = vpop.eup %4144 }
 0xbc2   :  { %v2105_v30 = vmul.f32 %v4145_v12, %v5504_v59  ;;  %2363 = vadd.xlane.f32.xlu1 %v2362_v42  ;;  %v2157_v31 = vpop.xlane.xlu1 %2156 }
 0xbc3   :  { %v5570_v35 = vpop.eup %4146  ;;  %4150 = vrcp.f32 %v2157_v31 }
 0xbc4   :  { %v2106_v50 = vpack.c.bf16 %v2105_v30, %v2105_v30  ;;  %v2686_v10 = vsel %vm416_vm0, %v5570_v35, 0.0  ;;  %v4149_v8 = vpop.eup %4148  ;;  %4152 = vpow2.f32 %v2522_v11 }
 0xbc5   :  { %2687 = vadd.xlane.f32.xlu0 %v2686_v10  ;;  %v2416_v59 = vsel %vm416_vm0, %v4149_v8, 0.0 }
 0xbc6   :  { %3616 = vmatmul.msk.bf16.vlgmr.msrb.gmra.mxu2 %vm416_vm0, %v2106_v50 }
 0xbc7   :  { %2381 = vmatpush.bf16.msrb.mxu2 %v5515_v19 }
 0xbc9   :  { %v4151_v21 = vpop.eup %4150 }
 0xbca   :  { %v2159_v26 = vmul.f32 %v4151_v21, %v5511_v6  ;;  %2417 = vadd.xlane.f32.xlu1 %v2416_v59  ;;  %v4153_v45 = vpop.eup %4152 }
 0xbcb   :  { %v2524_v20 = vsel %vm416_vm0, %v4153_v45, 0.0 }
 0xbcc   :  { %v2160_v47 = vpack.c.bf16 %v2159_v26, %v2159_v26 }
 0xbce   :  { %3618 = vmatmul.msk.bf16.vlgmr.msrb.gmra.mxu0 %vm416_vm0, %v2160_v47 }
 0xbd2   :  { %2525 = vadd.xlane.f32.xlu1 %v2524_v20 }
 0xbd9   :  { %2638 = vrot.lane.b32.xlu0 %v5417_v14, %s4374_s9 }
 0xbe4   :  { %v2472_v5 = vpop.xlane.xlu2 %2471 }
 0xbe5   :  { %v2304_v16 = vpop.xlane.xlu0 %2303 }
 0xbe6   :  { %4154 = vrcp.f32 %v2304_v16 }
 0xbeb   :  { %2692 = vrot.lane.b32.xlu1 %v5417_v14, %s4375_s0 }
 0xbec   :  { %v4155_v19 = vpop.eup %4154  ;;  %v2531_v14 = vpop.permute.xlu2 %2530 }
 0xbed   :  { %v2306_v36 = vmul.f32 %v4155_v19, %v5521_v41 }
 0xbef   :  { %v2307_v6 = vpack.c.bf16 %v2306_v36, %v2306_v36 }
 0xbf1   :  { %3622 = vmatmul.msk.bf16.vlgmr.msra.gmra.mxu0 %vm416_vm0, %v2307_v6 }
 0xbf2   :  { %v2211_v56 = vpop.xlane.xlu1 %2210 }
 0xbf3   :  { %4156 = vrcp.f32 %v2211_v56 }
 0xbf9   :  { %v4157_v15 = vpop.eup %4156 }
 0xbfa   :  { %v2213_v52 = vmul.f32 %v4157_v15, %v5529_v48  ;;  %v2580_v48 = vpop.xlane.xlu0 %2579 }
 0xbfc   :  { %v2214_v63 = vpack.c.bf16 %v2213_v52, %v2213_v52 }
 0xbfe   :  { %3620 = vmatmul.msk.bf16.vlgmr.msra.gmra.mxu2 %vm416_vm0, %v2214_v63 }
 0xbff   :  { %2489 = vmatpush.bf16.msra.mxu2 %v5555_v38 }
 0xc0a   :  { %v2423_v34 = vpop.permute.xlu1 %2422 }
 0xc0b   :  { %2435 = vmatpush.bf16.msrb.mxu0 %v2423_v34 }
 0xc0f   :  { %2543 = vmatpush.bf16.msra.mxu0 %v2531_v14 }
 0xc22   :  { %v5589_v41 = vpop.f32.mrf.mxu0 }
 0xc23   :  { %v5591_v28 = vpop.f32.mrf.mxu2 }
 0xc25   :  { %v2634_v27 = vpop.xlane.xlu2 %2633 }
 0xc2a   :  { %v1962_v29 = vpop.f32.mrf.mxu0 }
 0xc2b   :  { %v1908_v3 = vpop.f32.mrf.mxu2 }
 0xc33   :  { %v5593_v4 = vpop.f32.mrf.mxu2 }
 0xc35   :  { %v2364_v43 = vpop.xlane.xlu1 %2363 }
 0xc36   :  { %4158 = vrcp.f32 %v2364_v43 }
 0xc38   :  { %v2688_v58 = vpop.xlane.xlu0 %2687 }
 0xc3b   :  { %v5595_v18 = vpop.f32.mrf.mxu0  ;;  %v2016_v37 = vpop.f32.mrf.mxu2 }
 0xc3c   :  { %v4159_v57 = vpop.eup %4158  ;;  %v3892_v37 = vld [vmem:[#allocation7 + $0x28] sm:$0xff] }
 0xc3d   :  { %v2366_v55 = vmul.f32 %v4159_v57, %v4143_v32  ;;  %v2418_v25 = vpop.xlane.xlu1 %2417  ;;  %v3891_v57 = vld [vmem:[#allocation7 + $0x20] sm:$0xff] }
 0xc3e   :  { %4160 = vrcp.f32 %v2418_v25  ;;  %v3889_v25 = vld [vmem:[#allocation7 + $0x10] sm:$0xff] }
 0xc3f   :  { %v2367_v40 = vpack.c.bf16 %v2366_v55, %v2366_v55  ;;  %4162 = vrcp.f32 %v2472_v5  ;;  %v3890_v55 = vld [vmem:[#allocation7 + $0x18] sm:$0xff] }
 0xc41   :  { %3624 = vmatmul.msk.bf16.vlgmr.msrb.gmra.mxu2 %vm416_vm0, %v2367_v40  ;;  %v3888_v40 = vld [vmem:[#allocation7 + $0x8] sm:$0xff] }
 0xc42   :  { %2597 = vmatpush.bf16.msrb.mxu2 %v2585_v22 }
 0xc43   :  { %v2070_v38 = vpop.f32.mrf.mxu0 }
 0xc44   :  { %v4161_v61 = vpop.eup %4160 }
 0xc45   :  { %v2420_v46 = vmul.f32 %v4161_v61, %v4149_v8  ;;  %v2526_v13 = vpop.xlane.xlu1 %2525  ;;  %v4163_v54 = vpop.eup %4162 }
 0xc46   :  { %4164 = vrcp.f32 %v2526_v13  ;;  %v2474_v44 = vmul.f32 %v4163_v54, %v5519_v39 }
 0xc47   :  { %v2421_v53 = vpack.c.bf16 %v2420_v46, %v2420_v46  ;;  %4166 = vrcp.f32 %v2580_v48  ;;  %v3894_v48 = vld [vmem:[#allocation7 + $0x38] sm:$0xff] }
 0xc48   :  { %v2475_v17 = vpack.c.bf16 %v2474_v44, %v2474_v44  ;;  %4168 = vrcp.f32 %v2634_v27  ;;  %2815 = vmatpush.bf16.msrb.mxu3 %v3894_v48  ;;  %v3729_v48 = vld [vmem:[#allocation8 + $0x78] sm:$0xf0] }
 0xc49   :  { %v2122_v33 = vpop.f32.mrf.mxu2  ;;  %3626 = vmatmul.msk.bf16.vlgmr.msrb.gmra.mxu0 %vm416_vm0, %v2421_v53  ;;  %4170 = vrcp.f32 %v2688_v58  ;;  %v3887_v58 = vld [vmem:[#allocation7] sm:$0xff] }
 0xc4b   :  { %v2639_v51 = vpop.permute.xlu0 %2638  ;;  %v2176_v9 = vpop.f32.mrf.mxu0 }
 0xc4c   :  { %2651 = vmatpush.bf16.msrb.mxu0 %v2639_v51  ;;  %v4165_v1 = vpop.eup %4164 }
 0xc4d   :  { %v2528_v24 = vmul.f32 %v4165_v1, %v4153_v45  ;;  %v4167_v42 = vpop.eup %4166 }
 0xc4e   :  { %v2582_v30 = vmul.f32 %v4167_v42, %v5533_v49  ;;  %v4169_v11 = vpop.eup %4168 }
 0xc4f   :  { %v2529_v12 = vpack.c.bf16 %v2528_v24, %v2528_v24  ;;  %v2636_v50 = vmul.f32 %v4169_v11, %v5552_v7  ;;  %v4171_v8 = vpop.eup %4170 }
 0xc50   :  { %v2583_v31 = vpack.c.bf16 %v2582_v30, %v2582_v30  ;;  %v2690_v21 = vmul.f32 %v4171_v8, %v5570_v35 }
 0xc51   :  { %v2124_v2 = vpop.f32.mrf.mxu2  ;;  %3628 = vmatmul.msk.bf16.vlgmr.msra.gmra.mxu2 %vm416_vm0, %v2475_v17  ;;  %v2637_v10 = vpack.c.bf16 %v2636_v50, %v2636_v50 }
 0xc52   :  { %v2691_v26 = vpack.c.bf16 %v2690_v21, %v2690_v21 }
 0xc53   :  { %v2178_v32 = vpop.f32.mrf.mxu0 }
 0xc59   :  { %3630 = vmatmul.msk.bf16.vlgmr.msra.gmra.mxu0 %vm416_vm0, %v2529_v12 }
 0xc5d   :  { %v2693_v39 = vpop.permute.xlu1 %2692 }
 0xc5e   :  { %2705 = vmatpush.bf16.msra.mxu2 %v2693_v39 }
 0xc61   :  { %3632 = vmatmul.msk.bf16.vlgmr.msrb.gmra.mxu2 %vm416_vm0, %v2583_v31 }
 0xc69   :  { %3634 = vmatmul.msk.bf16.vlgmr.msrb.gmra.mxu0 %vm416_vm0, %v2637_v10 }
 0xc6e   :  { %v2326_v59 = vpop.f32.mrf.mxu0 }
 0xc71   :  { %3636 = vmatmul.msk.bf16.vlgmr.msra.gmra.mxu2 %vm416_vm0, %v2691_v26 }
 0xc76   :  { %v2328_v49 = vpop.f32.mrf.mxu0 }
 0xc81   :  { %v2230_v47 = vpop.f32.mrf.mxu2 }
 0xc89   :  { %v2232_v45 = vpop.f32.mrf.mxu2 }
 0xcc4   :  { %v2383_v20 = vpop.f32.mrf.mxu2 }
 0xcc5   :  { %v3988_v16 = vpack.i.bf16 %v2383_v20, %v5591_v28 }
 0xcc6   :  { %v2437_v19 = vpop.f32.mrf.mxu0 }
 0xcc7   :  { %v3993_v36 = vpack.i.bf16 %v2437_v19, %v5589_v41  ;;  %3989 = vrot.lane.b32.xlu0 %v3988_v16, %s4375_s0 }
 0xcc9   :  { %3994 = vrot.lane.b32.xlu1 %v3993_v36, %s4374_s9 }
 0xccc   :  { %v2385_v7 = vpop.f32.mrf.mxu2 }
 0xccd   :  { %v4031_v7 = vld [vmem:[%s5698_s14] ss:$0 sm:$0xff] }
 0xcce   :  { %v2439_v6 = vpop.f32.mrf.mxu0 }
 0xcd4   :  { %v2491_v35 = vpop.f32.mrf.mxu2 }
 0xcd5   :  { %v3998_v56 = vpack.i.bf16 %v2491_v35, %v5593_v4 }
 0xcd6   :  { %v2545_v15 = vpop.f32.mrf.mxu0 }
 0xcd7   :  { %v4003_v22 = vpack.i.bf16 %v2545_v15, %v5595_v18  ;;  %3999 = vrot.lane.b32.xlu0 %v3998_v56, %s4373_s13  ;;  %v3893_v18 = vld [vmem:[#allocation7 + $0x30] sm:$0xff] }
 0xcd8   :  { %2816 = vmatpush.bf16.msrb.mxu3 %v3893_v18 }
 0xcd9   :  { %4004 = vrot.lane.b32.xlu1 %v4003_v22, %s4361_s29 }
 0xcdc   :  { %v2493_v52 = vpop.f32.mrf.mxu2  ;;  %2817 = vmatpush.bf16.msrb.mxu3 %v3892_v37  ;;  %v3719_v37 = vld [vmem:[#allocation8 + $0x60] sm:$0xf] }
 0xcde   :  { %v2547_v63 = vpop.f32.mrf.mxu0 }
 0xce0   :  { %2818 = vmatpush.bf16.msrb.mxu3 %v3891_v57  ;;  %v3908_v57 = vld [vmem:[#allocation8 + $0x64] sm:$0xf0] }
 0xce4   :  { %v2599_v5 = vpop.f32.mrf.mxu2  ;;  %2819 = vmatpush.bf16.msrb.mxu3 %v3890_v55  ;;  %v3907_v55 = vld [vmem:[#allocation8 + $0x64] sm:$0xf] }
 0xce5   :  { %v4008_v34 = vpack.i.bf16 %v2599_v5, %v2122_v33 }
 0xce6   :  { %v2653_v14 = vpop.f32.mrf.mxu0 }
 0xce7   :  { %v4013_v41 = vpack.i.bf16 %v2653_v14, %v2176_v9  ;;  %4009 = vrot.lane.b32.xlu2 %v4008_v34, %s4372_s8 }
 0xce8   :  { %2820 = vmatpush.bf16.msrb.mxu3 %v3889_v25  ;;  %v3720_v25 = vor.u32 %v3908_v57, %v3719_v37 }
 0xce9   :  { %4014 = vrot.lane.b32.xlu0 %v4013_v41, %s4371_s4 }
 0xcec   :  { %v2601_v28 = vpop.f32.mrf.mxu2  ;;  %2821 = vmatpush.bf16.msrb.mxu3 %v3888_v40  ;;  %v3721_v40 = vld [vmem:[#allocation8 + $0x68] sm:$0xf0] }
 0xcee   :  { %v2655_v29 = vpop.f32.mrf.mxu0 }
 0xcf0   :  { %2822 = vmatpush.bf16.msrb.mxu3 %v3887_v58  ;;  %v3724_v58 = vor.u32 %v3907_v55, %v3721_v40 }
 0xcf4   :  { %v2707_v3 = vpop.f32.mrf.mxu2 }
 0xcf5   :  { %v4018_v4 = vpack.i.bf16 %v2707_v3, %v2230_v47  ;;  %v3910_v3 = vld [vmem:[#allocation8 + $0x74] sm:$0xf0] }
 0xcf7   :  { %4019 = vrot.lane.b32.xlu1 %v4018_v4, %s4370_s28  ;;  %v3909_v4 = vld [vmem:[#allocation8 + $0x74] sm:$0xf] }
 0xcf8   :  { %v3732_v18 = vor.u32 %v3909_v4, %v3729_v48  ;;  %v3923_v48 = vld [vmem:[#allocation10 + $0x60] sm:$0xff] }
 0xcfa   :  { %3000 = vmatpush.bf16.msrb.mxu1 %v3732_v18 }
 0xcfc   :  { %v2709_v43 = vpop.f32.mrf.mxu2 }
 0xcfe   :  { %3001 = vmatpush.bf16.msrb.mxu1 %v3724_v58 }
 0xd39   :  { %v3990_v38 = vpop.permute.xlu0 %3989 }
 0xd3a   :  { %v3992_v46 = vunpack.i.h.bf16 %v3990_v38  ;;  %v3991_v53 = vunpack.i.l.bf16 %v3990_v38  ;;  %v3711_v38 = vld [vmem:[#allocation8 + $0x50] sm:$0xf] }
 0xd3b   :  { %v3995_v61 = vpop.permute.xlu1 %3994 }
 0xd3c   :  { %v3997_v54 = vunpack.i.h.bf16 %v3995_v61  ;;  %v3996_v33 = vunpack.i.l.bf16 %v3995_v61  ;;  %v2739_v44 = vsel %vm416_vm0, %v2326_v59, %v3992_v46  ;;  %v2262_v51 = vsel %vm416_vm0, %v5549_v60, %v3991_v53  ;;  %v3906_v61 = vld [vmem:[#allocation8 + $0x54] sm:$0xf0]  ;;  %v3905_v46 = vld [vmem:[#allocation8 + $0x54] sm:$0xf] }
 0xd3d   :  { %v3712_v53 = vor.u32 %v3906_v61, %v3711_v38  ;;  %v4032_v61 = vld [vmem:[%s5701_s17] ss:$0 sm:$0xff] }
 0xd3e   :  { %v2740_v2 = vsel %vm899_vm3, %v2739_v44, %v3997_v54  ;;  %v2263_v24 = vsel %vm899_vm3, %v2262_v51, %v3996_v33  ;;  %v3703_v33 = vld [vmem:[#allocation8 + $0x40] sm:$0xf]  ;;  %v3904_v44 = vld [vmem:[#allocation8 + $0x44] sm:$0xf0]  ;;  %v3903_v51 = vld [vmem:[#allocation8 + $0x44] sm:$0xf] }
 0xd41   :  { %v4010_v39 = vpop.permute.xlu2 %4009 }
 0xd42   :  { %v4012_v10 = vunpack.i.h.bf16 %v4010_v39  ;;  %v4011_v8 = vunpack.i.l.bf16 %v4010_v39  ;;  %v3900_v39 = vld [vmem:[#allocation8 + $0x24] sm:$0xf0] }
 0xd49   :  { %v4000_v13 = vpop.permute.xlu0 %3999 }
 0xd4a   :  { %v4002_v9 = vunpack.i.h.bf16 %v4000_v13  ;;  %v4001_v17 = vunpack.i.l.bf16 %v4000_v13  ;;  %v3713_v13 = vld [vmem:[#allocation8 + $0x58] sm:$0xf0] }
 0xd4b   :  { %v4005_v1 = vpop.permute.xlu1 %4004  ;;  %v3716_v54 = vor.u32 %v3905_v46, %v3713_v13 }
 0xd4c   :  { %v4007_v32 = vunpack.i.h.bf16 %v4005_v1  ;;  %v4006_v27 = vunpack.i.l.bf16 %v4005_v1  ;;  %v2264_v12 = vsel %vm901_vm4, %v2263_v24, %v4001_v17  ;;  %v2741_v42 = vsel %vm901_vm4, %v2740_v2, %v4002_v9  ;;  %v3705_v17 = vld [vmem:[#allocation8 + $0x48] sm:$0xf0]  ;;  %v3695_v2 = vld [vmem:[#allocation8 + $0x30] sm:$0xf]  ;;  %v3902_v24 = vld [vmem:[#allocation8 + $0x34] sm:$0xf0] }
 0xd4d   :  { %3002 = vmatpush.bf16.msrb.mxu1 %v3716_v54  ;;  %v3704_v9 = vor.u32 %v3904_v44, %v3703_v33  ;;  %v3708_v1 = vor.u32 %v3903_v51, %v3705_v17  ;;  %v4033_v54 = vld [vmem:[%s5702_s18] ss:$0 sm:$0xff] }
 0xd4e   :  { %v2265_v31 = vsel %vm903_vm5, %v2264_v12, %v4006_v27  ;;  %v2742_v11 = vsel %vm903_vm5, %v2741_v42, %v4007_v32  ;;  %v3901_v32 = vld [vmem:[#allocation8 + $0x34] sm:$0xf]  ;;  %v3696_v27 = vor.u32 %v3902_v24, %v3695_v2  ;;  %v3697_v12 = vld [vmem:[#allocation8 + $0x38] sm:$0xf0] }
 0xd4f   :  { %v2266_v59 = vsel %vm905_vm6, %v2265_v31, %v4011_v8  ;;  %v2743_v26 = vsel %vm905_vm6, %v2742_v11, %v4012_v10  ;;  %v3700_v42 = vor.u32 %v3901_v32, %v3697_v12  ;;  %v3899_v31 = vld [vmem:[#allocation8 + $0x24] sm:$0xf]  ;;  %v3679_v10 = vld [vmem:[#allocation8 + $0x10] sm:$0xf]  ;;  %v3898_v8 = vld [vmem:[#allocation8 + $0x14] sm:$0xf0] }
 0xd50   :  { %v3914_v2 = vld [vmem:[#allocation10 + $0x18] sm:$0xff]  ;;  %v3921_v32 = vld [vmem:[#allocation10 + $0x50] sm:$0xff]  ;;  %v3920_v12 = vld [vmem:[#allocation10 + $0x48] sm:$0xff] }
 0xd51   :  { %3003 = vmatpush.bf16.msrb.mxu1 %v3708_v1  ;;  %v3922_v24 = vld [vmem:[#allocation10 + $0x58] sm:$0xff] }
 0xd55   :  { %3004 = vmatpush.bf16.msrb.mxu1 %v3700_v42  ;;  %v3911_v42 = vld [vmem:[#allocation10] sm:$0xff] }
 0xd5b   :  { %v4015_v30 = vpop.permute.xlu0 %4014 }
 0xd5c   :  { %v4017_v60 = vunpack.i.h.bf16 %v4015_v30  ;;  %v4016_v50 = vunpack.i.l.bf16 %v4015_v30  ;;  %v3687_v30 = vld [vmem:[#allocation8 + $0x20] sm:$0xf] }
 0xd5d   :  { %v3688_v11 = vor.u32 %v3900_v39, %v3687_v30  ;;  %v2900_v30 = vld [vmem:[%s5706_s22] sm:$0x3] }
 0xd5e   :  { %v2267_v45 = vsel %vm907_vm7, %v2266_v59, %v4016_v50  ;;  %v2744_v20 = vsel %vm907_vm7, %v2743_v26, %v4017_v60  ;;  %v3689_v60 = vld [vmem:[#allocation8 + $0x28] sm:$0xf0]  ;;  %v3680_v59 = vor.u32 %v3898_v8, %v3679_v10  ;;  %v3681_v26 = vld [vmem:[#allocation8 + $0x18] sm:$0xf0] }
 0xd5f   :  { %v3692_v50 = vor.u32 %v3899_v31, %v3689_v60  ;;  %v2903_v60 = vperm.slane %v2900_v30, 1 }
 0xd61   :  { %3005 = vmatpush.bf16.msrb.mxu1 %v3692_v50 }
 0xd69   :  { %v4020_v21 = vpop.permute.xlu1 %4019 }
 0xd6a   :  { %v4022_v49 = vunpack.i.h.bf16 %v4020_v21  ;;  %v4021_v47 = vunpack.i.l.bf16 %v4020_v21  ;;  %v3897_v21 = vld [vmem:[#allocation8 + $0x14] sm:$0xf] }
 0xd6c   :  { %v2268_v16 = vsel %vm909_vm8, %v2267_v45, %v4021_v47  ;;  %v2745_v19 = vsel %vm909_vm8, %v2744_v20, %v4022_v49  ;;  %v3684_v47 = vor.u32 %v3897_v21, %v3681_v26  ;;  %v3671_v20 = vld [vmem:[#allocation8] sm:$0xf] }
 0xd6d   :  { %v2746_v36 = vpack.c.bf16 %v2745_v19, %v2268_v16  ;;  %v3896_v16 = vld [vmem:[#allocation8 + $0x4] sm:$0xf0]  ;;  %v3895_v19 = vld [vmem:[#allocation8 + $0x4] sm:$0xf] }
 0xd6e   :  { %3006 = vmatpush.bf16.msrb.mxu1 %v3684_v47 }
 0xd6f   :  { %2823 = vmatmul.bf16.vlgmr.msrb.gmra.mxu3 %v2746_v36 }
 0xdf2   :  { %v2824_v6 = vpop.f32.mrf.mxu3 }
 0xdf3   :  { %v2825_v35 = vadd.f32 %v4031_v7, %v2824_v6  ;;  %v3673_v6 = vld [vmem:[#allocation8 + $0x8] sm:$0xf0] }
 0xdf5   :  { %v2829_v56 = vadd.f32 %v2825_v35, %v5262_v23  ;;  %v3676_v35 = vor.u32 %v3895_v19, %v3673_v6 }
 0xdf7   :  { %2831 = vadd.xlane.f32.xlu0 %v2829_v56  ;;  %3007 = vmatpush.bf16.msrb.mxu1 %v3676_v35 }
 0xdfa   :  { %v2826_v15 = vpop.f32.mrf.mxu3 }
 0xdfb   :  { %v2827_v22 = vadd.f32 %v4031_v7, %v2826_v15  ;;  %v3672_v7 = vor.u32 %v3896_v16, %v3671_v20  ;;  %v3926_v15 = vld [vmem:[#allocation10 + $0x78] sm:$0xff] }
 0xdfc   :  { %3166 = vmatpush.bf16.msra.mxu3 %v3926_v15 }
 0xdfd   :  { %v2830_v52 = vadd.f32 %v2827_v22, %v5264_v62  ;;  %v3727_v62 = vld [vmem:[#allocation8 + $0x70] sm:$0xf] }
 0xdfe   :  { %v3728_v43 = vor.u32 %v3910_v3, %v3727_v62  ;;  %v3924_v62 = vld [vmem:[#allocation10 + $0x68] sm:$0xff] }
 0xdff   :  { %2833 = vadd.xlane.f32.xlu1 %v2830_v52 }
 0xe00   :  { %2986 = vmatpush.bf16.msra.mxu0 %v3728_v43  ;;  %v3915_v43 = vld [vmem:[#allocation10 + $0x20] sm:$0xff] }
 0xe04   :  { %2987 = vmatpush.bf16.msra.mxu0 %v3720_v25 }
 0xe08   :  { %2988 = vmatpush.bf16.msra.mxu0 %v3712_v53 }
 0xe0c   :  { %2989 = vmatpush.bf16.msra.mxu0 %v3704_v9 }
 0xe10   :  { %2990 = vmatpush.bf16.msra.mxu0 %v3696_v27  ;;  %v3912_v27 = vld [vmem:[#allocation10 + $0x8] sm:$0xff] }
 0xe14   :  { %2991 = vmatpush.bf16.msra.mxu0 %v3688_v11  ;;  %v2902_v11 = vperm.slane %v2900_v30, 0 }
 0xe18   :  { %2992 = vmatpush.bf16.msra.mxu0 %v3680_v59 }
 0xe1c   :  { %2993 = vmatpush.bf16.msra.mxu0 %v3672_v7 }
 0xe6a   :  { %v2832_v63 = vpop.xlane.xlu0 %2831 }
 0xe6b   :  { %v2835_v5 = vmul.f32 %v2832_v63, %v5162_v0  ;;  %v3917_v63 = vld [vmem:[#allocation10 + $0x30] sm:$0xff] }
 0xe6d   :  { %v5640_v34 = vsub.f32 %v2829_v56, %v2835_v5  ;;  %v3918_v56 = vld [vmem:[#allocation10 + $0x38] sm:$0xff]  ;;  %v3925_v5 = vld [vmem:[#allocation10 + $0x70] sm:$0xff] }
 0xe6e   :  { %3152 = vmatpush.bf16.msrb.mxu2 %v3918_v56  ;;  %3167 = vmatpush.bf16.msra.mxu3 %v3925_v5 }
 0xe6f   :  { %v2839_v14 = vmul.f32 %v5640_v34, %v5640_v34 }
 0xe71   :  { %2841 = vadd.xlane.f32.xlu2 %v2839_v14 }
 0xe72   :  { %v2834_v41 = vpop.xlane.xlu1 %2833  ;;  %3153 = vmatpush.bf16.msrb.mxu2 %v3917_v63  ;;  %3168 = vmatpush.bf16.msra.mxu3 %v3924_v62 }
 0xe73   :  { %v2836_v28 = vmul.f32 %v2834_v41, %v5162_v0 }
 0xe75   :  { %v5645_v29 = vsub.f32 %v2830_v52, %v2836_v28 }
 0xe76   :  { %3169 = vmatpush.bf16.msra.mxu3 %v3923_v48 }
 0xe77   :  { %v2840_v23 = vmul.f32 %v5645_v29, %v5645_v29 }
 0xe79   :  { %2843 = vadd.xlane.f32.xlu0 %v2840_v23  ;;  %v3916_v23 = vld [vmem:[#allocation10 + $0x28] sm:$0xff] }
 0xe7a   :  { %3154 = vmatpush.bf16.msrb.mxu2 %v3916_v23  ;;  %3170 = vmatpush.bf16.msra.mxu3 %v3922_v24 }
 0xe7e   :  { %3155 = vmatpush.bf16.msrb.mxu2 %v3915_v43  ;;  %3171 = vmatpush.bf16.msra.mxu3 %v3921_v32 }
 0xe82   :  { %3156 = vmatpush.bf16.msrb.mxu2 %v3914_v2  ;;  %3172 = vmatpush.bf16.msra.mxu3 %v3920_v12 }
 0xee4   :  { %v2842_v49 = vpop.xlane.xlu2 %2841 }
 0xee5   :  { %v2845_v45 = vmul.f32 %v2842_v49, %v5162_v0 }
 0xee7   :  { %v2847_v36 = vadd.f32 1e-05, %v2845_v45 }
 0xee9   :  { %4172 = vrsqrt.f32 %v2847_v36  ;;  %vm2855_vm1 = vweird.f32 %v2847_v36 }
 0xeec   :  { %v2844_v22 = vpop.xlane.xlu0 %2843 }
 0xeed   :  { %v2846_v52 = vmul.f32 %v2844_v22, %v5162_v0 }
 0xeef   :  { %v4173_v14 = vpop.eup %4172  ;;  %v2848_v41 = vadd.f32 1e-05, %v2846_v52 }
 0xef0   :  { %v2850_v28 = vmul.f32 %v4173_v14, %v2847_v36  ;;  %vm2856_vm0 = vweird.f32 %v4173_v14  ;;  %v4034_v36 = vld [vmem:[%s5708_s24] ss:$0 sm:$0xff] }
 0xef1   :  { %4174 = vrsqrt.f32 %v2848_v41  ;;  %vm2857_vm2 = vmor %vm2855_vm1, %vm2856_vm0  ;;  %vm2865_vm4 = vweird.f32 %v2848_v41 }
 0xef2   :  { %v2851_v3 = vmul.f32 %v4173_v14, %v2850_v28 }
 0xef4   :  { %v2852_v4 = vmul.f32 0.5, %v2851_v3 }
 0xef6   :  { %v2853_v18 = vsub.f32 1.5, %v2852_v4 }
 0xef7   :  { %v4175_v37 = vpop.eup %4174 }
 0xef8   :  { %v2854_v57 = vmul.f32 %v4173_v14, %v2853_v18  ;;  %v2860_v55 = vmul.f32 %v4175_v37, %v2848_v41  ;;  %vm2866_vm3 = vweird.f32 %v4175_v37  ;;  %v3934_v18 = vld [vmem:[#allocation11 + $0x38] sm:$0xff] }
 0xef9   :  { %vm2867_vm5 = vmor %vm2865_vm4, %vm2866_vm3  ;;  %3303 = vmatpush.bf16.msrb.mxu0 %v3934_v18 }
 0xefa   :  { %v2861_v25 = vmul.f32 %v4175_v37, %v2860_v55  ;;  %v2858_v40 = vsel %vm2857_vm2, %v4173_v14, %v2854_v57  ;;  %v3932_v57 = vld [vmem:[#allocation11 + $0x28] sm:$0xff]  ;;  %v3931_v55 = vld [vmem:[#allocation11 + $0x20] sm:$0xff] }
 0xefb   :  { %v2869_v46 = vmul.f32 %v2858_v40, %v5640_v34  ;;  %v3913_v34 = vld [vmem:[#allocation10 + $0x10] sm:$0xff] }
 0xefc   :  { %v2862_v58 = vmul.f32 0.5, %v2861_v25  ;;  %3157 = vmatpush.bf16.msrb.mxu2 %v3913_v34  ;;  %v3930_v25 = vld [vmem:[#allocation11 + $0x18] sm:$0xff]  ;;  %v3929_v40 = vld [vmem:[#allocation11 + $0x10] sm:$0xff] }
 0xefd   :  { %v2875_v33 = vmul.f32 %v4032_v61, %v2869_v46 }
 0xefe   :  { %v2863_v38 = vsub.f32 1.5, %v2862_v58  ;;  %v3928_v58 = vld [vmem:[#allocation11 + $0x8] sm:$0xff] }
 0xeff   :  { %v2881_v9 = vadd.f32 %v4033_v54, %v2875_v33 }
 0xf00   :  { %v2864_v53 = vmul.f32 %v4175_v37, %v2863_v38  ;;  %3158 = vmatpush.bf16.msrb.mxu2 %v3912_v27 }
 0xf02   :  { %v2868_v13 = vsel %vm2867_vm5, %v4175_v37, %v2864_v53  ;;  %v3933_v37 = vld [vmem:[#allocation11 + $0x30] sm:$0xff]  ;;  %v3927_v53 = vld [vmem:[#allocation11] sm:$0xff] }
 0xf03   :  { %v2870_v44 = vmul.f32 %v2868_v13, %v5645_v29  ;;  %v3919_v29 = vld [vmem:[#allocation10 + $0x40] sm:$0xff]  ;;  %3304 = vmatpush.bf16.msrb.mxu0 %v3933_v37 }
 0xf04   :  { %3159 = vmatpush.bf16.msrb.mxu2 %v3911_v42  ;;  %3173 = vmatpush.bf16.msra.mxu3 %v3919_v29 }
 0xf05   :  { %v2876_v51 = vmul.f32 %v4032_v61, %v2870_v44 }
 0xf07   :  { %v2882_v17 = vadd.f32 %v4033_v54, %v2876_v51  ;;  %3305 = vmatpush.bf16.msrb.mxu0 %v3932_v57 }
 0xf09   :  { %v2883_v1 = vpack.c.bf16 %v2882_v17, %v2881_v9 }
 0xf0b   :  { %2994 = vmatmul.bf16.vlgmr.msra.gmra.mxu0 %v2883_v1  ;;  %3008 = vmatmul.bf16.vlgmr.msrb.gmra.mxu1 %v2883_v1 }
 0xf0c   :  { %3306 = vmatpush.bf16.msrb.mxu0 %v3931_v55 }
 0xf10   :  { %3307 = vmatpush.bf16.msrb.mxu0 %v3930_v25 }
 0xf14   :  { %3308 = vmatpush.bf16.msrb.mxu0 %v3929_v40 }
 0xf18   :  { %3309 = vmatpush.bf16.msrb.mxu0 %v3928_v58 }
 0xf1c   :  { %3310 = vmatpush.bf16.msrb.mxu0 %v3927_v53 }
 0xf88   :  { %v2995_v39 = vpop.f32.mrf.mxu0  ;;  %v3009_v31 = vpop.f32.mrf.mxu1 }
 0xf89   :  { %v2996_v50 = vadd.f32 %v2995_v39, %v2902_v11  ;;  %v3010_v10 = vadd.f32 %v3009_v31, %v2903_v60  ;;  %v4036_v31 = vld [vmem:[%s5704_s20] ss:$0 sm:$0xff]  ;;  %s3325_s20 = sshll.u32 %s5744_s12, 4  ;;  %s3326_s20 = int_to_ptr.hbm [resolvable:$true] %s3325_s20 }
 0xf8b   :  { %v3014_v49 = vmax.f32 %v2996_v50, 0.0  ;;  %v3015_v47 = vmax.f32 %v3010_v10, 0.0 }
 0xf90   :  { %v2997_v8 = vpop.f32.mrf.mxu0  ;;  %v3011_v21 = vpop.f32.mrf.mxu1 }
 0xf91   :  { %v2998_v59 = vadd.f32 %v2997_v8, %v2902_v11  ;;  %v3012_v26 = vadd.f32 %v3011_v21, %v2903_v60 }
 0xf93   :  { %v3016_v45 = vmax.f32 %v2998_v59, 0.0  ;;  %v3017_v20 = vmax.f32 %v3012_v26, 0.0  ;;  %v4037_v59 = vld [vmem:[%s5710_s26] ss:$0 sm:$0xff] }
 0xf95   :  { %v3018_v16 = vpack.c.bf16 %v3016_v45, %v3014_v49  ;;  %v3019_v19 = vpack.c.bf16 %v3017_v20, %v3015_v47 }
 0xf97   :  { %3160 = vmatmul.bf16.vlgmr.msrb.gmra.mxu2 %v3018_v16  ;;  %3174 = vmatmul.bf16.vlgmr.msra.gmra.mxu3 %v3019_v19 }
0x101a   :  { %v3161_v7 = vpop.f32.mrf.mxu2  ;;  %v3175_v6 = vpop.f32.mrf.mxu3 }
0x101b   :  { %v3162_v35 = vadd.f32 %v4034_v36, %v3161_v7 }
0x101d   :  { %v3176_v56 = vadd.f32 %v3175_v6, %v3162_v35 }
0x101f   :  { %v3180_v15 = vadd.f32 %v3176_v56, %v2881_v9 }
0x1021   :  { %3182 = vadd.xlane.f32.xlu1 %v3180_v15 }
0x1022   :  { %v3163_v22 = vpop.f32.mrf.mxu2  ;;  %v3177_v63 = vpop.f32.mrf.mxu3 }
0x1023   :  { %v3164_v52 = vadd.f32 %v4034_v36, %v3163_v22 }
0x1025   :  { %v3178_v5 = vadd.f32 %v3177_v63, %v3164_v52 }
0x1027   :  { %v3181_v14 = vadd.f32 %v3178_v5, %v2882_v17 }
0x1029   :  { %3184 = vadd.xlane.f32.xlu0 %v3181_v14 }
0x1094   :  { %v3183_v41 = vpop.xlane.xlu1 %3182 }
0x1095   :  { %v3186_v28 = vmul.f32 %v3183_v41, %v5162_v0 }
0x1097   :  { %v3188_v23 = vsub.f32 %v3180_v15, %v3186_v28 }
0x1099   :  { %v3190_v62 = vmul.f32 %v3188_v23, %v3188_v23 }
0x109b   :  { %3192 = vadd.xlane.f32.xlu1 %v3190_v62 }
0x109c   :  { %v3185_v3 = vpop.xlane.xlu0 %3184 }
0x109d   :  { %v3187_v4 = vmul.f32 %v3185_v3, %v5162_v0 }
0x109f   :  { %v3189_v43 = vsub.f32 %v3181_v14, %v3187_v4 }
0x10a1   :  { %v3191_v48 = vmul.f32 %v3189_v43, %v3189_v43 }
0x10a3   :  { %3194 = vadd.xlane.f32.xlu2 %v3191_v48 }
0x110e   :  { %v3193_v38 = vpop.xlane.xlu1 %3192 }
0x110f   :  { %v3196_v61 = vmul.f32 %v3193_v38, %v5162_v0 }
0x1111   :  { %v3198_v46 = vadd.f32 1e-05, %v3196_v61 }
0x1113   :  { %4176 = vrsqrt.f32 %v3198_v46  ;;  %vm3206_vm7 = vweird.f32 %v3198_v46 }
0x1116   :  { %v3195_v13 = vpop.xlane.xlu2 %3194 }
0x1117   :  { %v3197_v54 = vmul.f32 %v3195_v13, %v5162_v0  ;;  %v4035_v0 = vld [vmem:[%s5703_s19] ss:$0 sm:$0xff]  ;;  %s4377_s19 = smov [#allocation13]  }
0x1118   :  { %s3323_s2 = sshll.u32 %s4377_s19, 4  ;;  %s3324_s2 = int_to_ptr.vmem [resolvable:$true] %s3323_s2 }
0x1119   :  { %v4177_v33 = vpop.eup %4176  ;;  %v3199_v44 = vadd.f32 1e-05, %v3197_v54 }
0x111a   :  { %v3201_v51 = vmul.f32 %v4177_v33, %v3198_v46  ;;  %vm3207_vm6 = vweird.f32 %v4177_v33 }
0x111b   :  { %4178 = vrsqrt.f32 %v3199_v44  ;;  %vm3208_vm8 = vmor %vm3206_vm7, %vm3207_vm6  ;;  %vm3216_vm10 = vweird.f32 %v3199_v44 }
0x111c   :  { %v3202_v9 = vmul.f32 %v4177_v33, %v3201_v51 }
0x111e   :  { %v3203_v17 = vmul.f32 0.5, %v3202_v9 }
0x1120   :  { %v3204_v1 = vsub.f32 1.5, %v3203_v17 }
0x1121   :  { %v4179_v2 = vpop.eup %4178 }
0x1122   :  { %v3205_v24 = vmul.f32 %v4177_v33, %v3204_v1  ;;  %v3211_v34 = vmul.f32 %v4179_v2, %v3199_v44  ;;  %vm3217_vm9 = vweird.f32 %v4179_v2 }
0x1123   :  { %vm3218_vm11 = vmor %vm3216_vm10, %vm3217_vm9 }
0x1124   :  { %v3212_v32 = vmul.f32 %v4179_v2, %v3211_v34  ;;  %v3209_v27 = vsel %vm3208_vm8, %v4177_v33, %v3205_v24 }
0x1125   :  { %v3220_v29 = vmul.f32 %v3209_v27, %v3188_v23 }
0x1126   :  { %v3213_v12 = vmul.f32 0.5, %v3212_v32 }
0x1127   :  { %v3226_v11 = vmul.f32 %v4035_v0, %v3220_v29 }
0x1128   :  { %v3214_v42 = vsub.f32 1.5, %v3213_v12 }
0x1129   :  { %v3232_v10 = vadd.f32 %v4036_v31, %v3226_v11 }
0x112a   :  { %v3215_v30 = vmul.f32 %v4179_v2, %v3214_v42 }
0x112c   :  { %v3219_v39 = vsel %vm3218_vm11, %v4179_v2, %v3215_v30 }
0x112d   :  { %v3221_v60 = vmul.f32 %v3219_v39, %v3189_v43 }
0x112f   :  { %v3227_v50 = vmul.f32 %v4035_v0, %v3221_v60 }
0x1131   :  { %v3233_v8 = vadd.f32 %v4036_v31, %v3227_v50 }
0x1133   :  { %v3234_v21 = vpack.c.bf16 %v3233_v8, %v3232_v10 }
0x1135   :  { %3311 = vmatmul.bf16.vlgmr.msrb.gmra.mxu0 %v3234_v21 }
0x11b2   :  { %v3312_v26 = vpop.f32.mrf.mxu0 }
0x11b3   :  { %v3313_v49 = vadd.f32 %v4037_v59, %v3312_v26 }
0x11b5   :  { %3317 = vst [vmem:[#allocation13] sm:$0xff] %v3313_v49 }
0x11ba   :  { %v3314_v47 = vpop.f32.mrf.mxu0 }
0x11bb   :  { %v3315_v45 = vadd.f32 %v4037_v59, %v3314_v47 }
0x11bd   :  { %3318 = vst [vmem:[#allocation13 + $0x8] sm:$0xff] %v3315_v45 }
0x11be   :  { %3331 = dma.vmem_to_hbm [thread:$0]  %s3324_s2, 256, %s3326_s20, [#allocation4], %s5745_s10, %s5745_s10, %s4365_s3  }
0x11bf   :  { %4358 = dma.done.wait [#allocation4], 256  }
0x11c0   :  { %4359 = vsyncadd [#allocation4], 4294967040 }
0x11c1   :  { %3336 = vsyncpa [#allocation3], 1 }
0x11c2   :  { %3337 = vsyncpa [#allocation6], 1 }
0x11c3   :  { %3338 = vsyncpa [#allocation9], 1 }
0x11c4   :  { %3339 = vsyncpa [#allocation12], 1 }
0x11c5   :  { %3340 = vsyncpa [#allocation4], 1 }

</bundles_post_ra>
